<compile_context>
chip_gen: v5e
topology: v5e:2x2
jax: 0.10.0
libtpu: 0.0.40
codegen_flags: <defaults>
</compile_context>

<pallas_src>
import functools

import jax
import jax.numpy as jnp
from jax import lax
from jax.experimental import pallas as pl
from jax.experimental.pallas import tpu as pltpu

NUM_CLASSES = 3          # ['cherry', 'tomato', 'strawberry']
IN_FEATURES = 128 * 128 * 3


def _mlp_kernel(x_ref, w_ref, b_ref, o_ref):
    """One K-step: o += x_tile @ w_tile^T (contraction over the last axis)."""
    k = pl.program_id(0)

    @pl.when(k == 0)
    def _():
        # Initialize the resident output block with the bias (broadcast over B).
        o_ref[...] = jnp.broadcast_to(b_ref[...], o_ref.shape).astype(o_ref.dtype)

    # x_ref: (B, tk), w_ref: (NUM_CLASSES, tk) — contract both last axes.
    o_ref[...] += lax.dot_general(
        x_ref[...],
        w_ref[...],
        (((1,), (1,)), ((), ())),
        preferred_element_type=jnp.float32,
    ).astype(o_ref.dtype)


@functools.partial(jax.jit, static_argnames=("tk",))
def simple_mlp_forward(x, weight, bias, *, tk=IN_FEATURES):
    """x: (B, 3, 128, 128) f32; weight: (NUM_CLASSES, K); bias: (NUM_CLASSES,)."""
    B = x.shape[0]
    x_flat = x.reshape(B, -1)                 # (B, K), row-major == torch Flatten
    K = x_flat.shape[1]
    assert K == IN_FEATURES and K % tk == 0

    b2 = bias.reshape(1, NUM_CLASSES)         # (1, NUM_CLASSES)

    grid = (K // tk,)                         # default: a single step
    return pl.pallas_call(
        _mlp_kernel,
        out_shape=jax.ShapeDtypeStruct((B, NUM_CLASSES), x.dtype),
        grid_spec=pltpu.PrefetchScalarGridSpec(
            num_scalar_prefetch=0,
            grid=grid,
            in_specs=[
                pl.BlockSpec((B, tk), lambda k: (0, k)),             # x tile (lane-dense)
                pl.BlockSpec((NUM_CLASSES, tk), lambda k: (0, k)),   # W tile (lane-dense)
                pl.BlockSpec((1, NUM_CLASSES), lambda k: (0, 0)),    # bias
            ],
            out_specs=pl.BlockSpec((B, NUM_CLASSES), lambda k: (0, 0)),
        ),
        compiler_params=pltpu.CompilerParams(
            dimension_semantics=("arbitrary",),  # K is a reduction axis
        ),
        # TODO(synk): for large inference batches add a leading batch grid axis
        # marked "parallel" to use both TensorCores on v7x.
    )(x_flat, weight, b2)


if __name__ == "__main__":
    key = jax.random.PRNGKey(0)
    kx, kw, kb = jax.random.split(key, 3)

    # Deterministic parameter init (PyTorch default Linear init: U(-1/sqrt(K), 1/sqrt(K)))
    bound = 1.0 / (IN_FEATURES ** 0.5)
    weight = jax.random.uniform(
        kw, (NUM_CLASSES, IN_FEATURES), jnp.float32, minval=-bound, maxval=bound
    )
    bias = jax.random.uniform(
        kb, (NUM_CLASSES,), jnp.float32, minval=-bound, maxval=bound
    )

    # Small batch; spatial shape is fixed by Linear(128*128*3, num_classes).
    x = jax.random.normal(kx, (2, 3, 128, 128), jnp.float32)

    out = simple_mlp_forward(x, weight, bias)
    out = jax.block_until_ready(out)

    # Reference check in plain JAX
    ref = x.reshape(2, -1) @ weight.T + bias
    assert out.shape == (2, NUM_CLASSES)
    assert jnp.allclose(out, ref, atol=1e-3, rtol=1e-3)

    print("KERNEL_OK")
</pallas_src>

<mosaic_0001>
module attributes {stable_mosaic.version = 11 : i64} {
  func.func @_mlp_kernel(%arg0: i32, %arg1: memref<2x49152xf32, #tpu.memory_space<vmem>>, %arg2: memref<3x49152xf32, #tpu.memory_space<vmem>>, %arg3: memref<1x3xf32, #tpu.memory_space<vmem>>, %arg4: memref<2x3xf32, #tpu.memory_space<vmem>>) attributes {dimension_semantics = [#tpu.dimension_semantics<arbitrary>], iteration_bounds = array<i64: 1>, scalar_prefetch = 0 : i64, scratch_operands = 0 : i64, tpu.core_type = #tpu.core_type<tc>, window_params = [{transform_indices = @transform_0, window_bounds = array<i64: 2, 49152>}, {transform_indices = @transform_1, window_bounds = array<i64: 3, 49152>}, {pipeline_mode = #tpu.pipeline_mode<synchronous>, transform_indices = @transform_2, window_bounds = array<i64: 1, 3>}, {pipeline_mode = #tpu.pipeline_mode<synchronous>, transform_indices = @transform_3, window_bounds = array<i64: 2, 3>}]} {
    %c0_i32 = arith.constant 0 : i32
    %0 = arith.cmpi eq, %arg0, %c0_i32 : i32
    %1 = arith.extui %0 : i1 to i32
    %c0_i32_0 = arith.constant 0 : i32
    %2 = arith.cmpi ne, %1, %c0_i32_0 : i32
    scf.if %2 {
      %c0_8 = arith.constant 0 : index
      %c0_9 = arith.constant 0 : index
      %9 = vector.load %arg3[%c0_8, %c0_9] : memref<1x3xf32, #tpu.memory_space<vmem>>, vector<1x3xf32>
      %10 = vector.shape_cast %9 : vector<1x3xf32> to vector<1x3xf32>
      %11 = vector.broadcast %10 : vector<1x3xf32> to vector<2x3xf32>
      %c0_10 = arith.constant 0 : index
      %c0_11 = arith.constant 0 : index
      %12 = vector.load %arg4[%c0_10, %c0_11] : memref<2x3xf32, #tpu.memory_space<vmem>>, vector<2x3xf32>
      tpu.vector_store %arg4[%c0_10, %c0_11], %11 {strides = array<i32>} : memref<2x3xf32, #tpu.memory_space<vmem>>, vector<2x3xf32>,
    } else {
    }
    %c0 = arith.constant 0 : index
    %c0_1 = arith.constant 0 : index
    %3 = vector.load %arg4[%c0, %c0_1] : memref<2x3xf32, #tpu.memory_space<vmem>>, vector<2x3xf32>
    %c0_2 = arith.constant 0 : index
    %c0_3 = arith.constant 0 : index
    %4 = vector.load %arg1[%c0_2, %c0_3] : memref<2x49152xf32, #tpu.memory_space<vmem>>, vector<2x49152xf32>
    %c0_4 = arith.constant 0 : index
    %c0_5 = arith.constant 0 : index
    %5 = vector.load %arg2[%c0_4, %c0_5] : memref<3x49152xf32, #tpu.memory_space<vmem>>, vector<3x49152xf32>
    %cst = arith.constant dense<0.000000e+00> : vector<2x3xf32>
    %6 = tpu.matmul %4, %5, %cst {dimension_numbers = #tpu.dot_dimension_numbers<[1], [1], [0], [0], [0, 0, 1, 0], [], []>} : vector<2x49152xf32>, vector<3x49152xf32>, vector<2x3xf32> -> vector<2x3xf32>
    %7 = arith.addf %3, %6 : vector<2x3xf32>
    %c0_6 = arith.constant 0 : index
    %c0_7 = arith.constant 0 : index
    %8 = vector.load %arg4[%c0_6, %c0_7] : memref<2x3xf32, #tpu.memory_space<vmem>>, vector<2x3xf32>
    tpu.vector_store %arg4[%c0_6, %c0_7], %7 {strides = array<i32>} : memref<2x3xf32, #tpu.memory_space<vmem>>, vector<2x3xf32>,
    return
  }
  func.func @transform_0(%arg0: i32) -> (i32, i32) {
    %c0_i32 = arith.constant 0 : i32
    %c0_i32_0 = arith.constant 0 : i32
    return %c0_i32, %arg0 : i32, i32
  }
  func.func @transform_1(%arg0: i32) -> (i32, i32) {
    %c0_i32 = arith.constant 0 : i32
    %c0_i32_0 = arith.constant 0 : i32
    return %c0_i32, %arg0 : i32, i32
  }
  func.func @transform_2(%arg0: i32) -> (i32, i32) {
    %c0_i32 = arith.constant 0 : i32
    %c0_i32_0 = arith.constant 0 : i32
    %c0_i32_1 = arith.constant 0 : i32
    return %c0_i32, %c0_i32_0 : i32, i32
  }
  func.func @transform_3(%arg0: i32) -> (i32, i32) {
    %c0_i32 = arith.constant 0 : i32
    %c0_i32_0 = arith.constant 0 : i32
    %c0_i32_1 = arith.constant 0 : i32
    return %c0_i32, %c0_i32_0 : i32, i32
  }
}

</mosaic_0001>

<bundles_post_ra>
// kernel: simple_mlp_forward.1
= control target key start
LH: loop header
LB: loop body
LE: loop exit
PB: predicated region body
PF: predicated region fallthrough
CT: control target
= control target key end

     0   :  { %s12202_s0 = inlined_call_operand.vmem [shape: f32[2,49152], index: 0, kind: input, shape index: {}]   ;;  %s12203_s1 = inlined_call_operand.vmem [shape: f32[3,49152], index: 1, kind: input, shape index: {}]   ;;  %s12204_s2 = inlined_call_operand.vmem [shape: f32[1,3], index: 2, kind: input, shape index: {}]   ;;  %s12205_s3 = inlined_call_operand.hbm [shape: f32[2,3], index: 3, kind: output, shape index: {}]  }
   0x1   :  { %v26_v0 = vld [vmem:[%s12202_s0] sm:$0xff]  ;;  %v28_v1 = vld [vmem:[%s12202_s0 + $0x10] sm:$0xff] }
   0x2   :  { %410 = vst [vmem:[#allocation1] ss:$4 sm:$0xff] %v26_v0 }
   0x9   :  { %v10184_v2 = vld.sshfl [vmem:[#allocation1] sm:$0xff pattern:$0x73625140]  ;;  %v10186_v3 = vld.sshfl [vmem:[#allocation1 + $0x8] sm:$0xff pattern:$0x73625140] }
   0xa   :  { %v10188_v4 = vld.sshfl [vmem:[#allocation1 + $0x10] sm:$0xff pattern:$0x73625140]  ;;  %v10190_v5 = vld.sshfl [vmem:[#allocation1 + $0x18] sm:$0xff pattern:$0x73625140] }
   0xb   :  { %421 = vst [vmem:[#allocation1] ss:$4 sm:$0xff] %v28_v1 }
   0xc   :  { %8 = vsyncpa [#allocation3], 0  ;;  %v30_v6 = vld [vmem:[%s12202_s0 + $0x20] sm:$0xff]  ;;  %v27_v11 = vld [vmem:[%s12202_s0 + $0x8] sm:$0xff]  ;;  %vm23_vm0 = vcmask 17408   ;;  %s10120_s11 = sshll.u32 %s12205_s3, 4  ;;  %s10121_s11 = int_to_ptr.hbm [resolvable:$true] %s10120_s11 }
   0xd   :  { %412 = vst [vmem:[#allocation1 + $0x20] ss:$4 sm:$0xff] %v27_v11  ;;  %v32_v12 = vld [vmem:[%s12202_s0 + $0x30] sm:$0xff]  ;;  %v29_v17 = vld [vmem:[%s12202_s0 + $0x18] sm:$0xff]  ;;  %v34_v22 = vld [vmem:[%s12202_s0 + $0x40] sm:$0xff] }
   0xe   :  { %v31_v27 = vld [vmem:[%s12202_s0 + $0x28] sm:$0xff]  ;;  %v36_v32 = vld [vmem:[%s12202_s0 + $0x50] sm:$0xff]  ;;  %v33_v37 = vld [vmem:[%s12202_s0 + $0x38] sm:$0xff] }
   0xf   :  { %v38_v42 = vld [vmem:[%s12202_s0 + $0x60] sm:$0xff]  ;;  %v35_v47 = vld [vmem:[%s12202_s0 + $0x48] sm:$0xff]  ;;  %v40_v52 = vld [vmem:[%s12202_s0 + $0x70] sm:$0xff] }
  0x10   :  { %v37_v57 = vld [vmem:[%s12202_s0 + $0x58] sm:$0xff]  ;;  %v42_v62 = vld [vmem:[%s12202_s0 + $0x80] sm:$0xff]  ;;  %v39_v11 = vld [vmem:[%s12202_s0 + $0x68] sm:$0xff] }
  0x12   :  { %v10195_v7 = vld.sshfl [vmem:[#allocation1] sm:$0xff pattern:$0x73625140]  ;;  %v10197_v8 = vld.sshfl [vmem:[#allocation1 + $0x8] sm:$0xff pattern:$0x73625140] }
  0x13   :  { %v10199_v9 = vld.sshfl [vmem:[#allocation1 + $0x10] sm:$0xff pattern:$0x73625140]  ;;  %v10201_v10 = vld.sshfl [vmem:[#allocation1 + $0x18] sm:$0xff pattern:$0x73625140] }
  0x14   :  { %431 = vst [vmem:[#allocation1] ss:$4 sm:$0xff] %v30_v6  ;;  %v10220_v18 = vld.sshfl [vmem:[#allocation1 + $0x20] sm:$0xff pattern:$0x73625140] }
  0x15   :  { %v10222_v19 = vld.sshfl [vmem:[#allocation1 + $0x28] sm:$0xff pattern:$0x73625140]  ;;  %v10224_v20 = vld.sshfl [vmem:[#allocation1 + $0x30] sm:$0xff pattern:$0x73625140] }
  0x16   :  { %v10226_v21 = vld.sshfl [vmem:[#allocation1 + $0x38] sm:$0xff pattern:$0x73625140] }
  0x17   :  { %422 = vst [vmem:[#allocation1 + $0x20] ss:$4 sm:$0xff] %v29_v17 }
  0x1b   :  { %v10209_v13 = vld.sshfl [vmem:[#allocation1] sm:$0xff pattern:$0x73625140]  ;;  %v10211_v14 = vld.sshfl [vmem:[#allocation1 + $0x8] sm:$0xff pattern:$0x73625140] }
  0x1c   :  { %v10213_v15 = vld.sshfl [vmem:[#allocation1 + $0x10] sm:$0xff pattern:$0x73625140]  ;;  %v10215_v16 = vld.sshfl [vmem:[#allocation1 + $0x18] sm:$0xff pattern:$0x73625140] }
  0x1d   :  { %441 = vst [vmem:[#allocation1] ss:$4 sm:$0xff] %v32_v12 }
  0x1e   :  { %v10242_v28 = vld.sshfl [vmem:[#allocation1 + $0x20] sm:$0xff pattern:$0x73625140]  ;;  %v10244_v29 = vld.sshfl [vmem:[#allocation1 + $0x28] sm:$0xff pattern:$0x73625140] }
  0x1f   :  { %v10246_v30 = vld.sshfl [vmem:[#allocation1 + $0x30] sm:$0xff pattern:$0x73625140]  ;;  %v10248_v31 = vld.sshfl [vmem:[#allocation1 + $0x38] sm:$0xff pattern:$0x73625140] }
  0x20   :  { %432 = vst [vmem:[#allocation1 + $0x20] ss:$4 sm:$0xff] %v31_v27 }
  0x24   :  { %v10231_v23 = vld.sshfl [vmem:[#allocation1] sm:$0xff pattern:$0x73625140]  ;;  %v10233_v24 = vld.sshfl [vmem:[#allocation1 + $0x8] sm:$0xff pattern:$0x73625140] }
  0x25   :  { %v10235_v25 = vld.sshfl [vmem:[#allocation1 + $0x10] sm:$0xff pattern:$0x73625140]  ;;  %v10237_v26 = vld.sshfl [vmem:[#allocation1 + $0x18] sm:$0xff pattern:$0x73625140] }
  0x26   :  { %451 = vst [vmem:[#allocation1] ss:$4 sm:$0xff] %v34_v22 }
  0x27   :  { %v10264_v38 = vld.sshfl [vmem:[#allocation1 + $0x20] sm:$0xff pattern:$0x73625140]  ;;  %v10266_v39 = vld.sshfl [vmem:[#allocation1 + $0x28] sm:$0xff pattern:$0x73625140] }
  0x28   :  { %v10268_v40 = vld.sshfl [vmem:[#allocation1 + $0x30] sm:$0xff pattern:$0x73625140]  ;;  %v10270_v41 = vld.sshfl [vmem:[#allocation1 + $0x38] sm:$0xff pattern:$0x73625140] }
  0x29   :  { %442 = vst [vmem:[#allocation1 + $0x20] ss:$4 sm:$0xff] %v33_v37 }
  0x2d   :  { %v10253_v33 = vld.sshfl [vmem:[#allocation1] sm:$0xff pattern:$0x73625140]  ;;  %v10255_v34 = vld.sshfl [vmem:[#allocation1 + $0x8] sm:$0xff pattern:$0x73625140] }
  0x2e   :  { %v10257_v35 = vld.sshfl [vmem:[#allocation1 + $0x10] sm:$0xff pattern:$0x73625140]  ;;  %v10259_v36 = vld.sshfl [vmem:[#allocation1 + $0x18] sm:$0xff pattern:$0x73625140] }
  0x2f   :  { %461 = vst [vmem:[#allocation1] ss:$4 sm:$0xff] %v36_v32  ;;  %v44_v32 = vld [vmem:[%s12202_s0 + $0x90] sm:$0xff] }
  0x30   :  { %v10286_v48 = vld.sshfl [vmem:[#allocation1 + $0x20] sm:$0xff pattern:$0x73625140]  ;;  %v10288_v49 = vld.sshfl [vmem:[#allocation1 + $0x28] sm:$0xff pattern:$0x73625140] }
  0x31   :  { %v10290_v50 = vld.sshfl [vmem:[#allocation1 + $0x30] sm:$0xff pattern:$0x73625140]  ;;  %v10292_v51 = vld.sshfl [vmem:[#allocation1 + $0x38] sm:$0xff pattern:$0x73625140] }
  0x32   :  { %452 = vst [vmem:[#allocation1 + $0x20] ss:$4 sm:$0xff] %v35_v47 }
  0x36   :  { %v10275_v43 = vld.sshfl [vmem:[#allocation1] sm:$0xff pattern:$0x73625140]  ;;  %v10277_v44 = vld.sshfl [vmem:[#allocation1 + $0x8] sm:$0xff pattern:$0x73625140] }
  0x37   :  { %v10279_v45 = vld.sshfl [vmem:[#allocation1 + $0x10] sm:$0xff pattern:$0x73625140]  ;;  %v10281_v46 = vld.sshfl [vmem:[#allocation1 + $0x18] sm:$0xff pattern:$0x73625140] }
  0x38   :  { %471 = vst [vmem:[#allocation1] ss:$4 sm:$0xff] %v38_v42 }
  0x39   :  { %v10308_v58 = vld.sshfl [vmem:[#allocation1 + $0x20] sm:$0xff pattern:$0x73625140]  ;;  %v10310_v59 = vld.sshfl [vmem:[#allocation1 + $0x28] sm:$0xff pattern:$0x73625140] }
  0x3a   :  { %v10312_v60 = vld.sshfl [vmem:[#allocation1 + $0x30] sm:$0xff pattern:$0x73625140]  ;;  %v10314_v61 = vld.sshfl [vmem:[#allocation1 + $0x38] sm:$0xff pattern:$0x73625140] }
  0x3b   :  { %462 = vst [vmem:[#allocation1 + $0x20] ss:$4 sm:$0xff] %v37_v57  ;;  %v46_v57 = vld [vmem:[%s12202_s0 + $0xa0] sm:$0xff] }
  0x3f   :  { %v10297_v53 = vld.sshfl [vmem:[#allocation1] sm:$0xff pattern:$0x73625140]  ;;  %v10299_v54 = vld.sshfl [vmem:[#allocation1 + $0x8] sm:$0xff pattern:$0x73625140] }
  0x40   :  { %v10301_v55 = vld.sshfl [vmem:[#allocation1 + $0x10] sm:$0xff pattern:$0x73625140]  ;;  %v10303_v56 = vld.sshfl [vmem:[#allocation1 + $0x18] sm:$0xff pattern:$0x73625140] }
  0x41   :  { %481 = vst [vmem:[#allocation1] ss:$4 sm:$0xff] %v40_v52 }
  0x42   :  { %v10330_v12 = vld.sshfl [vmem:[#allocation1 + $0x20] sm:$0xff pattern:$0x73625140]  ;;  %v10332_v17 = vld.sshfl [vmem:[#allocation1 + $0x28] sm:$0xff pattern:$0x73625140] }
  0x43   :  { %v10334_v22 = vld.sshfl [vmem:[#allocation1 + $0x30] sm:$0xff pattern:$0x73625140]  ;;  %v10336_v27 = vld.sshfl [vmem:[#allocation1 + $0x38] sm:$0xff pattern:$0x73625140] }
  0x44   :  { %472 = vst [vmem:[#allocation1 + $0x20] ss:$4 sm:$0xff] %v39_v11 }
  0x48   :  { %v10319_v63 = vld.sshfl [vmem:[#allocation1] sm:$0xff pattern:$0x73625140]  ;;  %v10321_v0 = vld.sshfl [vmem:[#allocation1 + $0x8] sm:$0xff pattern:$0x73625140] }
  0x49   :  { %12206 = vst [vmem:[#allocation5_spill] sm:$0xff] %v10319_v63  ;;  %v10323_v1 = vld.sshfl [vmem:[#allocation1 + $0x10] sm:$0xff pattern:$0x73625140] }
  0x4a   :  { %12207 = vst [vmem:[#allocation6_spill] sm:$0xff] %v10321_v0  ;;  %v10325_v6 = vld.sshfl [vmem:[#allocation1 + $0x18] sm:$0xff pattern:$0x73625140] }
  0x4b   :  { %12208 = vst [vmem:[#allocation7_spill] sm:$0xff] %v10323_v1  ;;  %v10355_v0 = vld.sshfl [vmem:[#allocation1 + $0x20] sm:$0xff pattern:$0x73625140] }
  0x4c   :  { %12209 = vst [vmem:[#allocation8_spill] sm:$0xff] %v10325_v6  ;;  %v10357_v11 = vld.sshfl [vmem:[#allocation1 + $0x28] sm:$0xff pattern:$0x73625140]  ;;  %v48_v6 = vld [vmem:[%s12202_s0 + $0xb0] sm:$0xff] }
  0x4d   :  { %491 = vst [vmem:[#allocation1] ss:$4 sm:$0xff] %v42_v62  ;;  %v41_v62 = vld [vmem:[%s12202_s0 + $0x78] sm:$0xff] }
  0x4e   :  { %12214 = vst [vmem:[#allocation13_spill] sm:$0xff] %v10355_v0 }
  0x4f   :  { %12215 = vst [vmem:[#allocation14_spill] sm:$0xff] %v10357_v11 }
  0x54   :  { %v10341_v37 = vld.sshfl [vmem:[#allocation1] sm:$0xff pattern:$0x73625140]  ;;  %v10343_v42 = vld.sshfl [vmem:[#allocation1 + $0x8] sm:$0xff pattern:$0x73625140] }
  0x55   :  { %12210 = vst [vmem:[#allocation9_spill] sm:$0xff] %v10341_v37  ;;  %v10345_v47 = vld.sshfl [vmem:[#allocation1 + $0x10] sm:$0xff pattern:$0x73625140] }
  0x56   :  { %12211 = vst [vmem:[#allocation10_spill] sm:$0xff] %v10343_v42  ;;  %v10347_v52 = vld.sshfl [vmem:[#allocation1 + $0x18] sm:$0xff pattern:$0x73625140] }
  0x57   :  { %12212 = vst [vmem:[#allocation11_spill] sm:$0xff] %v10345_v47  ;;  %v10359_v37 = vld.sshfl [vmem:[#allocation1 + $0x30] sm:$0xff pattern:$0x73625140] }
  0x58   :  { %12213 = vst [vmem:[#allocation12_spill] sm:$0xff] %v10347_v52  ;;  %v10361_v42 = vld.sshfl [vmem:[#allocation1 + $0x38] sm:$0xff pattern:$0x73625140] }
  0x59   :  { %501 = vst [vmem:[#allocation1] ss:$4 sm:$0xff] %v44_v32 }
  0x5a   :  { %12216 = vst [vmem:[#allocation15_spill] sm:$0xff] %v10361_v42 }
  0x5b   :  { %482 = vst [vmem:[#allocation1 + $0x20] ss:$4 sm:$0xff] %v41_v62 }
  0x60   :  { %v10363_v47 = vld.sshfl [vmem:[#allocation1] sm:$0xff pattern:$0x73625140]  ;;  %v10365_v52 = vld.sshfl [vmem:[#allocation1 + $0x8] sm:$0xff pattern:$0x73625140] }
  0x61   :  { %12217 = vst [vmem:[#allocation16_spill] sm:$0xff] %v10363_v47  ;;  %v10367_v32 = vld.sshfl [vmem:[#allocation1 + $0x10] sm:$0xff pattern:$0x73625140] }
  0x62   :  { %12218 = vst [vmem:[#allocation17_spill] sm:$0xff] %v10365_v52  ;;  %v10369_v63 = vld.sshfl [vmem:[#allocation1 + $0x18] sm:$0xff pattern:$0x73625140]  ;;  %v43_v52 = vld [vmem:[%s12202_s0 + $0x88] sm:$0xff] }
  0x63   :  { %12219 = vst [vmem:[#allocation18_spill] sm:$0xff] %v10367_v32  ;;  %v10385_v47 = vld.sshfl [vmem:[#allocation1 + $0x20] sm:$0xff pattern:$0x73625140]  ;;  %v45_v32 = vld [vmem:[%s12202_s0 + $0x98] sm:$0xff] }
  0x64   :  { %12220 = vst [vmem:[#allocation19_spill] sm:$0xff] %v10369_v63  ;;  %v10389_v62 = vld.sshfl [vmem:[#allocation1 + $0x30] sm:$0xff pattern:$0x73625140] }
  0x65   :  { %511 = vst [vmem:[#allocation1] ss:$4 sm:$0xff] %v46_v57  ;;  %v10387_v57 = vld.sshfl [vmem:[#allocation1 + $0x28] sm:$0xff pattern:$0x73625140] }
  0x66   :  { %12225 = vst [vmem:[#allocation24_spill] sm:$0xff] %v10385_v47  ;;  %v10391_v63 = vld.sshfl [vmem:[#allocation1 + $0x38] sm:$0xff pattern:$0x73625140] }
  0x67   :  { %12226 = vst [vmem:[#allocation25_spill] sm:$0xff] %v10387_v57 }
  0x68   :  { %12227 = vst [vmem:[#allocation26_spill] sm:$0xff] %v10389_v62 }
  0x69   :  { %12228 = vst [vmem:[#allocation27_spill] sm:$0xff] %v10391_v63 }
  0x6a   :  { %492 = vst [vmem:[#allocation1 + $0x20] ss:$4 sm:$0xff] %v43_v52 }
  0x6c   :  { %v10374_v1 = vld.sshfl [vmem:[#allocation1] sm:$0xff pattern:$0x73625140]  ;;  %v10376_v11 = vld.sshfl [vmem:[#allocation1 + $0x8] sm:$0xff pattern:$0x73625140] }
  0x6d   :  { %12221 = vst [vmem:[#allocation20_spill] sm:$0xff] %v10374_v1  ;;  %v10378_v0 = vld.sshfl [vmem:[#allocation1 + $0x10] sm:$0xff pattern:$0x73625140] }
  0x6e   :  { %12222 = vst [vmem:[#allocation21_spill] sm:$0xff] %v10376_v11  ;;  %v10380_v42 = vld.sshfl [vmem:[#allocation1 + $0x18] sm:$0xff pattern:$0x73625140]  ;;  %v50_v11 = vld [vmem:[%s12202_s0 + $0xc0] sm:$0xff] }
  0x6f   :  { %12223 = vst [vmem:[#allocation22_spill] sm:$0xff] %v10378_v0 }
  0x70   :  { %12224 = vst [vmem:[#allocation23_spill] sm:$0xff] %v10380_v42 }
  0x71   :  { %521 = vst [vmem:[#allocation1] ss:$4 sm:$0xff] %v48_v6  ;;  %v10407_v57 = vld.sshfl [vmem:[#allocation1 + $0x20] sm:$0xff pattern:$0x73625140] }
  0x72   :  { %12233 = vst [vmem:[#allocation32_spill] sm:$0xff] %v10407_v57  ;;  %v10409_v52 = vld.sshfl [vmem:[#allocation1 + $0x28] sm:$0xff pattern:$0x73625140] }
  0x73   :  { %12234 = vst [vmem:[#allocation33_spill] sm:$0xff] %v10409_v52  ;;  %v10411_v47 = vld.sshfl [vmem:[#allocation1 + $0x30] sm:$0xff pattern:$0x73625140]  ;;  %v47_v52 = vld [vmem:[%s12202_s0 + $0xa8] sm:$0xff] }
  0x74   :  { %12235 = vst [vmem:[#allocation34_spill] sm:$0xff] %v10411_v47  ;;  %v10413_v63 = vld.sshfl [vmem:[#allocation1 + $0x38] sm:$0xff pattern:$0x73625140] }
  0x75   :  { %12236 = vst [vmem:[#allocation35_spill] sm:$0xff] %v10413_v63 }
  0x76   :  { %502 = vst [vmem:[#allocation1 + $0x20] ss:$4 sm:$0xff] %v45_v32 }
  0x78   :  { %v10396_v1 = vld.sshfl [vmem:[#allocation1] sm:$0xff pattern:$0x73625140]  ;;  %v10398_v6 = vld.sshfl [vmem:[#allocation1 + $0x8] sm:$0xff pattern:$0x73625140] }
  0x79   :  { %12229 = vst [vmem:[#allocation28_spill] sm:$0xff] %v10396_v1  ;;  %v10400_v42 = vld.sshfl [vmem:[#allocation1 + $0x10] sm:$0xff pattern:$0x73625140] }
  0x7a   :  { %12230 = vst [vmem:[#allocation29_spill] sm:$0xff] %v10398_v6  ;;  %v10402_v0 = vld.sshfl [vmem:[#allocation1 + $0x18] sm:$0xff pattern:$0x73625140]  ;;  %v52_v6 = vld [vmem:[%s12202_s0 + $0xd0] sm:$0xff] }
  0x7b   :  { %12231 = vst [vmem:[#allocation30_spill] sm:$0xff] %v10400_v42 }
  0x7c   :  { %12232 = vst [vmem:[#allocation31_spill] sm:$0xff] %v10402_v0 }
  0x7d   :  { %531 = vst [vmem:[#allocation1] ss:$4 sm:$0xff] %v50_v11  ;;  %v10429_v57 = vld.sshfl [vmem:[#allocation1 + $0x20] sm:$0xff pattern:$0x73625140] }
  0x7e   :  { %12241 = vst [vmem:[#allocation40_spill] sm:$0xff] %v10429_v57  ;;  %v10431_v32 = vld.sshfl [vmem:[#allocation1 + $0x28] sm:$0xff pattern:$0x73625140] }
  0x7f   :  { %12242 = vst [vmem:[#allocation41_spill] sm:$0xff] %v10431_v32  ;;  %v10433_v63 = vld.sshfl [vmem:[#allocation1 + $0x30] sm:$0xff pattern:$0x73625140]  ;;  %v49_v32 = vld [vmem:[%s12202_s0 + $0xb8] sm:$0xff] }
  0x80   :  { %12243 = vst [vmem:[#allocation42_spill] sm:$0xff] %v10433_v63  ;;  %v10435_v47 = vld.sshfl [vmem:[#allocation1 + $0x38] sm:$0xff pattern:$0x73625140] }
  0x81   :  { %12244 = vst [vmem:[#allocation43_spill] sm:$0xff] %v10435_v47 }
  0x82   :  { %512 = vst [vmem:[#allocation1 + $0x20] ss:$4 sm:$0xff] %v47_v52 }
  0x84   :  { %v10418_v1 = vld.sshfl [vmem:[#allocation1] sm:$0xff pattern:$0x73625140]  ;;  %v10420_v11 = vld.sshfl [vmem:[#allocation1 + $0x8] sm:$0xff pattern:$0x73625140] }
  0x85   :  { %12237 = vst [vmem:[#allocation36_spill] sm:$0xff] %v10418_v1  ;;  %v10422_v0 = vld.sshfl [vmem:[#allocation1 + $0x10] sm:$0xff pattern:$0x73625140] }
  0x86   :  { %12238 = vst [vmem:[#allocation37_spill] sm:$0xff] %v10420_v11  ;;  %v10424_v42 = vld.sshfl [vmem:[#allocation1 + $0x18] sm:$0xff pattern:$0x73625140]  ;;  %v54_v11 = vld [vmem:[%s12202_s0 + $0xe0] sm:$0xff] }
  0x87   :  { %12239 = vst [vmem:[#allocation38_spill] sm:$0xff] %v10422_v0 }
  0x88   :  { %12240 = vst [vmem:[#allocation39_spill] sm:$0xff] %v10424_v42 }
  0x89   :  { %541 = vst [vmem:[#allocation1] ss:$4 sm:$0xff] %v52_v6  ;;  %v10451_v57 = vld.sshfl [vmem:[#allocation1 + $0x20] sm:$0xff pattern:$0x73625140] }
  0x8a   :  { %12249 = vst [vmem:[#allocation48_spill] sm:$0xff] %v10451_v57  ;;  %v10453_v52 = vld.sshfl [vmem:[#allocation1 + $0x28] sm:$0xff pattern:$0x73625140] }
  0x8b   :  { %12250 = vst [vmem:[#allocation49_spill] sm:$0xff] %v10453_v52  ;;  %v10455_v47 = vld.sshfl [vmem:[#allocation1 + $0x30] sm:$0xff pattern:$0x73625140]  ;;  %v51_v52 = vld [vmem:[%s12202_s0 + $0xc8] sm:$0xff] }
  0x8c   :  { %12251 = vst [vmem:[#allocation50_spill] sm:$0xff] %v10455_v47  ;;  %v10457_v63 = vld.sshfl [vmem:[#allocation1 + $0x38] sm:$0xff pattern:$0x73625140] }
  0x8d   :  { %12252 = vst [vmem:[#allocation51_spill] sm:$0xff] %v10457_v63 }
  0x8e   :  { %522 = vst [vmem:[#allocation1 + $0x20] ss:$4 sm:$0xff] %v49_v32 }
  0x90   :  { %v10440_v1 = vld.sshfl [vmem:[#allocation1] sm:$0xff pattern:$0x73625140]  ;;  %v10442_v6 = vld.sshfl [vmem:[#allocation1 + $0x8] sm:$0xff pattern:$0x73625140] }
  0x91   :  { %12245 = vst [vmem:[#allocation44_spill] sm:$0xff] %v10440_v1  ;;  %v10444_v42 = vld.sshfl [vmem:[#allocation1 + $0x10] sm:$0xff pattern:$0x73625140] }
  0x92   :  { %12246 = vst [vmem:[#allocation45_spill] sm:$0xff] %v10442_v6  ;;  %v10446_v0 = vld.sshfl [vmem:[#allocation1 + $0x18] sm:$0xff pattern:$0x73625140]  ;;  %v56_v6 = vld [vmem:[%s12202_s0 + $0xf0] sm:$0xff] }
  0x93   :  { %12247 = vst [vmem:[#allocation46_spill] sm:$0xff] %v10444_v42 }
  0x94   :  { %12248 = vst [vmem:[#allocation47_spill] sm:$0xff] %v10446_v0 }
  0x95   :  { %551 = vst [vmem:[#allocation1] ss:$4 sm:$0xff] %v54_v11  ;;  %v10473_v57 = vld.sshfl [vmem:[#allocation1 + $0x20] sm:$0xff pattern:$0x73625140] }
  0x96   :  { %12257 = vst [vmem:[#allocation56_spill] sm:$0xff] %v10473_v57  ;;  %v10475_v32 = vld.sshfl [vmem:[#allocation1 + $0x28] sm:$0xff pattern:$0x73625140] }
  0x97   :  { %12258 = vst [vmem:[#allocation57_spill] sm:$0xff] %v10475_v32  ;;  %v10477_v63 = vld.sshfl [vmem:[#allocation1 + $0x30] sm:$0xff pattern:$0x73625140]  ;;  %v53_v32 = vld [vmem:[%s12202_s0 + $0xd8] sm:$0xff] }
  0x98   :  { %12259 = vst [vmem:[#allocation58_spill] sm:$0xff] %v10477_v63  ;;  %v10479_v47 = vld.sshfl [vmem:[#allocation1 + $0x38] sm:$0xff pattern:$0x73625140] }
  0x99   :  { %12260 = vst [vmem:[#allocation59_spill] sm:$0xff] %v10479_v47 }
  0x9a   :  { %532 = vst [vmem:[#allocation1 + $0x20] ss:$4 sm:$0xff] %v51_v52 }
  0x9c   :  { %v10462_v1 = vld.sshfl [vmem:[#allocation1] sm:$0xff pattern:$0x73625140]  ;;  %v10464_v11 = vld.sshfl [vmem:[#allocation1 + $0x8] sm:$0xff pattern:$0x73625140] }
  0x9d   :  { %12253 = vst [vmem:[#allocation52_spill] sm:$0xff] %v10462_v1  ;;  %v10466_v0 = vld.sshfl [vmem:[#allocation1 + $0x10] sm:$0xff pattern:$0x73625140] }
  0x9e   :  { %12254 = vst [vmem:[#allocation53_spill] sm:$0xff] %v10464_v11  ;;  %v10468_v42 = vld.sshfl [vmem:[#allocation1 + $0x18] sm:$0xff pattern:$0x73625140]  ;;  %v58_v11 = vld [vmem:[%s12202_s0 + $0x100] sm:$0xff] }
  0x9f   :  { %12255 = vst [vmem:[#allocation54_spill] sm:$0xff] %v10466_v0 }
  0xa0   :  { %12256 = vst [vmem:[#allocation55_spill] sm:$0xff] %v10468_v42 }
  0xa1   :  { %561 = vst [vmem:[#allocation1] ss:$4 sm:$0xff] %v56_v6  ;;  %v10495_v57 = vld.sshfl [vmem:[#allocation1 + $0x20] sm:$0xff pattern:$0x73625140] }
  0xa2   :  { %12265 = vst [vmem:[#allocation64_spill] sm:$0xff] %v10495_v57  ;;  %v10497_v52 = vld.sshfl [vmem:[#allocation1 + $0x28] sm:$0xff pattern:$0x73625140] }
  0xa3   :  { %12266 = vst [vmem:[#allocation65_spill] sm:$0xff] %v10497_v52  ;;  %v10499_v47 = vld.sshfl [vmem:[#allocation1 + $0x30] sm:$0xff pattern:$0x73625140]  ;;  %v55_v52 = vld [vmem:[%s12202_s0 + $0xe8] sm:$0xff] }
  0xa4   :  { %12267 = vst [vmem:[#allocation66_spill] sm:$0xff] %v10499_v47  ;;  %v10501_v63 = vld.sshfl [vmem:[#allocation1 + $0x38] sm:$0xff pattern:$0x73625140] }
  0xa5   :  { %12268 = vst [vmem:[#allocation67_spill] sm:$0xff] %v10501_v63 }
  0xa6   :  { %542 = vst [vmem:[#allocation1 + $0x20] ss:$4 sm:$0xff] %v53_v32 }
  0xa8   :  { %v10484_v1 = vld.sshfl [vmem:[#allocation1] sm:$0xff pattern:$0x73625140]  ;;  %v10486_v6 = vld.sshfl [vmem:[#allocation1 + $0x8] sm:$0xff pattern:$0x73625140] }
  0xa9   :  { %12261 = vst [vmem:[#allocation60_spill] sm:$0xff] %v10484_v1  ;;  %v10488_v42 = vld.sshfl [vmem:[#allocation1 + $0x10] sm:$0xff pattern:$0x73625140] }
  0xaa   :  { %12262 = vst [vmem:[#allocation61_spill] sm:$0xff] %v10486_v6  ;;  %v10490_v0 = vld.sshfl [vmem:[#allocation1 + $0x18] sm:$0xff pattern:$0x73625140]  ;;  %v60_v6 = vld [vmem:[%s12202_s0 + $0x110] sm:$0xff] }
  0xab   :  { %12263 = vst [vmem:[#allocation62_spill] sm:$0xff] %v10488_v42 }
  0xac   :  { %12264 = vst [vmem:[#allocation63_spill] sm:$0xff] %v10490_v0 }
  0xad   :  { %571 = vst [vmem:[#allocation1] ss:$4 sm:$0xff] %v58_v11  ;;  %v10517_v57 = vld.sshfl [vmem:[#allocation1 + $0x20] sm:$0xff pattern:$0x73625140] }
  0xae   :  { %12273 = vst [vmem:[#allocation72_spill] sm:$0xff] %v10517_v57  ;;  %v10519_v32 = vld.sshfl [vmem:[#allocation1 + $0x28] sm:$0xff pattern:$0x73625140] }
  0xaf   :  { %12274 = vst [vmem:[#allocation73_spill] sm:$0xff] %v10519_v32  ;;  %v10521_v63 = vld.sshfl [vmem:[#allocation1 + $0x30] sm:$0xff pattern:$0x73625140]  ;;  %v57_v32 = vld [vmem:[%s12202_s0 + $0xf8] sm:$0xff] }
  0xb0   :  { %12275 = vst [vmem:[#allocation74_spill] sm:$0xff] %v10521_v63  ;;  %v10523_v47 = vld.sshfl [vmem:[#allocation1 + $0x38] sm:$0xff pattern:$0x73625140] }
  0xb1   :  { %12276 = vst [vmem:[#allocation75_spill] sm:$0xff] %v10523_v47 }
  0xb2   :  { %552 = vst [vmem:[#allocation1 + $0x20] ss:$4 sm:$0xff] %v55_v52 }
  0xb4   :  { %v10506_v1 = vld.sshfl [vmem:[#allocation1] sm:$0xff pattern:$0x73625140]  ;;  %v10508_v11 = vld.sshfl [vmem:[#allocation1 + $0x8] sm:$0xff pattern:$0x73625140] }
  0xb5   :  { %12269 = vst [vmem:[#allocation68_spill] sm:$0xff] %v10506_v1  ;;  %v10510_v0 = vld.sshfl [vmem:[#allocation1 + $0x10] sm:$0xff pattern:$0x73625140] }
  0xb6   :  { %12270 = vst [vmem:[#allocation69_spill] sm:$0xff] %v10508_v11  ;;  %v10512_v42 = vld.sshfl [vmem:[#allocation1 + $0x18] sm:$0xff pattern:$0x73625140]  ;;  %v62_v11 = vld [vmem:[%s12202_s0 + $0x120] sm:$0xff] }
  0xb7   :  { %12271 = vst [vmem:[#allocation70_spill] sm:$0xff] %v10510_v0 }
  0xb8   :  { %12272 = vst [vmem:[#allocation71_spill] sm:$0xff] %v10512_v42 }
  0xb9   :  { %581 = vst [vmem:[#allocation1] ss:$4 sm:$0xff] %v60_v6  ;;  %v10539_v57 = vld.sshfl [vmem:[#allocation1 + $0x20] sm:$0xff pattern:$0x73625140] }
  0xba   :  { %12281 = vst [vmem:[#allocation80_spill] sm:$0xff] %v10539_v57  ;;  %v10541_v52 = vld.sshfl [vmem:[#allocation1 + $0x28] sm:$0xff pattern:$0x73625140] }
  0xbb   :  { %12282 = vst [vmem:[#allocation81_spill] sm:$0xff] %v10541_v52  ;;  %v10543_v47 = vld.sshfl [vmem:[#allocation1 + $0x30] sm:$0xff pattern:$0x73625140]  ;;  %v59_v52 = vld [vmem:[%s12202_s0 + $0x108] sm:$0xff] }
  0xbc   :  { %12283 = vst [vmem:[#allocation82_spill] sm:$0xff] %v10543_v47  ;;  %v10545_v63 = vld.sshfl [vmem:[#allocation1 + $0x38] sm:$0xff pattern:$0x73625140] }
  0xbd   :  { %12284 = vst [vmem:[#allocation83_spill] sm:$0xff] %v10545_v63 }
  0xbe   :  { %562 = vst [vmem:[#allocation1 + $0x20] ss:$4 sm:$0xff] %v57_v32 }
  0xc0   :  { %v10528_v1 = vld.sshfl [vmem:[#allocation1] sm:$0xff pattern:$0x73625140]  ;;  %v10530_v6 = vld.sshfl [vmem:[#allocation1 + $0x8] sm:$0xff pattern:$0x73625140] }
  0xc1   :  { %12277 = vst [vmem:[#allocation76_spill] sm:$0xff] %v10528_v1  ;;  %v10532_v42 = vld.sshfl [vmem:[#allocation1 + $0x10] sm:$0xff pattern:$0x73625140] }
  0xc2   :  { %12278 = vst [vmem:[#allocation77_spill] sm:$0xff] %v10530_v6  ;;  %v10534_v0 = vld.sshfl [vmem:[#allocation1 + $0x18] sm:$0xff pattern:$0x73625140]  ;;  %v64_v6 = vld [vmem:[%s12202_s0 + $0x130] sm:$0xff] }
  0xc3   :  { %12279 = vst [vmem:[#allocation78_spill] sm:$0xff] %v10532_v42 }
  0xc4   :  { %12280 = vst [vmem:[#allocation79_spill] sm:$0xff] %v10534_v0 }
  0xc5   :  { %591 = vst [vmem:[#allocation1] ss:$4 sm:$0xff] %v62_v11  ;;  %v10561_v57 = vld.sshfl [vmem:[#allocation1 + $0x20] sm:$0xff pattern:$0x73625140] }
  0xc6   :  { %12289 = vst [vmem:[#allocation88_spill] sm:$0xff] %v10561_v57  ;;  %v10563_v32 = vld.sshfl [vmem:[#allocation1 + $0x28] sm:$0xff pattern:$0x73625140] }
  0xc7   :  { %12290 = vst [vmem:[#allocation89_spill] sm:$0xff] %v10563_v32  ;;  %v10565_v63 = vld.sshfl [vmem:[#allocation1 + $0x30] sm:$0xff pattern:$0x73625140]  ;;  %v61_v32 = vld [vmem:[%s12202_s0 + $0x118] sm:$0xff] }
  0xc8   :  { %12291 = vst [vmem:[#allocation90_spill] sm:$0xff] %v10565_v63  ;;  %v10567_v47 = vld.sshfl [vmem:[#allocation1 + $0x38] sm:$0xff pattern:$0x73625140] }
  0xc9   :  { %12292 = vst [vmem:[#allocation91_spill] sm:$0xff] %v10567_v47 }
  0xca   :  { %572 = vst [vmem:[#allocation1 + $0x20] ss:$4 sm:$0xff] %v59_v52 }
  0xcc   :  { %v10550_v1 = vld.sshfl [vmem:[#allocation1] sm:$0xff pattern:$0x73625140]  ;;  %v10552_v11 = vld.sshfl [vmem:[#allocation1 + $0x8] sm:$0xff pattern:$0x73625140] }
  0xcd   :  { %12285 = vst [vmem:[#allocation84_spill] sm:$0xff] %v10550_v1  ;;  %v10554_v0 = vld.sshfl [vmem:[#allocation1 + $0x10] sm:$0xff pattern:$0x73625140] }
  0xce   :  { %12286 = vst [vmem:[#allocation85_spill] sm:$0xff] %v10552_v11  ;;  %v10556_v42 = vld.sshfl [vmem:[#allocation1 + $0x18] sm:$0xff pattern:$0x73625140]  ;;  %v66_v11 = vld [vmem:[%s12202_s0 + $0x140] sm:$0xff] }
  0xcf   :  { %12287 = vst [vmem:[#allocation86_spill] sm:$0xff] %v10554_v0 }
  0xd0   :  { %12288 = vst [vmem:[#allocation87_spill] sm:$0xff] %v10556_v42 }
  0xd1   :  { %601 = vst [vmem:[#allocation1] ss:$4 sm:$0xff] %v64_v6  ;;  %v10583_v57 = vld.sshfl [vmem:[#allocation1 + $0x20] sm:$0xff pattern:$0x73625140] }
  0xd2   :  { %12297 = vst [vmem:[#allocation96_spill] sm:$0xff] %v10583_v57  ;;  %v10585_v52 = vld.sshfl [vmem:[#allocation1 + $0x28] sm:$0xff pattern:$0x73625140] }
  0xd3   :  { %12298 = vst [vmem:[#allocation97_spill] sm:$0xff] %v10585_v52  ;;  %v10587_v47 = vld.sshfl [vmem:[#allocation1 + $0x30] sm:$0xff pattern:$0x73625140]  ;;  %v63_v52 = vld [vmem:[%s12202_s0 + $0x128] sm:$0xff] }
  0xd4   :  { %12299 = vst [vmem:[#allocation98_spill] sm:$0xff] %v10587_v47  ;;  %v10589_v63 = vld.sshfl [vmem:[#allocation1 + $0x38] sm:$0xff pattern:$0x73625140] }
  0xd5   :  { %12300 = vst [vmem:[#allocation99_spill] sm:$0xff] %v10589_v63 }
  0xd6   :  { %582 = vst [vmem:[#allocation1 + $0x20] ss:$4 sm:$0xff] %v61_v32 }
  0xd8   :  { %v10572_v1 = vld.sshfl [vmem:[#allocation1] sm:$0xff pattern:$0x73625140]  ;;  %v10574_v6 = vld.sshfl [vmem:[#allocation1 + $0x8] sm:$0xff pattern:$0x73625140] }
  0xd9   :  { %12293 = vst [vmem:[#allocation92_spill] sm:$0xff] %v10572_v1  ;;  %v10576_v42 = vld.sshfl [vmem:[#allocation1 + $0x10] sm:$0xff pattern:$0x73625140] }
  0xda   :  { %12294 = vst [vmem:[#allocation93_spill] sm:$0xff] %v10574_v6  ;;  %v10578_v0 = vld.sshfl [vmem:[#allocation1 + $0x18] sm:$0xff pattern:$0x73625140]  ;;  %v68_v6 = vld [vmem:[%s12202_s0 + $0x150] sm:$0xff] }
  0xdb   :  { %12295 = vst [vmem:[#allocation94_spill] sm:$0xff] %v10576_v42 }
  0xdc   :  { %12296 = vst [vmem:[#allocation95_spill] sm:$0xff] %v10578_v0 }
  0xdd   :  { %611 = vst [vmem:[#allocation1] ss:$4 sm:$0xff] %v66_v11  ;;  %v10605_v57 = vld.sshfl [vmem:[#allocation1 + $0x20] sm:$0xff pattern:$0x73625140] }
  0xde   :  { %12305 = vst [vmem:[#allocation104_spill] sm:$0xff] %v10605_v57  ;;  %v10607_v32 = vld.sshfl [vmem:[#allocation1 + $0x28] sm:$0xff pattern:$0x73625140] }
  0xdf   :  { %12306 = vst [vmem:[#allocation105_spill] sm:$0xff] %v10607_v32  ;;  %v10609_v63 = vld.sshfl [vmem:[#allocation1 + $0x30] sm:$0xff pattern:$0x73625140]  ;;  %v65_v32 = vld [vmem:[%s12202_s0 + $0x138] sm:$0xff] }
  0xe0   :  { %12307 = vst [vmem:[#allocation106_spill] sm:$0xff] %v10609_v63  ;;  %v10611_v47 = vld.sshfl [vmem:[#allocation1 + $0x38] sm:$0xff pattern:$0x73625140] }
  0xe1   :  { %12308 = vst [vmem:[#allocation107_spill] sm:$0xff] %v10611_v47 }
  0xe2   :  { %592 = vst [vmem:[#allocation1 + $0x20] ss:$4 sm:$0xff] %v63_v52 }
  0xe4   :  { %v10594_v1 = vld.sshfl [vmem:[#allocation1] sm:$0xff pattern:$0x73625140]  ;;  %v10596_v11 = vld.sshfl [vmem:[#allocation1 + $0x8] sm:$0xff pattern:$0x73625140] }
  0xe5   :  { %12301 = vst [vmem:[#allocation100_spill] sm:$0xff] %v10594_v1  ;;  %v10598_v0 = vld.sshfl [vmem:[#allocation1 + $0x10] sm:$0xff pattern:$0x73625140] }
  0xe6   :  { %12302 = vst [vmem:[#allocation101_spill] sm:$0xff] %v10596_v11  ;;  %v10600_v42 = vld.sshfl [vmem:[#allocation1 + $0x18] sm:$0xff pattern:$0x73625140]  ;;  %v70_v11 = vld [vmem:[%s12202_s0 + $0x160] sm:$0xff] }
  0xe7   :  { %12303 = vst [vmem:[#allocation102_spill] sm:$0xff] %v10598_v0 }
  0xe8   :  { %12304 = vst [vmem:[#allocation103_spill] sm:$0xff] %v10600_v42 }
  0xe9   :  { %621 = vst [vmem:[#allocation1] ss:$4 sm:$0xff] %v68_v6  ;;  %v10627_v57 = vld.sshfl [vmem:[#allocation1 + $0x20] sm:$0xff pattern:$0x73625140] }
  0xea   :  { %12313 = vst [vmem:[#allocation112_spill] sm:$0xff] %v10627_v57  ;;  %v10629_v52 = vld.sshfl [vmem:[#allocation1 + $0x28] sm:$0xff pattern:$0x73625140] }
  0xeb   :  { %12314 = vst [vmem:[#allocation113_spill] sm:$0xff] %v10629_v52  ;;  %v10631_v47 = vld.sshfl [vmem:[#allocation1 + $0x30] sm:$0xff pattern:$0x73625140]  ;;  %v67_v52 = vld [vmem:[%s12202_s0 + $0x148] sm:$0xff] }
  0xec   :  { %12315 = vst [vmem:[#allocation114_spill] sm:$0xff] %v10631_v47  ;;  %v10633_v63 = vld.sshfl [vmem:[#allocation1 + $0x38] sm:$0xff pattern:$0x73625140] }
  0xed   :  { %12316 = vst [vmem:[#allocation115_spill] sm:$0xff] %v10633_v63 }
  0xee   :  { %602 = vst [vmem:[#allocation1 + $0x20] ss:$4 sm:$0xff] %v65_v32 }
  0xf0   :  { %v10616_v1 = vld.sshfl [vmem:[#allocation1] sm:$0xff pattern:$0x73625140]  ;;  %v10618_v6 = vld.sshfl [vmem:[#allocation1 + $0x8] sm:$0xff pattern:$0x73625140] }
  0xf1   :  { %12309 = vst [vmem:[#allocation108_spill] sm:$0xff] %v10616_v1  ;;  %v10620_v42 = vld.sshfl [vmem:[#allocation1 + $0x10] sm:$0xff pattern:$0x73625140] }
  0xf2   :  { %12310 = vst [vmem:[#allocation109_spill] sm:$0xff] %v10618_v6  ;;  %v10622_v0 = vld.sshfl [vmem:[#allocation1 + $0x18] sm:$0xff pattern:$0x73625140]  ;;  %v72_v6 = vld [vmem:[%s12202_s0 + $0x170] sm:$0xff] }
  0xf3   :  { %12311 = vst [vmem:[#allocation110_spill] sm:$0xff] %v10620_v42 }
  0xf4   :  { %12312 = vst [vmem:[#allocation111_spill] sm:$0xff] %v10622_v0 }
  0xf5   :  { %631 = vst [vmem:[#allocation1] ss:$4 sm:$0xff] %v70_v11  ;;  %v10649_v57 = vld.sshfl [vmem:[#allocation1 + $0x20] sm:$0xff pattern:$0x73625140] }
  0xf6   :  { %12321 = vst [vmem:[#allocation120_spill] sm:$0xff] %v10649_v57  ;;  %v10651_v32 = vld.sshfl [vmem:[#allocation1 + $0x28] sm:$0xff pattern:$0x73625140] }
  0xf7   :  { %12322 = vst [vmem:[#allocation121_spill] sm:$0xff] %v10651_v32  ;;  %v10653_v63 = vld.sshfl [vmem:[#allocation1 + $0x30] sm:$0xff pattern:$0x73625140]  ;;  %v69_v32 = vld [vmem:[%s12202_s0 + $0x158] sm:$0xff] }
  0xf8   :  { %12323 = vst [vmem:[#allocation122_spill] sm:$0xff] %v10653_v63  ;;  %v10655_v47 = vld.sshfl [vmem:[#allocation1 + $0x38] sm:$0xff pattern:$0x73625140] }
  0xf9   :  { %12324 = vst [vmem:[#allocation123_spill] sm:$0xff] %v10655_v47 }
  0xfa   :  { %612 = vst [vmem:[#allocation1 + $0x20] ss:$4 sm:$0xff] %v67_v52 }
  0xfc   :  { %v10638_v1 = vld.sshfl [vmem:[#allocation1] sm:$0xff pattern:$0x73625140]  ;;  %v10640_v11 = vld.sshfl [vmem:[#allocation1 + $0x8] sm:$0xff pattern:$0x73625140] }
  0xfd   :  { %12317 = vst [vmem:[#allocation116_spill] sm:$0xff] %v10638_v1  ;;  %v10642_v0 = vld.sshfl [vmem:[#allocation1 + $0x10] sm:$0xff pattern:$0x73625140] }
  0xfe   :  { %12318 = vst [vmem:[#allocation117_spill] sm:$0xff] %v10640_v11  ;;  %v10644_v42 = vld.sshfl [vmem:[#allocation1 + $0x18] sm:$0xff pattern:$0x73625140]  ;;  %v74_v11 = vld [vmem:[%s12202_s0 + $0x180] sm:$0xff] }
  0xff   :  { %12319 = vst [vmem:[#allocation118_spill] sm:$0xff] %v10642_v0 }
 0x100   :  { %12320 = vst [vmem:[#allocation119_spill] sm:$0xff] %v10644_v42 }
 0x101   :  { %641 = vst [vmem:[#allocation1] ss:$4 sm:$0xff] %v72_v6  ;;  %v10671_v57 = vld.sshfl [vmem:[#allocation1 + $0x20] sm:$0xff pattern:$0x73625140] }
 0x102   :  { %12329 = vst [vmem:[#allocation128_spill] sm:$0xff] %v10671_v57  ;;  %v10673_v52 = vld.sshfl [vmem:[#allocation1 + $0x28] sm:$0xff pattern:$0x73625140] }
 0x103   :  { %12330 = vst [vmem:[#allocation129_spill] sm:$0xff] %v10673_v52  ;;  %v10675_v47 = vld.sshfl [vmem:[#allocation1 + $0x30] sm:$0xff pattern:$0x73625140]  ;;  %v71_v52 = vld [vmem:[%s12202_s0 + $0x168] sm:$0xff] }
 0x104   :  { %12331 = vst [vmem:[#allocation130_spill] sm:$0xff] %v10675_v47  ;;  %v10677_v63 = vld.sshfl [vmem:[#allocation1 + $0x38] sm:$0xff pattern:$0x73625140] }
 0x105   :  { %12332 = vst [vmem:[#allocation131_spill] sm:$0xff] %v10677_v63 }
 0x106   :  { %622 = vst [vmem:[#allocation1 + $0x20] ss:$4 sm:$0xff] %v69_v32 }
 0x108   :  { %v10660_v1 = vld.sshfl [vmem:[#allocation1] sm:$0xff pattern:$0x73625140]  ;;  %v10662_v6 = vld.sshfl [vmem:[#allocation1 + $0x8] sm:$0xff pattern:$0x73625140] }
 0x109   :  { %12325 = vst [vmem:[#allocation124_spill] sm:$0xff] %v10660_v1  ;;  %v10664_v42 = vld.sshfl [vmem:[#allocation1 + $0x10] sm:$0xff pattern:$0x73625140] }
 0x10a   :  { %12326 = vst [vmem:[#allocation125_spill] sm:$0xff] %v10662_v6  ;;  %v10666_v0 = vld.sshfl [vmem:[#allocation1 + $0x18] sm:$0xff pattern:$0x73625140]  ;;  %v76_v6 = vld [vmem:[%s12202_s0 + $0x190] sm:$0xff] }
 0x10b   :  { %12327 = vst [vmem:[#allocation126_spill] sm:$0xff] %v10664_v42 }
 0x10c   :  { %12328 = vst [vmem:[#allocation127_spill] sm:$0xff] %v10666_v0 }
 0x10d   :  { %651 = vst [vmem:[#allocation1] ss:$4 sm:$0xff] %v74_v11  ;;  %v10693_v57 = vld.sshfl [vmem:[#allocation1 + $0x20] sm:$0xff pattern:$0x73625140] }
 0x10e   :  { %12337 = vst [vmem:[#allocation136_spill] sm:$0xff] %v10693_v57  ;;  %v10695_v32 = vld.sshfl [vmem:[#allocation1 + $0x28] sm:$0xff pattern:$0x73625140] }
 0x10f   :  { %12338 = vst [vmem:[#allocation137_spill] sm:$0xff] %v10695_v32  ;;  %v10697_v63 = vld.sshfl [vmem:[#allocation1 + $0x30] sm:$0xff pattern:$0x73625140]  ;;  %v73_v32 = vld [vmem:[%s12202_s0 + $0x178] sm:$0xff] }
 0x110   :  { %12339 = vst [vmem:[#allocation138_spill] sm:$0xff] %v10697_v63  ;;  %v10699_v47 = vld.sshfl [vmem:[#allocation1 + $0x38] sm:$0xff pattern:$0x73625140] }
 0x111   :  { %12340 = vst [vmem:[#allocation139_spill] sm:$0xff] %v10699_v47 }
 0x112   :  { %632 = vst [vmem:[#allocation1 + $0x20] ss:$4 sm:$0xff] %v71_v52 }
 0x114   :  { %v10682_v1 = vld.sshfl [vmem:[#allocation1] sm:$0xff pattern:$0x73625140]  ;;  %v10684_v11 = vld.sshfl [vmem:[#allocation1 + $0x8] sm:$0xff pattern:$0x73625140] }
 0x115   :  { %12333 = vst [vmem:[#allocation132_spill] sm:$0xff] %v10682_v1  ;;  %v10686_v0 = vld.sshfl [vmem:[#allocation1 + $0x10] sm:$0xff pattern:$0x73625140] }
 0x116   :  { %12334 = vst [vmem:[#allocation133_spill] sm:$0xff] %v10684_v11  ;;  %v10688_v42 = vld.sshfl [vmem:[#allocation1 + $0x18] sm:$0xff pattern:$0x73625140]  ;;  %v78_v11 = vld [vmem:[%s12202_s0 + $0x1a0] sm:$0xff] }
 0x117   :  { %12335 = vst [vmem:[#allocation134_spill] sm:$0xff] %v10686_v0 }
 0x118   :  { %12336 = vst [vmem:[#allocation135_spill] sm:$0xff] %v10688_v42 }
 0x119   :  { %661 = vst [vmem:[#allocation1] ss:$4 sm:$0xff] %v76_v6  ;;  %v10715_v57 = vld.sshfl [vmem:[#allocation1 + $0x20] sm:$0xff pattern:$0x73625140] }
 0x11a   :  { %12345 = vst [vmem:[#allocation144_spill] sm:$0xff] %v10715_v57  ;;  %v10717_v52 = vld.sshfl [vmem:[#allocation1 + $0x28] sm:$0xff pattern:$0x73625140] }
 0x11b   :  { %12346 = vst [vmem:[#allocation145_spill] sm:$0xff] %v10717_v52  ;;  %v10719_v47 = vld.sshfl [vmem:[#allocation1 + $0x30] sm:$0xff pattern:$0x73625140]  ;;  %v75_v52 = vld [vmem:[%s12202_s0 + $0x188] sm:$0xff] }
 0x11c   :  { %12347 = vst [vmem:[#allocation146_spill] sm:$0xff] %v10719_v47  ;;  %v10721_v63 = vld.sshfl [vmem:[#allocation1 + $0x38] sm:$0xff pattern:$0x73625140] }
 0x11d   :  { %12348 = vst [vmem:[#allocation147_spill] sm:$0xff] %v10721_v63 }
 0x11e   :  { %642 = vst [vmem:[#allocation1 + $0x20] ss:$4 sm:$0xff] %v73_v32 }
 0x120   :  { %v10704_v1 = vld.sshfl [vmem:[#allocation1] sm:$0xff pattern:$0x73625140]  ;;  %v10706_v6 = vld.sshfl [vmem:[#allocation1 + $0x8] sm:$0xff pattern:$0x73625140] }
 0x121   :  { %12341 = vst [vmem:[#allocation140_spill] sm:$0xff] %v10704_v1  ;;  %v10708_v42 = vld.sshfl [vmem:[#allocation1 + $0x10] sm:$0xff pattern:$0x73625140] }
 0x122   :  { %12342 = vst [vmem:[#allocation141_spill] sm:$0xff] %v10706_v6  ;;  %v10710_v0 = vld.sshfl [vmem:[#allocation1 + $0x18] sm:$0xff pattern:$0x73625140]  ;;  %v80_v6 = vld [vmem:[%s12202_s0 + $0x1b0] sm:$0xff] }
 0x123   :  { %12343 = vst [vmem:[#allocation142_spill] sm:$0xff] %v10708_v42 }
 0x124   :  { %12344 = vst [vmem:[#allocation143_spill] sm:$0xff] %v10710_v0 }
 0x125   :  { %671 = vst [vmem:[#allocation1] ss:$4 sm:$0xff] %v78_v11  ;;  %v10737_v57 = vld.sshfl [vmem:[#allocation1 + $0x20] sm:$0xff pattern:$0x73625140] }
 0x126   :  { %12353 = vst [vmem:[#allocation152_spill] sm:$0xff] %v10737_v57  ;;  %v10739_v63 = vld.sshfl [vmem:[#allocation1 + $0x28] sm:$0xff pattern:$0x73625140] }
 0x127   :  { %12354 = vst [vmem:[#allocation153_spill] sm:$0xff] %v10739_v63  ;;  %v10741_v47 = vld.sshfl [vmem:[#allocation1 + $0x30] sm:$0xff pattern:$0x73625140]  ;;  %v77_v63 = vld [vmem:[%s12202_s0 + $0x198] sm:$0xff] }
 0x128   :  { %12355 = vst [vmem:[#allocation154_spill] sm:$0xff] %v10741_v47  ;;  %v10743_v32 = vld.sshfl [vmem:[#allocation1 + $0x38] sm:$0xff pattern:$0x73625140] }
 0x129   :  { %12356 = vst [vmem:[#allocation155_spill] sm:$0xff] %v10743_v32 }
 0x12a   :  { %652 = vst [vmem:[#allocation1 + $0x20] ss:$4 sm:$0xff] %v75_v52 }
 0x12c   :  { %v10726_v1 = vld.sshfl [vmem:[#allocation1] sm:$0xff pattern:$0x73625140]  ;;  %v10728_v11 = vld.sshfl [vmem:[#allocation1 + $0x8] sm:$0xff pattern:$0x73625140] }
 0x12d   :  { %12349 = vst [vmem:[#allocation148_spill] sm:$0xff] %v10726_v1  ;;  %v10730_v0 = vld.sshfl [vmem:[#allocation1 + $0x10] sm:$0xff pattern:$0x73625140] }
 0x12e   :  { %12350 = vst [vmem:[#allocation149_spill] sm:$0xff] %v10728_v11  ;;  %v10732_v42 = vld.sshfl [vmem:[#allocation1 + $0x18] sm:$0xff pattern:$0x73625140]  ;;  %v82_v11 = vld [vmem:[%s12202_s0 + $0x1c0] sm:$0xff] }
 0x12f   :  { %12351 = vst [vmem:[#allocation150_spill] sm:$0xff] %v10730_v0 }
 0x130   :  { %12352 = vst [vmem:[#allocation151_spill] sm:$0xff] %v10732_v42 }
 0x131   :  { %681 = vst [vmem:[#allocation1] ss:$4 sm:$0xff] %v80_v6  ;;  %v10759_v57 = vld.sshfl [vmem:[#allocation1 + $0x20] sm:$0xff pattern:$0x73625140] }
 0x132   :  { %12361 = vst [vmem:[#allocation160_spill] sm:$0xff] %v10759_v57  ;;  %v10761_v32 = vld.sshfl [vmem:[#allocation1 + $0x28] sm:$0xff pattern:$0x73625140] }
 0x133   :  { %12362 = vst [vmem:[#allocation161_spill] sm:$0xff] %v10761_v32  ;;  %v10763_v47 = vld.sshfl [vmem:[#allocation1 + $0x30] sm:$0xff pattern:$0x73625140]  ;;  %v79_v32 = vld [vmem:[%s12202_s0 + $0x1a8] sm:$0xff] }
 0x134   :  { %12363 = vst [vmem:[#allocation162_spill] sm:$0xff] %v10763_v47  ;;  %v10765_v52 = vld.sshfl [vmem:[#allocation1 + $0x38] sm:$0xff pattern:$0x73625140] }
 0x135   :  { %12364 = vst [vmem:[#allocation163_spill] sm:$0xff] %v10765_v52 }
 0x136   :  { %662 = vst [vmem:[#allocation1 + $0x20] ss:$4 sm:$0xff] %v77_v63 }
 0x138   :  { %v10748_v1 = vld.sshfl [vmem:[#allocation1] sm:$0xff pattern:$0x73625140]  ;;  %v10750_v6 = vld.sshfl [vmem:[#allocation1 + $0x8] sm:$0xff pattern:$0x73625140] }
 0x139   :  { %12357 = vst [vmem:[#allocation156_spill] sm:$0xff] %v10748_v1  ;;  %v10752_v42 = vld.sshfl [vmem:[#allocation1 + $0x10] sm:$0xff pattern:$0x73625140] }
 0x13a   :  { %12358 = vst [vmem:[#allocation157_spill] sm:$0xff] %v10750_v6  ;;  %v10754_v0 = vld.sshfl [vmem:[#allocation1 + $0x18] sm:$0xff pattern:$0x73625140]  ;;  %v84_v6 = vld [vmem:[%s12202_s0 + $0x1d0] sm:$0xff] }
 0x13b   :  { %12359 = vst [vmem:[#allocation158_spill] sm:$0xff] %v10752_v42 }
 0x13c   :  { %12360 = vst [vmem:[#allocation159_spill] sm:$0xff] %v10754_v0 }
 0x13d   :  { %691 = vst [vmem:[#allocation1] ss:$4 sm:$0xff] %v82_v11  ;;  %v10781_v57 = vld.sshfl [vmem:[#allocation1 + $0x20] sm:$0xff pattern:$0x73625140] }
 0x13e   :  { %12369 = vst [vmem:[#allocation168_spill] sm:$0xff] %v10781_v57  ;;  %v10783_v52 = vld.sshfl [vmem:[#allocation1 + $0x28] sm:$0xff pattern:$0x73625140] }
 0x13f   :  { %12370 = vst [vmem:[#allocation169_spill] sm:$0xff] %v10783_v52  ;;  %v10785_v47 = vld.sshfl [vmem:[#allocation1 + $0x30] sm:$0xff pattern:$0x73625140]  ;;  %v81_v52 = vld [vmem:[%s12202_s0 + $0x1b8] sm:$0xff] }
 0x140   :  { %12371 = vst [vmem:[#allocation170_spill] sm:$0xff] %v10785_v47  ;;  %v10787_v63 = vld.sshfl [vmem:[#allocation1 + $0x38] sm:$0xff pattern:$0x73625140] }
 0x141   :  { %12372 = vst [vmem:[#allocation171_spill] sm:$0xff] %v10787_v63 }
 0x142   :  { %672 = vst [vmem:[#allocation1 + $0x20] ss:$4 sm:$0xff] %v79_v32 }
 0x144   :  { %v10770_v1 = vld.sshfl [vmem:[#allocation1] sm:$0xff pattern:$0x73625140]  ;;  %v10772_v11 = vld.sshfl [vmem:[#allocation1 + $0x8] sm:$0xff pattern:$0x73625140] }
 0x145   :  { %12365 = vst [vmem:[#allocation164_spill] sm:$0xff] %v10770_v1  ;;  %v10774_v0 = vld.sshfl [vmem:[#allocation1 + $0x10] sm:$0xff pattern:$0x73625140] }
 0x146   :  { %12366 = vst [vmem:[#allocation165_spill] sm:$0xff] %v10772_v11  ;;  %v10776_v42 = vld.sshfl [vmem:[#allocation1 + $0x18] sm:$0xff pattern:$0x73625140]  ;;  %v86_v11 = vld [vmem:[%s12202_s0 + $0x1e0] sm:$0xff] }
 0x147   :  { %12367 = vst [vmem:[#allocation166_spill] sm:$0xff] %v10774_v0 }
 0x148   :  { %12368 = vst [vmem:[#allocation167_spill] sm:$0xff] %v10776_v42 }
 0x149   :  { %701 = vst [vmem:[#allocation1] ss:$4 sm:$0xff] %v84_v6  ;;  %v10803_v57 = vld.sshfl [vmem:[#allocation1 + $0x20] sm:$0xff pattern:$0x73625140] }
 0x14a   :  { %12377 = vst [vmem:[#allocation176_spill] sm:$0xff] %v10803_v57  ;;  %v10805_v63 = vld.sshfl [vmem:[#allocation1 + $0x28] sm:$0xff pattern:$0x73625140] }
 0x14b   :  { %12378 = vst [vmem:[#allocation177_spill] sm:$0xff] %v10805_v63  ;;  %v10807_v47 = vld.sshfl [vmem:[#allocation1 + $0x30] sm:$0xff pattern:$0x73625140]  ;;  %v83_v63 = vld [vmem:[%s12202_s0 + $0x1c8] sm:$0xff] }
 0x14c   :  { %12379 = vst [vmem:[#allocation178_spill] sm:$0xff] %v10807_v47  ;;  %v10809_v32 = vld.sshfl [vmem:[#allocation1 + $0x38] sm:$0xff pattern:$0x73625140] }
 0x14d   :  { %12380 = vst [vmem:[#allocation179_spill] sm:$0xff] %v10809_v32 }
 0x14e   :  { %682 = vst [vmem:[#allocation1 + $0x20] ss:$4 sm:$0xff] %v81_v52 }
 0x150   :  { %v10792_v1 = vld.sshfl [vmem:[#allocation1] sm:$0xff pattern:$0x73625140]  ;;  %v10794_v6 = vld.sshfl [vmem:[#allocation1 + $0x8] sm:$0xff pattern:$0x73625140] }
 0x151   :  { %12373 = vst [vmem:[#allocation172_spill] sm:$0xff] %v10792_v1  ;;  %v10796_v42 = vld.sshfl [vmem:[#allocation1 + $0x10] sm:$0xff pattern:$0x73625140] }
 0x152   :  { %12374 = vst [vmem:[#allocation173_spill] sm:$0xff] %v10794_v6  ;;  %v10798_v0 = vld.sshfl [vmem:[#allocation1 + $0x18] sm:$0xff pattern:$0x73625140]  ;;  %v88_v6 = vld [vmem:[%s12202_s0 + $0x1f0] sm:$0xff] }
 0x153   :  { %12375 = vst [vmem:[#allocation174_spill] sm:$0xff] %v10796_v42 }
 0x154   :  { %12376 = vst [vmem:[#allocation175_spill] sm:$0xff] %v10798_v0 }
 0x155   :  { %711 = vst [vmem:[#allocation1] ss:$4 sm:$0xff] %v86_v11  ;;  %v10825_v57 = vld.sshfl [vmem:[#allocation1 + $0x20] sm:$0xff pattern:$0x73625140] }
 0x156   :  { %12385 = vst [vmem:[#allocation184_spill] sm:$0xff] %v10825_v57  ;;  %v10827_v32 = vld.sshfl [vmem:[#allocation1 + $0x28] sm:$0xff pattern:$0x73625140] }
 0x157   :  { %12386 = vst [vmem:[#allocation185_spill] sm:$0xff] %v10827_v32  ;;  %v10829_v47 = vld.sshfl [vmem:[#allocation1 + $0x30] sm:$0xff pattern:$0x73625140]  ;;  %v85_v32 = vld [vmem:[%s12202_s0 + $0x1d8] sm:$0xff] }
 0x158   :  { %12387 = vst [vmem:[#allocation186_spill] sm:$0xff] %v10829_v47  ;;  %v10831_v52 = vld.sshfl [vmem:[#allocation1 + $0x38] sm:$0xff pattern:$0x73625140] }
 0x159   :  { %12388 = vst [vmem:[#allocation187_spill] sm:$0xff] %v10831_v52 }
 0x15a   :  { %692 = vst [vmem:[#allocation1 + $0x20] ss:$4 sm:$0xff] %v83_v63 }
 0x15c   :  { %v10814_v1 = vld.sshfl [vmem:[#allocation1] sm:$0xff pattern:$0x73625140]  ;;  %v10816_v11 = vld.sshfl [vmem:[#allocation1 + $0x8] sm:$0xff pattern:$0x73625140] }
 0x15d   :  { %12381 = vst [vmem:[#allocation180_spill] sm:$0xff] %v10814_v1  ;;  %v10818_v0 = vld.sshfl [vmem:[#allocation1 + $0x10] sm:$0xff pattern:$0x73625140] }
 0x15e   :  { %12382 = vst [vmem:[#allocation181_spill] sm:$0xff] %v10816_v11  ;;  %v10820_v42 = vld.sshfl [vmem:[#allocation1 + $0x18] sm:$0xff pattern:$0x73625140]  ;;  %v90_v11 = vld [vmem:[%s12202_s0 + $0x200] sm:$0xff] }
 0x15f   :  { %12383 = vst [vmem:[#allocation182_spill] sm:$0xff] %v10818_v0 }
 0x160   :  { %12384 = vst [vmem:[#allocation183_spill] sm:$0xff] %v10820_v42 }
 0x161   :  { %721 = vst [vmem:[#allocation1] ss:$4 sm:$0xff] %v88_v6  ;;  %v10847_v57 = vld.sshfl [vmem:[#allocation1 + $0x20] sm:$0xff pattern:$0x73625140] }
 0x162   :  { %12393 = vst [vmem:[#allocation192_spill] sm:$0xff] %v10847_v57  ;;  %v10849_v52 = vld.sshfl [vmem:[#allocation1 + $0x28] sm:$0xff pattern:$0x73625140] }
 0x163   :  { %12394 = vst [vmem:[#allocation193_spill] sm:$0xff] %v10849_v52  ;;  %v10851_v47 = vld.sshfl [vmem:[#allocation1 + $0x30] sm:$0xff pattern:$0x73625140]  ;;  %v94_v52 = vld [vmem:[%s12202_s0 + $0x220] sm:$0xff]  ;;  %v87_v57 = vld [vmem:[%s12202_s0 + $0x1e8] sm:$0xff] }
 0x164   :  { %12395 = vst [vmem:[#allocation194_spill] sm:$0xff] %v10851_v47  ;;  %v10853_v63 = vld.sshfl [vmem:[#allocation1 + $0x38] sm:$0xff pattern:$0x73625140] }
 0x165   :  { %12396 = vst [vmem:[#allocation195_spill] sm:$0xff] %v10853_v63 }
 0x166   :  { %702 = vst [vmem:[#allocation1 + $0x20] ss:$4 sm:$0xff] %v85_v32 }
 0x168   :  { %v10836_v1 = vld.sshfl [vmem:[#allocation1] sm:$0xff pattern:$0x73625140]  ;;  %v10838_v6 = vld.sshfl [vmem:[#allocation1 + $0x8] sm:$0xff pattern:$0x73625140] }
 0x169   :  { %12389 = vst [vmem:[#allocation188_spill] sm:$0xff] %v10836_v1  ;;  %v10840_v42 = vld.sshfl [vmem:[#allocation1 + $0x10] sm:$0xff pattern:$0x73625140] }
 0x16a   :  { %12390 = vst [vmem:[#allocation189_spill] sm:$0xff] %v10838_v6  ;;  %v10842_v0 = vld.sshfl [vmem:[#allocation1 + $0x18] sm:$0xff pattern:$0x73625140]  ;;  %v92_v6 = vld [vmem:[%s12202_s0 + $0x210] sm:$0xff] }
 0x16b   :  { %12391 = vst [vmem:[#allocation190_spill] sm:$0xff] %v10840_v42 }
 0x16c   :  { %12392 = vst [vmem:[#allocation191_spill] sm:$0xff] %v10842_v0 }
 0x16d   :  { %731 = vst [vmem:[#allocation1] ss:$4 sm:$0xff] %v90_v11  ;;  %v10872_v63 = vld.sshfl [vmem:[#allocation1 + $0x20] sm:$0xff pattern:$0x73625140] }
 0x16e   :  { %12401 = vst [vmem:[#allocation200_spill] sm:$0xff] %v10872_v63  ;;  %v10874_v32 = vld.sshfl [vmem:[#allocation1 + $0x28] sm:$0xff pattern:$0x73625140]  ;;  %v96_v63 = vld [vmem:[%s12202_s0 + $0x230] sm:$0xff] }
 0x16f   :  { %12402 = vst [vmem:[#allocation201_spill] sm:$0xff] %v10874_v32 }
 0x174   :  { %v10858_v1 = vld.sshfl [vmem:[#allocation1] sm:$0xff pattern:$0x73625140]  ;;  %v10860_v11 = vld.sshfl [vmem:[#allocation1 + $0x8] sm:$0xff pattern:$0x73625140] }
 0x175   :  { %12397 = vst [vmem:[#allocation196_spill] sm:$0xff] %v10858_v1  ;;  %v10862_v0 = vld.sshfl [vmem:[#allocation1 + $0x10] sm:$0xff pattern:$0x73625140] }
 0x176   :  { %12398 = vst [vmem:[#allocation197_spill] sm:$0xff] %v10860_v11  ;;  %v10864_v42 = vld.sshfl [vmem:[#allocation1 + $0x18] sm:$0xff pattern:$0x73625140] }
 0x177   :  { %12399 = vst [vmem:[#allocation198_spill] sm:$0xff] %v10862_v0  ;;  %v10876_v1 = vld.sshfl [vmem:[#allocation1 + $0x30] sm:$0xff pattern:$0x73625140] }
 0x178   :  { %12400 = vst [vmem:[#allocation199_spill] sm:$0xff] %v10864_v42  ;;  %v10878_v11 = vld.sshfl [vmem:[#allocation1 + $0x38] sm:$0xff pattern:$0x73625140] }
 0x179   :  { %741 = vst [vmem:[#allocation1] ss:$4 sm:$0xff] %v92_v6 }
 0x17a   :  { %12403 = vst [vmem:[#allocation202_spill] sm:$0xff] %v10876_v1 }
 0x17b   :  { %12404 = vst [vmem:[#allocation203_spill] sm:$0xff] %v10878_v11 }
 0x17c   :  { %712 = vst [vmem:[#allocation1 + $0x20] ss:$4 sm:$0xff] %v87_v57 }
 0x180   :  { %v10880_v0 = vld.sshfl [vmem:[#allocation1] sm:$0xff pattern:$0x73625140]  ;;  %v10882_v42 = vld.sshfl [vmem:[#allocation1 + $0x8] sm:$0xff pattern:$0x73625140] }
 0x181   :  { %12405 = vst [vmem:[#allocation204_spill] sm:$0xff] %v10880_v0  ;;  %v10884_v6 = vld.sshfl [vmem:[#allocation1 + $0x10] sm:$0xff pattern:$0x73625140] }
 0x182   :  { %12406 = vst [vmem:[#allocation205_spill] sm:$0xff] %v10882_v42  ;;  %v10886_v47 = vld.sshfl [vmem:[#allocation1 + $0x18] sm:$0xff pattern:$0x73625140] }
 0x183   :  { %12407 = vst [vmem:[#allocation206_spill] sm:$0xff] %v10884_v6  ;;  %v89_v42 = vld [vmem:[%s12202_s0 + $0x1f8] sm:$0xff]  ;;  %v10902_v0 = vld.sshfl [vmem:[#allocation1 + $0x20] sm:$0xff pattern:$0x73625140]  ;;  %v91_v6 = vld [vmem:[%s12202_s0 + $0x208] sm:$0xff] }
 0x184   :  { %12408 = vst [vmem:[#allocation207_spill] sm:$0xff] %v10886_v47  ;;  %v10904_v57 = vld.sshfl [vmem:[#allocation1 + $0x28] sm:$0xff pattern:$0x73625140] }
 0x185   :  { %751 = vst [vmem:[#allocation1] ss:$4 sm:$0xff] %v94_v52  ;;  %v10906_v52 = vld.sshfl [vmem:[#allocation1 + $0x30] sm:$0xff pattern:$0x73625140] }
 0x186   :  { %12413 = vst [vmem:[#allocation212_spill] sm:$0xff] %v10902_v0  ;;  %v10908_v47 = vld.sshfl [vmem:[#allocation1 + $0x38] sm:$0xff pattern:$0x73625140] }
 0x187   :  { %12414 = vst [vmem:[#allocation213_spill] sm:$0xff] %v10904_v57 }
 0x188   :  { %12415 = vst [vmem:[#allocation214_spill] sm:$0xff] %v10906_v52 }
 0x189   :  { %12416 = vst [vmem:[#allocation215_spill] sm:$0xff] %v10908_v47 }
 0x18a   :  { %722 = vst [vmem:[#allocation1 + $0x20] ss:$4 sm:$0xff] %v89_v42 }
 0x18c   :  { %v10891_v62 = vld.sshfl [vmem:[#allocation1] sm:$0xff pattern:$0x73625140]  ;;  %v10893_v32 = vld.sshfl [vmem:[#allocation1 + $0x8] sm:$0xff pattern:$0x73625140] }
 0x18d   :  { %12409 = vst [vmem:[#allocation208_spill] sm:$0xff] %v10891_v62  ;;  %v10895_v1 = vld.sshfl [vmem:[#allocation1 + $0x10] sm:$0xff pattern:$0x73625140] }
 0x18e   :  { %12410 = vst [vmem:[#allocation209_spill] sm:$0xff] %v10893_v32  ;;  %v10897_v11 = vld.sshfl [vmem:[#allocation1 + $0x18] sm:$0xff pattern:$0x73625140]  ;;  %v98_v32 = vld [vmem:[%s12202_s0 + $0x240] sm:$0xff] }
 0x18f   :  { %12411 = vst [vmem:[#allocation210_spill] sm:$0xff] %v10895_v1 }
 0x190   :  { %12412 = vst [vmem:[#allocation211_spill] sm:$0xff] %v10897_v11 }
 0x191   :  { %761 = vst [vmem:[#allocation1] ss:$4 sm:$0xff] %v96_v63  ;;  %v10924_v57 = vld.sshfl [vmem:[#allocation1 + $0x20] sm:$0xff pattern:$0x73625140] }
 0x192   :  { %12421 = vst [vmem:[#allocation220_spill] sm:$0xff] %v10924_v57  ;;  %v10926_v42 = vld.sshfl [vmem:[#allocation1 + $0x28] sm:$0xff pattern:$0x73625140] }
 0x193   :  { %12422 = vst [vmem:[#allocation221_spill] sm:$0xff] %v10926_v42  ;;  %v10928_v0 = vld.sshfl [vmem:[#allocation1 + $0x30] sm:$0xff pattern:$0x73625140]  ;;  %v93_v42 = vld [vmem:[%s12202_s0 + $0x218] sm:$0xff] }
 0x194   :  { %12423 = vst [vmem:[#allocation222_spill] sm:$0xff] %v10928_v0  ;;  %v10930_v47 = vld.sshfl [vmem:[#allocation1 + $0x38] sm:$0xff pattern:$0x73625140] }
 0x195   :  { %12424 = vst [vmem:[#allocation223_spill] sm:$0xff] %v10930_v47 }
 0x196   :  { %732 = vst [vmem:[#allocation1 + $0x20] ss:$4 sm:$0xff] %v91_v6 }
 0x198   :  { %v10913_v62 = vld.sshfl [vmem:[#allocation1] sm:$0xff pattern:$0x73625140]  ;;  %v10915_v63 = vld.sshfl [vmem:[#allocation1 + $0x8] sm:$0xff pattern:$0x73625140] }
 0x199   :  { %12417 = vst [vmem:[#allocation216_spill] sm:$0xff] %v10913_v62  ;;  %v10917_v11 = vld.sshfl [vmem:[#allocation1 + $0x10] sm:$0xff pattern:$0x73625140] }
 0x19a   :  { %12418 = vst [vmem:[#allocation217_spill] sm:$0xff] %v10915_v63  ;;  %v10919_v1 = vld.sshfl [vmem:[#allocation1 + $0x18] sm:$0xff pattern:$0x73625140]  ;;  %v100_v63 = vld [vmem:[%s12202_s0 + $0x250] sm:$0xff] }
 0x19b   :  { %12419 = vst [vmem:[#allocation218_spill] sm:$0xff] %v10917_v11 }
 0x19c   :  { %12420 = vst [vmem:[#allocation219_spill] sm:$0xff] %v10919_v1 }
 0x19d   :  { %771 = vst [vmem:[#allocation1] ss:$4 sm:$0xff] %v98_v32  ;;  %v10946_v57 = vld.sshfl [vmem:[#allocation1 + $0x20] sm:$0xff pattern:$0x73625140] }
 0x19e   :  { %12429 = vst [vmem:[#allocation228_spill] sm:$0xff] %v10946_v57  ;;  %v10948_v6 = vld.sshfl [vmem:[#allocation1 + $0x28] sm:$0xff pattern:$0x73625140] }
 0x19f   :  { %12430 = vst [vmem:[#allocation229_spill] sm:$0xff] %v10948_v6  ;;  %v10950_v47 = vld.sshfl [vmem:[#allocation1 + $0x30] sm:$0xff pattern:$0x73625140]  ;;  %v95_v6 = vld [vmem:[%s12202_s0 + $0x228] sm:$0xff] }
 0x1a0   :  { %12431 = vst [vmem:[#allocation230_spill] sm:$0xff] %v10950_v47  ;;  %v10952_v0 = vld.sshfl [vmem:[#allocation1 + $0x38] sm:$0xff pattern:$0x73625140] }
 0x1a1   :  { %12432 = vst [vmem:[#allocation231_spill] sm:$0xff] %v10952_v0 }
 0x1a2   :  { %742 = vst [vmem:[#allocation1 + $0x20] ss:$4 sm:$0xff] %v93_v42 }
 0x1a4   :  { %v10935_v62 = vld.sshfl [vmem:[#allocation1] sm:$0xff pattern:$0x73625140]  ;;  %v10937_v32 = vld.sshfl [vmem:[#allocation1 + $0x8] sm:$0xff pattern:$0x73625140] }
 0x1a5   :  { %12425 = vst [vmem:[#allocation224_spill] sm:$0xff] %v10935_v62  ;;  %v10939_v1 = vld.sshfl [vmem:[#allocation1 + $0x10] sm:$0xff pattern:$0x73625140] }
 0x1a6   :  { %12426 = vst [vmem:[#allocation225_spill] sm:$0xff] %v10937_v32  ;;  %v10941_v11 = vld.sshfl [vmem:[#allocation1 + $0x18] sm:$0xff pattern:$0x73625140]  ;;  %v102_v32 = vld [vmem:[%s12202_s0 + $0x260] sm:$0xff] }
 0x1a7   :  { %12427 = vst [vmem:[#allocation226_spill] sm:$0xff] %v10939_v1 }
 0x1a8   :  { %12428 = vst [vmem:[#allocation227_spill] sm:$0xff] %v10941_v11 }
 0x1a9   :  { %781 = vst [vmem:[#allocation1] ss:$4 sm:$0xff] %v100_v63  ;;  %v10968_v57 = vld.sshfl [vmem:[#allocation1 + $0x20] sm:$0xff pattern:$0x73625140] }
 0x1aa   :  { %12437 = vst [vmem:[#allocation236_spill] sm:$0xff] %v10968_v57  ;;  %v10970_v42 = vld.sshfl [vmem:[#allocation1 + $0x28] sm:$0xff pattern:$0x73625140] }
 0x1ab   :  { %12438 = vst [vmem:[#allocation237_spill] sm:$0xff] %v10970_v42  ;;  %v10972_v0 = vld.sshfl [vmem:[#allocation1 + $0x30] sm:$0xff pattern:$0x73625140]  ;;  %v97_v42 = vld [vmem:[%s12202_s0 + $0x238] sm:$0xff] }
 0x1ac   :  { %12439 = vst [vmem:[#allocation238_spill] sm:$0xff] %v10972_v0  ;;  %v10974_v47 = vld.sshfl [vmem:[#allocation1 + $0x38] sm:$0xff pattern:$0x73625140] }
 0x1ad   :  { %12440 = vst [vmem:[#allocation239_spill] sm:$0xff] %v10974_v47 }
 0x1ae   :  { %752 = vst [vmem:[#allocation1 + $0x20] ss:$4 sm:$0xff] %v95_v6 }
 0x1b0   :  { %v10957_v62 = vld.sshfl [vmem:[#allocation1] sm:$0xff pattern:$0x73625140]  ;;  %v10959_v63 = vld.sshfl [vmem:[#allocation1 + $0x8] sm:$0xff pattern:$0x73625140] }
 0x1b1   :  { %12433 = vst [vmem:[#allocation232_spill] sm:$0xff] %v10957_v62  ;;  %v10961_v11 = vld.sshfl [vmem:[#allocation1 + $0x10] sm:$0xff pattern:$0x73625140] }
 0x1b2   :  { %12434 = vst [vmem:[#allocation233_spill] sm:$0xff] %v10959_v63  ;;  %v10963_v1 = vld.sshfl [vmem:[#allocation1 + $0x18] sm:$0xff pattern:$0x73625140]  ;;  %v104_v63 = vld [vmem:[%s12202_s0 + $0x270] sm:$0xff] }
 0x1b3   :  { %12435 = vst [vmem:[#allocation234_spill] sm:$0xff] %v10961_v11 }
 0x1b4   :  { %12436 = vst [vmem:[#allocation235_spill] sm:$0xff] %v10963_v1 }
 0x1b5   :  { %791 = vst [vmem:[#allocation1] ss:$4 sm:$0xff] %v102_v32  ;;  %v10990_v57 = vld.sshfl [vmem:[#allocation1 + $0x20] sm:$0xff pattern:$0x73625140] }
 0x1b6   :  { %12445 = vst [vmem:[#allocation244_spill] sm:$0xff] %v10990_v57  ;;  %v10992_v6 = vld.sshfl [vmem:[#allocation1 + $0x28] sm:$0xff pattern:$0x73625140] }
 0x1b7   :  { %12446 = vst [vmem:[#allocation245_spill] sm:$0xff] %v10992_v6  ;;  %v10994_v47 = vld.sshfl [vmem:[#allocation1 + $0x30] sm:$0xff pattern:$0x73625140]  ;;  %v99_v6 = vld [vmem:[%s12202_s0 + $0x248] sm:$0xff] }
 0x1b8   :  { %12447 = vst [vmem:[#allocation246_spill] sm:$0xff] %v10994_v47  ;;  %v10996_v0 = vld.sshfl [vmem:[#allocation1 + $0x38] sm:$0xff pattern:$0x73625140] }
 0x1b9   :  { %12448 = vst [vmem:[#allocation247_spill] sm:$0xff] %v10996_v0 }
 0x1ba   :  { %762 = vst [vmem:[#allocation1 + $0x20] ss:$4 sm:$0xff] %v97_v42 }
 0x1bc   :  { %v10979_v62 = vld.sshfl [vmem:[#allocation1] sm:$0xff pattern:$0x73625140]  ;;  %v10981_v32 = vld.sshfl [vmem:[#allocation1 + $0x8] sm:$0xff pattern:$0x73625140] }
 0x1bd   :  { %12441 = vst [vmem:[#allocation240_spill] sm:$0xff] %v10979_v62  ;;  %v10983_v1 = vld.sshfl [vmem:[#allocation1 + $0x10] sm:$0xff pattern:$0x73625140] }
 0x1be   :  { %12442 = vst [vmem:[#allocation241_spill] sm:$0xff] %v10981_v32  ;;  %v10985_v11 = vld.sshfl [vmem:[#allocation1 + $0x18] sm:$0xff pattern:$0x73625140]  ;;  %v106_v32 = vld [vmem:[%s12202_s0 + $0x280] sm:$0xff] }
 0x1bf   :  { %12443 = vst [vmem:[#allocation242_spill] sm:$0xff] %v10983_v1 }
 0x1c0   :  { %12444 = vst [vmem:[#allocation243_spill] sm:$0xff] %v10985_v11 }
 0x1c1   :  { %801 = vst [vmem:[#allocation1] ss:$4 sm:$0xff] %v104_v63  ;;  %v11012_v57 = vld.sshfl [vmem:[#allocation1 + $0x20] sm:$0xff pattern:$0x73625140] }
 0x1c2   :  { %12453 = vst [vmem:[#allocation252_spill] sm:$0xff] %v11012_v57  ;;  %v11014_v42 = vld.sshfl [vmem:[#allocation1 + $0x28] sm:$0xff pattern:$0x73625140] }
 0x1c3   :  { %12454 = vst [vmem:[#allocation253_spill] sm:$0xff] %v11014_v42  ;;  %v11016_v0 = vld.sshfl [vmem:[#allocation1 + $0x30] sm:$0xff pattern:$0x73625140]  ;;  %v101_v42 = vld [vmem:[%s12202_s0 + $0x258] sm:$0xff] }
 0x1c4   :  { %12455 = vst [vmem:[#allocation254_spill] sm:$0xff] %v11016_v0  ;;  %v11018_v47 = vld.sshfl [vmem:[#allocation1 + $0x38] sm:$0xff pattern:$0x73625140] }
 0x1c5   :  { %12456 = vst [vmem:[#allocation255_spill] sm:$0xff] %v11018_v47 }
 0x1c6   :  { %772 = vst [vmem:[#allocation1 + $0x20] ss:$4 sm:$0xff] %v99_v6 }
 0x1c8   :  { %v11001_v62 = vld.sshfl [vmem:[#allocation1] sm:$0xff pattern:$0x73625140]  ;;  %v11003_v63 = vld.sshfl [vmem:[#allocation1 + $0x8] sm:$0xff pattern:$0x73625140] }
 0x1c9   :  { %12449 = vst [vmem:[#allocation248_spill] sm:$0xff] %v11001_v62  ;;  %v11005_v11 = vld.sshfl [vmem:[#allocation1 + $0x10] sm:$0xff pattern:$0x73625140] }
 0x1ca   :  { %12450 = vst [vmem:[#allocation249_spill] sm:$0xff] %v11003_v63  ;;  %v11007_v1 = vld.sshfl [vmem:[#allocation1 + $0x18] sm:$0xff pattern:$0x73625140]  ;;  %v108_v63 = vld [vmem:[%s12202_s0 + $0x290] sm:$0xff] }
 0x1cb   :  { %12451 = vst [vmem:[#allocation250_spill] sm:$0xff] %v11005_v11 }
 0x1cc   :  { %12452 = vst [vmem:[#allocation251_spill] sm:$0xff] %v11007_v1 }
 0x1cd   :  { %811 = vst [vmem:[#allocation1] ss:$4 sm:$0xff] %v106_v32  ;;  %v11034_v57 = vld.sshfl [vmem:[#allocation1 + $0x20] sm:$0xff pattern:$0x73625140] }
 0x1ce   :  { %12461 = vst [vmem:[#allocation260_spill] sm:$0xff] %v11034_v57  ;;  %v11036_v6 = vld.sshfl [vmem:[#allocation1 + $0x28] sm:$0xff pattern:$0x73625140] }
 0x1cf   :  { %12462 = vst [vmem:[#allocation261_spill] sm:$0xff] %v11036_v6  ;;  %v11038_v47 = vld.sshfl [vmem:[#allocation1 + $0x30] sm:$0xff pattern:$0x73625140]  ;;  %v103_v6 = vld [vmem:[%s12202_s0 + $0x268] sm:$0xff] }
 0x1d0   :  { %12463 = vst [vmem:[#allocation262_spill] sm:$0xff] %v11038_v47  ;;  %v11040_v0 = vld.sshfl [vmem:[#allocation1 + $0x38] sm:$0xff pattern:$0x73625140] }
 0x1d1   :  { %12464 = vst [vmem:[#allocation263_spill] sm:$0xff] %v11040_v0 }
 0x1d2   :  { %782 = vst [vmem:[#allocation1 + $0x20] ss:$4 sm:$0xff] %v101_v42 }
 0x1d4   :  { %v11023_v62 = vld.sshfl [vmem:[#allocation1] sm:$0xff pattern:$0x73625140]  ;;  %v11025_v32 = vld.sshfl [vmem:[#allocation1 + $0x8] sm:$0xff pattern:$0x73625140] }
 0x1d5   :  { %12457 = vst [vmem:[#allocation256_spill] sm:$0xff] %v11023_v62  ;;  %v11027_v1 = vld.sshfl [vmem:[#allocation1 + $0x10] sm:$0xff pattern:$0x73625140] }
 0x1d6   :  { %12458 = vst [vmem:[#allocation257_spill] sm:$0xff] %v11025_v32  ;;  %v11029_v11 = vld.sshfl [vmem:[#allocation1 + $0x18] sm:$0xff pattern:$0x73625140]  ;;  %v110_v32 = vld [vmem:[%s12202_s0 + $0x2a0] sm:$0xff] }
 0x1d7   :  { %12459 = vst [vmem:[#allocation258_spill] sm:$0xff] %v11027_v1 }
 0x1d8   :  { %12460 = vst [vmem:[#allocation259_spill] sm:$0xff] %v11029_v11 }
 0x1d9   :  { %821 = vst [vmem:[#allocation1] ss:$4 sm:$0xff] %v108_v63  ;;  %v11056_v57 = vld.sshfl [vmem:[#allocation1 + $0x20] sm:$0xff pattern:$0x73625140] }
 0x1da   :  { %12469 = vst [vmem:[#allocation268_spill] sm:$0xff] %v11056_v57  ;;  %v11058_v42 = vld.sshfl [vmem:[#allocation1 + $0x28] sm:$0xff pattern:$0x73625140] }
 0x1db   :  { %12470 = vst [vmem:[#allocation269_spill] sm:$0xff] %v11058_v42  ;;  %v11060_v0 = vld.sshfl [vmem:[#allocation1 + $0x30] sm:$0xff pattern:$0x73625140]  ;;  %v105_v42 = vld [vmem:[%s12202_s0 + $0x278] sm:$0xff] }
 0x1dc   :  { %12471 = vst [vmem:[#allocation270_spill] sm:$0xff] %v11060_v0  ;;  %v11062_v47 = vld.sshfl [vmem:[#allocation1 + $0x38] sm:$0xff pattern:$0x73625140] }
 0x1dd   :  { %12472 = vst [vmem:[#allocation271_spill] sm:$0xff] %v11062_v47 }
 0x1de   :  { %792 = vst [vmem:[#allocation1 + $0x20] ss:$4 sm:$0xff] %v103_v6 }
 0x1e0   :  { %v11045_v62 = vld.sshfl [vmem:[#allocation1] sm:$0xff pattern:$0x73625140]  ;;  %v11047_v63 = vld.sshfl [vmem:[#allocation1 + $0x8] sm:$0xff pattern:$0x73625140] }
 0x1e1   :  { %12465 = vst [vmem:[#allocation264_spill] sm:$0xff] %v11045_v62  ;;  %v11049_v11 = vld.sshfl [vmem:[#allocation1 + $0x10] sm:$0xff pattern:$0x73625140] }
 0x1e2   :  { %12466 = vst [vmem:[#allocation265_spill] sm:$0xff] %v11047_v63  ;;  %v11051_v1 = vld.sshfl [vmem:[#allocation1 + $0x18] sm:$0xff pattern:$0x73625140]  ;;  %v112_v63 = vld [vmem:[%s12202_s0 + $0x2b0] sm:$0xff] }
 0x1e3   :  { %12467 = vst [vmem:[#allocation266_spill] sm:$0xff] %v11049_v11 }
 0x1e4   :  { %12468 = vst [vmem:[#allocation267_spill] sm:$0xff] %v11051_v1 }
 0x1e5   :  { %831 = vst [vmem:[#allocation1] ss:$4 sm:$0xff] %v110_v32  ;;  %v11078_v57 = vld.sshfl [vmem:[#allocation1 + $0x20] sm:$0xff pattern:$0x73625140] }
 0x1e6   :  { %12477 = vst [vmem:[#allocation276_spill] sm:$0xff] %v11078_v57  ;;  %v11080_v6 = vld.sshfl [vmem:[#allocation1 + $0x28] sm:$0xff pattern:$0x73625140] }
 0x1e7   :  { %12478 = vst [vmem:[#allocation277_spill] sm:$0xff] %v11080_v6  ;;  %v11082_v47 = vld.sshfl [vmem:[#allocation1 + $0x30] sm:$0xff pattern:$0x73625140]  ;;  %v107_v6 = vld [vmem:[%s12202_s0 + $0x288] sm:$0xff] }
 0x1e8   :  { %12479 = vst [vmem:[#allocation278_spill] sm:$0xff] %v11082_v47  ;;  %v11084_v0 = vld.sshfl [vmem:[#allocation1 + $0x38] sm:$0xff pattern:$0x73625140] }
 0x1e9   :  { %12480 = vst [vmem:[#allocation279_spill] sm:$0xff] %v11084_v0 }
 0x1ea   :  { %802 = vst [vmem:[#allocation1 + $0x20] ss:$4 sm:$0xff] %v105_v42 }
 0x1ec   :  { %v11067_v62 = vld.sshfl [vmem:[#allocation1] sm:$0xff pattern:$0x73625140]  ;;  %v11069_v32 = vld.sshfl [vmem:[#allocation1 + $0x8] sm:$0xff pattern:$0x73625140] }
 0x1ed   :  { %12473 = vst [vmem:[#allocation272_spill] sm:$0xff] %v11067_v62  ;;  %v11071_v1 = vld.sshfl [vmem:[#allocation1 + $0x10] sm:$0xff pattern:$0x73625140] }
 0x1ee   :  { %12474 = vst [vmem:[#allocation273_spill] sm:$0xff] %v11069_v32  ;;  %v11073_v11 = vld.sshfl [vmem:[#allocation1 + $0x18] sm:$0xff pattern:$0x73625140]  ;;  %v114_v32 = vld [vmem:[%s12202_s0 + $0x2c0] sm:$0xff] }
 0x1ef   :  { %12475 = vst [vmem:[#allocation274_spill] sm:$0xff] %v11071_v1 }
 0x1f0   :  { %12476 = vst [vmem:[#allocation275_spill] sm:$0xff] %v11073_v11 }
 0x1f1   :  { %841 = vst [vmem:[#allocation1] ss:$4 sm:$0xff] %v112_v63  ;;  %v11100_v57 = vld.sshfl [vmem:[#allocation1 + $0x20] sm:$0xff pattern:$0x73625140] }
 0x1f2   :  { %12485 = vst [vmem:[#allocation284_spill] sm:$0xff] %v11100_v57  ;;  %v11102_v42 = vld.sshfl [vmem:[#allocation1 + $0x28] sm:$0xff pattern:$0x73625140] }
 0x1f3   :  { %12486 = vst [vmem:[#allocation285_spill] sm:$0xff] %v11102_v42  ;;  %v11104_v0 = vld.sshfl [vmem:[#allocation1 + $0x30] sm:$0xff pattern:$0x73625140]  ;;  %v109_v42 = vld [vmem:[%s12202_s0 + $0x298] sm:$0xff] }
 0x1f4   :  { %12487 = vst [vmem:[#allocation286_spill] sm:$0xff] %v11104_v0  ;;  %v11106_v47 = vld.sshfl [vmem:[#allocation1 + $0x38] sm:$0xff pattern:$0x73625140] }
 0x1f5   :  { %12488 = vst [vmem:[#allocation287_spill] sm:$0xff] %v11106_v47 }
 0x1f6   :  { %812 = vst [vmem:[#allocation1 + $0x20] ss:$4 sm:$0xff] %v107_v6 }
 0x1f8   :  { %v11089_v62 = vld.sshfl [vmem:[#allocation1] sm:$0xff pattern:$0x73625140]  ;;  %v11091_v63 = vld.sshfl [vmem:[#allocation1 + $0x8] sm:$0xff pattern:$0x73625140] }
 0x1f9   :  { %12481 = vst [vmem:[#allocation280_spill] sm:$0xff] %v11089_v62  ;;  %v11093_v11 = vld.sshfl [vmem:[#allocation1 + $0x10] sm:$0xff pattern:$0x73625140] }
 0x1fa   :  { %12482 = vst [vmem:[#allocation281_spill] sm:$0xff] %v11091_v63  ;;  %v11095_v1 = vld.sshfl [vmem:[#allocation1 + $0x18] sm:$0xff pattern:$0x73625140]  ;;  %v116_v63 = vld [vmem:[%s12202_s0 + $0x2d0] sm:$0xff] }
 0x1fb   :  { %12483 = vst [vmem:[#allocation282_spill] sm:$0xff] %v11093_v11 }
 0x1fc   :  { %12484 = vst [vmem:[#allocation283_spill] sm:$0xff] %v11095_v1 }
 0x1fd   :  { %851 = vst [vmem:[#allocation1] ss:$4 sm:$0xff] %v114_v32  ;;  %v11122_v57 = vld.sshfl [vmem:[#allocation1 + $0x20] sm:$0xff pattern:$0x73625140] }
 0x1fe   :  { %12493 = vst [vmem:[#allocation292_spill] sm:$0xff] %v11122_v57  ;;  %v11124_v47 = vld.sshfl [vmem:[#allocation1 + $0x28] sm:$0xff pattern:$0x73625140] }
 0x1ff   :  { %12494 = vst [vmem:[#allocation293_spill] sm:$0xff] %v11124_v47  ;;  %v11126_v0 = vld.sshfl [vmem:[#allocation1 + $0x30] sm:$0xff pattern:$0x73625140]  ;;  %v111_v47 = vld [vmem:[%s12202_s0 + $0x2a8] sm:$0xff] }
 0x200   :  { %12495 = vst [vmem:[#allocation294_spill] sm:$0xff] %v11126_v0  ;;  %v11128_v6 = vld.sshfl [vmem:[#allocation1 + $0x38] sm:$0xff pattern:$0x73625140] }
 0x201   :  { %12496 = vst [vmem:[#allocation295_spill] sm:$0xff] %v11128_v6 }
 0x202   :  { %822 = vst [vmem:[#allocation1 + $0x20] ss:$4 sm:$0xff] %v109_v42 }
 0x204   :  { %v11111_v62 = vld.sshfl [vmem:[#allocation1] sm:$0xff pattern:$0x73625140]  ;;  %v11113_v32 = vld.sshfl [vmem:[#allocation1 + $0x8] sm:$0xff pattern:$0x73625140] }
 0x205   :  { %12489 = vst [vmem:[#allocation288_spill] sm:$0xff] %v11111_v62  ;;  %v11115_v1 = vld.sshfl [vmem:[#allocation1 + $0x10] sm:$0xff pattern:$0x73625140] }
 0x206   :  { %12490 = vst [vmem:[#allocation289_spill] sm:$0xff] %v11113_v32  ;;  %v11117_v11 = vld.sshfl [vmem:[#allocation1 + $0x18] sm:$0xff pattern:$0x73625140]  ;;  %v118_v32 = vld [vmem:[%s12202_s0 + $0x2e0] sm:$0xff] }
 0x207   :  { %12491 = vst [vmem:[#allocation290_spill] sm:$0xff] %v11115_v1 }
 0x208   :  { %12492 = vst [vmem:[#allocation291_spill] sm:$0xff] %v11117_v11 }
 0x209   :  { %861 = vst [vmem:[#allocation1] ss:$4 sm:$0xff] %v116_v63  ;;  %v11144_v57 = vld.sshfl [vmem:[#allocation1 + $0x20] sm:$0xff pattern:$0x73625140] }
 0x20a   :  { %12501 = vst [vmem:[#allocation300_spill] sm:$0xff] %v11144_v57  ;;  %v11146_v6 = vld.sshfl [vmem:[#allocation1 + $0x28] sm:$0xff pattern:$0x73625140]  ;;  %v113_v57 = vld [vmem:[%s12202_s0 + $0x2b8] sm:$0xff] }
 0x20b   :  { %12502 = vst [vmem:[#allocation301_spill] sm:$0xff] %v11146_v6  ;;  %v11148_v0 = vld.sshfl [vmem:[#allocation1 + $0x30] sm:$0xff pattern:$0x73625140]  ;;  %v123_v6 = vld [vmem:[%s12203_s1 + $0x8] sm:$0x77] }
 0x20c   :  { %12503 = vst [vmem:[#allocation302_spill] sm:$0xff] %v11148_v0  ;;  %v11150_v42 = vld.sshfl [vmem:[#allocation1 + $0x38] sm:$0xff pattern:$0x73625140] }
 0x20d   :  { %12504 = vst [vmem:[#allocation303_spill] sm:$0xff] %v11150_v42 }
 0x20e   :  { %832 = vst [vmem:[#allocation1 + $0x20] ss:$4 sm:$0xff] %v111_v47 }
 0x210   :  { %v11133_v62 = vld.sshfl [vmem:[#allocation1] sm:$0xff pattern:$0x73625140]  ;;  %v11135_v63 = vld.sshfl [vmem:[#allocation1 + $0x8] sm:$0xff pattern:$0x73625140] }
 0x211   :  { %12497 = vst [vmem:[#allocation296_spill] sm:$0xff] %v11133_v62  ;;  %v11137_v11 = vld.sshfl [vmem:[#allocation1 + $0x10] sm:$0xff pattern:$0x73625140] }
 0x212   :  { %12498 = vst [vmem:[#allocation297_spill] sm:$0xff] %v11135_v63  ;;  %v11139_v1 = vld.sshfl [vmem:[#allocation1 + $0x18] sm:$0xff pattern:$0x73625140]  ;;  %v120_v63 = vld [vmem:[%s12202_s0 + $0x2f0] sm:$0xff] }
 0x213   :  { %12499 = vst [vmem:[#allocation298_spill] sm:$0xff] %v11137_v11 }
 0x214   :  { %12500 = vst [vmem:[#allocation299_spill] sm:$0xff] %v11139_v1 }
 0x215   :  { %871 = vst [vmem:[#allocation1] ss:$4 sm:$0xff] %v118_v32  ;;  %v11169_v42 = vld.sshfl [vmem:[#allocation1 + $0x20] sm:$0xff pattern:$0x73625140] }
 0x216   :  { %12509 = vst [vmem:[#allocation308_spill] sm:$0xff] %v11169_v42  ;;  %v11171_v47 = vld.sshfl [vmem:[#allocation1 + $0x28] sm:$0xff pattern:$0x73625140] }
 0x217   :  { %12510 = vst [vmem:[#allocation309_spill] sm:$0xff] %v11171_v47  ;;  %v115_v47 = vld [vmem:[%s12202_s0 + $0x2c8] sm:$0xff] }
 0x21c   :  { %v11155_v62 = vld.sshfl [vmem:[#allocation1] sm:$0xff pattern:$0x73625140]  ;;  %v11157_v32 = vld.sshfl [vmem:[#allocation1 + $0x8] sm:$0xff pattern:$0x73625140] }
 0x21d   :  { %12505 = vst [vmem:[#allocation304_spill] sm:$0xff] %v11155_v62  ;;  %v11159_v1 = vld.sshfl [vmem:[#allocation1 + $0x10] sm:$0xff pattern:$0x73625140] }
 0x21e   :  { %12506 = vst [vmem:[#allocation305_spill] sm:$0xff] %v11157_v32  ;;  %v11161_v11 = vld.sshfl [vmem:[#allocation1 + $0x18] sm:$0xff pattern:$0x73625140] }
 0x21f   :  { %12507 = vst [vmem:[#allocation306_spill] sm:$0xff] %v11159_v1  ;;  %v11173_v62 = vld.sshfl [vmem:[#allocation1 + $0x30] sm:$0xff pattern:$0x73625140] }
 0x220   :  { %12508 = vst [vmem:[#allocation307_spill] sm:$0xff] %v11161_v11  ;;  %v11175_v32 = vld.sshfl [vmem:[#allocation1 + $0x38] sm:$0xff pattern:$0x73625140] }
 0x221   :  { %881 = vst [vmem:[#allocation1] ss:$4 sm:$0xff] %v120_v63  ;;  %v122_v63 = vld [vmem:[%s12203_s1] sm:$0x77] }
 0x222   :  { %12511 = vst [vmem:[#allocation310_spill] sm:$0xff] %v11173_v62 }
 0x223   :  { %12512 = vst [vmem:[#allocation311_spill] sm:$0xff] %v11175_v32 }
 0x224   :  { %842 = vst [vmem:[#allocation1 + $0x20] ss:$4 sm:$0xff] %v113_v57 }
 0x228   :  { %v11180_v11 = vld.sshfl [vmem:[#allocation1 + $0x10] sm:$0xff pattern:$0x73625140]  ;;  %v11182_v1 = vld.sshfl [vmem:[#allocation1 + $0x18] sm:$0xff pattern:$0x73625140] }
 0x229   :  { %12513 = vst [vmem:[#allocation312_spill] sm:$0xff] %v11180_v11  ;;  %v11184_v0 = vld.sshfl [vmem:[#allocation1] sm:$0xff pattern:$0x73625140] }
 0x22a   :  { %12514 = vst [vmem:[#allocation313_spill] sm:$0xff] %v11182_v1  ;;  %v11186_v52 = vld.sshfl [vmem:[#allocation1 + $0x8] sm:$0xff pattern:$0x73625140] }
 0x22b   :  { %1469 = vst [vmem:[#allocation1 + $0x10] ss:$2 sm:$0xff] %v123_v6  ;;  %v11191_v42 = vld.sshfl [vmem:[#allocation1 + $0x20] sm:$0xff pattern:$0x73625140] }
 0x22c   :  { %12515 = vst [vmem:[#allocation314_spill] sm:$0xff] %v11184_v0  ;;  %v11193_v32 = vld.sshfl [vmem:[#allocation1 + $0x28] sm:$0xff pattern:$0x73625140] }
 0x22d   :  { %12516 = vst [vmem:[#allocation315_spill] sm:$0xff] %v11186_v52  ;;  %v11195_v62 = vld.sshfl [vmem:[#allocation1 + $0x30] sm:$0xff pattern:$0x73625140] }
 0x22e   :  { %1467 = vst [vmem:[#allocation1] ss:$2 sm:$0xff] %v122_v63  ;;  %v11197_v57 = vld.sshfl [vmem:[#allocation1 + $0x38] sm:$0xff pattern:$0x73625140] }
 0x22f   :  { %12517 = vst [vmem:[#allocation316_spill] sm:$0xff] %v11191_v42  ;;  %v117_v63 = vld [vmem:[%s12202_s0 + $0x2d8] sm:$0xff] }
 0x230   :  { %12518 = vst [vmem:[#allocation317_spill] sm:$0xff] %v11193_v32 }
 0x231   :  { %12519 = vst [vmem:[#allocation318_spill] sm:$0xff] %v11197_v57 }
 0x232   :  { %v1476_v11 = vld.sshfl [vmem:[#allocation1 + $0x10] sm:$0xff pattern:$0x75316420]  ;;  %v1477_v1 = vld.sshfl [vmem:[#allocation1 + $0x18] sm:$0xff pattern:$0x75316420] }
 0x233   :  { %2485 = vmatpush.xpose.msra.mxu2 %v1476_v11  ;;  %2505 = vmatpush.xpose.msra.mxu3 %v1477_v1  ;;  %852 = vst [vmem:[#allocation1 + $0x20] ss:$4 sm:$0xff] %v115_v47 }
 0x235   :  { %v1474_v6 = vld.sshfl [vmem:[#allocation1] sm:$0xff pattern:$0x75316420]  ;;  %v1475_v52 = vld.sshfl [vmem:[#allocation1 + $0x8] sm:$0xff pattern:$0x75316420] }
 0x236   :  { %2445 = vmatpush.xpose.msra.mxu0 %v1474_v6  ;;  %2465 = vmatpush.xpose.msra.mxu1 %v1475_v52 }
 0x237   :  { %2486 = vmatmul.f32.vlgmr.msra.gmra.mxu2 %v10188_v4  ;;  %2506 = vmatmul.f32.vlgmr.msra.gmra.mxu3 %v10190_v5  ;;  %v127_v4 = vld [vmem:[%s12203_s1 + $0x28] sm:$0x77] }
 0x238   :  { %1483 = vst [vmem:[#allocation1 + $0x10] ss:$2 sm:$0xff] %v127_v4  ;;  %v121_v4 = vld [vmem:[%s12202_s0 + $0x2f8] sm:$0xff] }
 0x239   :  { %2446 = vmatmul.f32.vlgmr.msra.gmra.mxu0 %v10184_v2  ;;  %2466 = vmatmul.f32.vlgmr.msra.gmra.mxu1 %v10186_v3  ;;  %v126_v2 = vld [vmem:[%s12203_s1 + $0x20] sm:$0x77]  ;;  %v119_v3 = vld [vmem:[%s12202_s0 + $0x2e8] sm:$0xff] }
 0x23a   :  { %v11206_v0 = vld.sshfl [vmem:[#allocation1 + $0x20] sm:$0xff pattern:$0x73625140]  ;;  %v11208_v1 = vld.sshfl [vmem:[#allocation1 + $0x28] sm:$0xff pattern:$0x73625140] }
 0x23b   :  { %12520 = vst [vmem:[#allocation319_spill] sm:$0xff] %v11206_v0  ;;  %v11210_v11 = vld.sshfl [vmem:[#allocation1 + $0x30] sm:$0xff pattern:$0x73625140] }
 0x23c   :  { %12521 = vst [vmem:[#allocation320_spill] sm:$0xff] %v11208_v1  ;;  %v11212_v47 = vld.sshfl [vmem:[#allocation1 + $0x38] sm:$0xff pattern:$0x73625140] }
 0x23d   :  { %12522 = vst [vmem:[#allocation321_spill] sm:$0xff] %v11210_v11 }
 0x23e   :  { %12523 = vst [vmem:[#allocation322_spill] sm:$0xff] %v11212_v47 }
 0x23f   :  { %862 = vst [vmem:[#allocation1 + $0x20] ss:$4 sm:$0xff] %v117_v63  ;;  %v1488_v0 = vld.sshfl [vmem:[#allocation1 + $0x10] sm:$0xff pattern:$0x75316420] }
 0x240   :  { %1482 = vst [vmem:[#allocation1] ss:$2 sm:$0xff] %v126_v2  ;;  %v1489_v47 = vld.sshfl [vmem:[#allocation1 + $0x18] sm:$0xff pattern:$0x75316420] }
 0x246   :  { %v11223_v5 = vld.sshfl [vmem:[#allocation1 + $0x20] sm:$0xff pattern:$0x73625140]  ;;  %v11225_v52 = vld.sshfl [vmem:[#allocation1 + $0x28] sm:$0xff pattern:$0x73625140] }
 0x247   :  { %12524 = vst [vmem:[#allocation323_spill] sm:$0xff] %v11223_v5  ;;  %v11227_v6 = vld.sshfl [vmem:[#allocation1 + $0x30] sm:$0xff pattern:$0x73625140] }
 0x248   :  { %12525 = vst [vmem:[#allocation324_spill] sm:$0xff] %v11225_v52  ;;  %v11229_v63 = vld.sshfl [vmem:[#allocation1 + $0x38] sm:$0xff pattern:$0x73625140] }
 0x249   :  { %12526 = vst [vmem:[#allocation325_spill] sm:$0xff] %v11227_v6  ;;  %v1486_v52 = vld.sshfl [vmem:[#allocation1] sm:$0xff pattern:$0x75316420]  ;;  %v128_v6 = vld [vmem:[%s12203_s1 + $0x30] sm:$0x77] }
 0x24a   :  { %12527 = vst [vmem:[#allocation326_spill] sm:$0xff] %v11229_v63  ;;  %v1487_v32 = vld.sshfl [vmem:[#allocation1 + $0x8] sm:$0xff pattern:$0x75316420] }
 0x24b   :  { %872 = vst [vmem:[#allocation1 + $0x20] ss:$4 sm:$0xff] %v119_v3  ;;  %v131_v3 = vld [vmem:[%s12203_s1 + $0x48] sm:$0x77] }
 0x24c   :  { %1495 = vst [vmem:[#allocation1 + $0x10] ss:$2 sm:$0xff] %v131_v3 }
 0x252   :  { %v11234_v1 = vld.sshfl [vmem:[#allocation1 + $0x20] sm:$0xff pattern:$0x73625140]  ;;  %v11236_v2 = vld.sshfl [vmem:[#allocation1 + $0x28] sm:$0xff pattern:$0x73625140] }
 0x253   :  { %12528 = vst [vmem:[#allocation327_spill] sm:$0xff] %v11234_v1  ;;  %v11238_v11 = vld.sshfl [vmem:[#allocation1 + $0x30] sm:$0xff pattern:$0x73625140]  ;;  %v130_v1 = vld [vmem:[%s12203_s1 + $0x40] sm:$0x77] }
 0x254   :  { %12529 = vst [vmem:[#allocation328_spill] sm:$0xff] %v11236_v2  ;;  %v11240_v5 = vld.sshfl [vmem:[#allocation1 + $0x38] sm:$0xff pattern:$0x73625140] }
 0x255   :  { %12530 = vst [vmem:[#allocation329_spill] sm:$0xff] %v11238_v11  ;;  %v125_v2 = vld [vmem:[%s12203_s1 + $0x18] sm:$0x77] }
 0x256   :  { %12531 = vst [vmem:[#allocation330_spill] sm:$0xff] %v11240_v5  ;;  %v124_v5 = vld [vmem:[%s12203_s1 + $0x10] sm:$0x77] }
 0x257   :  { %882 = vst [vmem:[#allocation1 + $0x20] ss:$4 sm:$0xff] %v121_v4 }
 0x258   :  { %1494 = vst [vmem:[#allocation1] ss:$2 sm:$0xff] %v130_v1  ;;  %v129_v1 = vld [vmem:[%s12203_s1 + $0x38] sm:$0x77] }
 0x25e   :  { %v11254_v11 = vld.sshfl [vmem:[#allocation1 + $0x30] sm:$0xff pattern:$0x73625140]  ;;  %v11256_v4 = vld.sshfl [vmem:[#allocation1 + $0x38] sm:$0xff pattern:$0x73625140] }
 0x25f   :  { %12532 = vst [vmem:[#allocation331_spill] sm:$0xff] %v11254_v11  ;;  %v11258_v63 = vld.sshfl [vmem:[#allocation1 + $0x20] sm:$0xff pattern:$0x73625140] }
 0x260   :  { %12533 = vst [vmem:[#allocation332_spill] sm:$0xff] %v11256_v4  ;;  %v11260_v3 = vld.sshfl [vmem:[#allocation1 + $0x28] sm:$0xff pattern:$0x73625140] }
 0x261   :  { %1473 = vst [vmem:[#allocation1 + $0x30] ss:$2 sm:$0xff] %v125_v2  ;;  %v1500_v4 = vld.sshfl [vmem:[#allocation1 + $0x10] sm:$0xff pattern:$0x75316420] }
 0x262   :  { %12534 = vst [vmem:[#allocation333_spill] sm:$0xff] %v11258_v63  ;;  %v1501_v2 = vld.sshfl [vmem:[#allocation1 + $0x18] sm:$0xff pattern:$0x75316420] }
 0x263   :  { %12535 = vst [vmem:[#allocation334_spill] sm:$0xff] %v11260_v3  ;;  %v135_v3 = vld [vmem:[%s12203_s1 + $0x68] sm:$0x77]  ;;  %v1498_v11 = vld.sshfl [vmem:[#allocation1] sm:$0xff pattern:$0x75316420] }
 0x264   :  { %1471 = vst [vmem:[#allocation1 + $0x20] ss:$2 sm:$0xff] %v124_v5 }
 0x265   :  { %1507 = vst [vmem:[#allocation1 + $0x10] ss:$2 sm:$0xff] %v135_v3 }
 0x268   :  { %v1480_v42 = vld.sshfl [vmem:[#allocation1 + $0x30] sm:$0xff pattern:$0x75316420]  ;;  %v1481_v57 = vld.sshfl [vmem:[#allocation1 + $0x38] sm:$0xff pattern:$0x75316420] }
 0x269   :  { %2565 = vmatpush.xpose.msrb.mxu2 %v1480_v42  ;;  %2585 = vmatpush.xpose.msrb.mxu3 %v1481_v57  ;;  %1485 = vst [vmem:[#allocation1 + $0x30] ss:$2 sm:$0xff] %v129_v1  ;;  %v134_v42 = vld [vmem:[%s12203_s1 + $0x60] sm:$0x77] }
 0x26a   :  { %v1499_v57 = vld.sshfl [vmem:[#allocation1 + $0x8] sm:$0xff pattern:$0x75316420] }
 0x26b   :  { %v1478_v5 = vld.sshfl [vmem:[#allocation1 + $0x20] sm:$0xff pattern:$0x75316420]  ;;  %v1479_v63 = vld.sshfl [vmem:[#allocation1 + $0x28] sm:$0xff pattern:$0x75316420] }
 0x26c   :  { %2525 = vmatpush.xpose.msrb.mxu0 %v1478_v5  ;;  %2545 = vmatpush.xpose.msrb.mxu1 %v1479_v63  ;;  %1484 = vst [vmem:[#allocation1 + $0x20] ss:$2 sm:$0xff] %v128_v6  ;;  %v1512_v63 = vld.sshfl [vmem:[#allocation1 + $0x10] sm:$0xff pattern:$0x75316420] }
 0x26d   :  { %2645 = vmatpush.xpose.msra.mxu2 %v1488_v0  ;;  %2665 = vmatpush.xpose.msra.mxu3 %v1489_v47  ;;  %1506 = vst [vmem:[#allocation1] ss:$2 sm:$0xff] %v134_v42  ;;  %v133_v0 = vld [vmem:[%s12203_s1 + $0x58] sm:$0x77]  ;;  %v132_v47 = vld [vmem:[%s12203_s1 + $0x50] sm:$0x77] }
 0x26e   :  { %2566 = vmatmul.f32.vlgmr.msrb.gmra.mxu2 %v10224_v20  ;;  %2586 = vmatmul.f32.vlgmr.msrb.gmra.mxu3 %v10226_v21 }
 0x26f   :  { %2526 = vmatmul.f32.vlgmr.msrb.gmra.mxu0 %v10220_v18  ;;  %2546 = vmatmul.f32.vlgmr.msrb.gmra.mxu1 %v10222_v19  ;;  %v137_v18 = vld [vmem:[%s12203_s1 + $0x78] sm:$0x77]  ;;  %v136_v19 = vld [vmem:[%s12203_s1 + $0x70] sm:$0x77] }
 0x270   :  { %2605 = vmatpush.xpose.msra.mxu0 %v1486_v52  ;;  %2625 = vmatpush.xpose.msra.mxu1 %v1487_v32  ;;  %v1492_v20 = vld.sshfl [vmem:[#allocation1 + $0x30] sm:$0xff pattern:$0x75316420]  ;;  %v1493_v6 = vld.sshfl [vmem:[#allocation1 + $0x38] sm:$0xff pattern:$0x75316420] }
 0x271   :  { %2725 = vmatpush.xpose.msrb.mxu2 %v1492_v20  ;;  %2745 = vmatpush.xpose.msrb.mxu3 %v1493_v6  ;;  %1497 = vst [vmem:[#allocation1 + $0x30] ss:$2 sm:$0xff] %v133_v0  ;;  %v145_v20 = vld [vmem:[%s12203_s1 + $0xb8] sm:$0x77] }
 0x273   :  { %v1490_v21 = vld.sshfl [vmem:[#allocation1 + $0x20] sm:$0xff pattern:$0x75316420]  ;;  %v1491_v32 = vld.sshfl [vmem:[#allocation1 + $0x28] sm:$0xff pattern:$0x75316420] }
 0x274   :  { %2685 = vmatpush.xpose.msrb.mxu0 %v1490_v21  ;;  %2705 = vmatpush.xpose.msrb.mxu1 %v1491_v32  ;;  %1496 = vst [vmem:[#allocation1 + $0x20] ss:$2 sm:$0xff] %v132_v47  ;;  %v1510_v3 = vld.sshfl [vmem:[#allocation1] sm:$0xff pattern:$0x75316420] }
 0x275   :  { %v1511_v1 = vld.sshfl [vmem:[#allocation1 + $0x8] sm:$0xff pattern:$0x75316420]  ;;  %v142_v47 = vld [vmem:[%s12203_s1 + $0xa0] sm:$0x77] }
 0x276   :  { %2646 = vmatmul.f32.vlgmr.msra.gmra.mxu2 %v10199_v9  ;;  %2666 = vmatmul.f32.vlgmr.msra.gmra.mxu3 %v10201_v10  ;;  %v1513_v10 = vld.sshfl [vmem:[#allocation1 + $0x18] sm:$0xff pattern:$0x75316420] }
 0x277   :  { %2805 = vmatpush.xpose.msra.mxu2 %v1500_v4  ;;  %2825 = vmatpush.xpose.msra.mxu3 %v1501_v2  ;;  %v141_v2 = vld [vmem:[%s12203_s1 + $0x98] sm:$0x77] }
 0x278   :  { %2606 = vmatmul.f32.vlgmr.msra.gmra.mxu0 %v10195_v7  ;;  %2626 = vmatmul.f32.vlgmr.msra.gmra.mxu1 %v10197_v8  ;;  %v1504_v52 = vld.sshfl [vmem:[#allocation1 + $0x30] sm:$0xff pattern:$0x75316420]  ;;  %v1505_v9 = vld.sshfl [vmem:[#allocation1 + $0x38] sm:$0xff pattern:$0x75316420] }
 0x279   :  { %2765 = vmatpush.xpose.msra.mxu0 %v1498_v11  ;;  %2785 = vmatpush.xpose.msra.mxu1 %v1499_v57  ;;  %1509 = vst [vmem:[#allocation1 + $0x30] ss:$2 sm:$0xff] %v137_v18  ;;  %v139_v7 = vld [vmem:[%s12203_s1 + $0x88] sm:$0x77]  ;;  %v138_v11 = vld [vmem:[%s12203_s1 + $0x80] sm:$0x77] }
 0x27a   :  { %1519 = vst [vmem:[#allocation1 + $0x10] ss:$2 sm:$0xff] %v139_v7 }
 0x27b   :  { %v1502_v8 = vld.sshfl [vmem:[#allocation1 + $0x20] sm:$0xff pattern:$0x75316420]  ;;  %v1503_v4 = vld.sshfl [vmem:[#allocation1 + $0x28] sm:$0xff pattern:$0x75316420] }
 0x27c   :  { %1508 = vst [vmem:[#allocation1 + $0x20] ss:$2 sm:$0xff] %v136_v19  ;;  %v148_v19 = vld [vmem:[%s12203_s1 + $0xd0] sm:$0x77] }
 0x27d   :  { %1518 = vst [vmem:[#allocation1] ss:$2 sm:$0xff] %v138_v11 }
 0x27e   :  { %2726 = vmatmul.f32.vlgmr.msrb.gmra.mxu2 %v10246_v30  ;;  %2746 = vmatmul.f32.vlgmr.msrb.gmra.mxu3 %v10248_v31 }
 0x27f   :  { %2885 = vmatpush.xpose.msrb.mxu2 %v1504_v52  ;;  %2905 = vmatpush.xpose.msrb.mxu3 %v1505_v9 }
 0x280   :  { %2686 = vmatmul.f32.vlgmr.msrb.gmra.mxu0 %v10242_v28  ;;  %2706 = vmatmul.f32.vlgmr.msrb.gmra.mxu1 %v10244_v29  ;;  %v1516_v5 = vld.sshfl [vmem:[#allocation1 + $0x30] sm:$0xff pattern:$0x75316420]  ;;  %v1517_v42 = vld.sshfl [vmem:[#allocation1 + $0x38] sm:$0xff pattern:$0x75316420] }
 0x281   :  { %2845 = vmatpush.xpose.msrb.mxu0 %v1502_v8  ;;  %2865 = vmatpush.xpose.msrb.mxu1 %v1503_v4  ;;  %1521 = vst [vmem:[#allocation1 + $0x30] ss:$2 sm:$0xff] %v141_v2  ;;  %v140_v28 = vld [vmem:[%s12203_s1 + $0x90] sm:$0x77]  ;;  %v154_v8 = vld [vmem:[%s12203_s1 + $0x100] sm:$0x77] }
 0x282   :  { %v1524_v29 = vld.sshfl [vmem:[#allocation1 + $0x10] sm:$0xff pattern:$0x75316420] }
 0x283   :  { %v1514_v30 = vld.sshfl [vmem:[#allocation1 + $0x20] sm:$0xff pattern:$0x75316420]  ;;  %v1515_v31 = vld.sshfl [vmem:[#allocation1 + $0x28] sm:$0xff pattern:$0x75316420] }
 0x284   :  { %1520 = vst [vmem:[#allocation1 + $0x20] ss:$2 sm:$0xff] %v140_v28  ;;  %v1522_v57 = vld.sshfl [vmem:[#allocation1] sm:$0xff pattern:$0x75316420]  ;;  %v12538_v2 = vld [vmem:[#allocation14_spill] sm:$0xff] }
 0x285   :  { %v1523_v0 = vld.sshfl [vmem:[#allocation1 + $0x8] sm:$0xff pattern:$0x75316420]  ;;  %v160_v28 = vld [vmem:[%s12203_s1 + $0x130] sm:$0x77] }
 0x286   :  { %2806 = vmatmul.f32.vlgmr.msra.gmra.mxu2 %v10213_v15  ;;  %2826 = vmatmul.f32.vlgmr.msra.gmra.mxu3 %v10215_v16  ;;  %v1525_v15 = vld.sshfl [vmem:[#allocation1 + $0x18] sm:$0xff pattern:$0x75316420]  ;;  %v143_v16 = vld [vmem:[%s12203_s1 + $0xa8] sm:$0x77] }
 0x287   :  { %2965 = vmatpush.xpose.msra.mxu2 %v1512_v63  ;;  %2985 = vmatpush.xpose.msra.mxu3 %v1513_v10  ;;  %1531 = vst [vmem:[#allocation1 + $0x10] ss:$2 sm:$0xff] %v143_v16  ;;  %v12541_v16 = vld [vmem:[#allocation5_spill] sm:$0xff] }
 0x288   :  { %2766 = vmatmul.f32.vlgmr.msra.gmra.mxu0 %v10209_v13  ;;  %2786 = vmatmul.f32.vlgmr.msra.gmra.mxu1 %v10211_v14  ;;  %1530 = vst [vmem:[#allocation1] ss:$2 sm:$0xff] %v142_v47  ;;  %v1528_v13 = vld.sshfl [vmem:[#allocation1 + $0x30] sm:$0xff pattern:$0x75316420] }
 0x289   :  { %2925 = vmatpush.xpose.msra.mxu0 %v1510_v3  ;;  %2945 = vmatpush.xpose.msra.mxu1 %v1511_v1  ;;  %v1529_v14 = vld.sshfl [vmem:[#allocation1 + $0x38] sm:$0xff pattern:$0x75316420] }
 0x28a   :  { %1533 = vst [vmem:[#allocation1 + $0x30] ss:$2 sm:$0xff] %v145_v20 }
 0x28b   :  { %v1526_v6 = vld.sshfl [vmem:[#allocation1 + $0x20] sm:$0xff pattern:$0x75316420]  ;;  %v1527_v21 = vld.sshfl [vmem:[#allocation1 + $0x28] sm:$0xff pattern:$0x75316420] }
 0x28e   :  { %2886 = vmatmul.f32.vlgmr.msrb.gmra.mxu2 %v10268_v40  ;;  %2906 = vmatmul.f32.vlgmr.msrb.gmra.mxu3 %v10270_v41  ;;  %v144_v40 = vld [vmem:[%s12203_s1 + $0xb0] sm:$0x77]  ;;  %v147_v41 = vld [vmem:[%s12203_s1 + $0xc8] sm:$0x77] }
 0x28f   :  { %3045 = vmatpush.xpose.msrb.mxu2 %v1516_v5  ;;  %3065 = vmatpush.xpose.msrb.mxu3 %v1517_v42  ;;  %1532 = vst [vmem:[#allocation1 + $0x20] ss:$2 sm:$0xff] %v144_v40  ;;  %v1534_v32 = vld.sshfl [vmem:[#allocation1] sm:$0xff pattern:$0x75316420] }
 0x290   :  { %2846 = vmatmul.f32.vlgmr.msrb.gmra.mxu0 %v10264_v38  ;;  %2866 = vmatmul.f32.vlgmr.msrb.gmra.mxu1 %v10266_v39  ;;  %v1536_v38 = vld.sshfl [vmem:[#allocation1 + $0x10] sm:$0xff pattern:$0x75316420]  ;;  %v1537_v39 = vld.sshfl [vmem:[#allocation1 + $0x18] sm:$0xff pattern:$0x75316420] }
 0x291   :  { %3005 = vmatpush.xpose.msrb.mxu0 %v1514_v30  ;;  %3025 = vmatpush.xpose.msrb.mxu1 %v1515_v31  ;;  %1543 = vst [vmem:[#allocation1 + $0x10] ss:$2 sm:$0xff] %v147_v41  ;;  %v1541_v18 = vld.sshfl [vmem:[#allocation1 + $0x38] sm:$0xff pattern:$0x75316420] }
 0x292   :  { %v161_v31 = vld [vmem:[%s12203_s1 + $0x138] sm:$0x77] }
 0x293   :  { %v12544_v40 = vld [vmem:[#allocation27_spill] sm:$0xff] }
 0x296   :  { %2966 = vmatmul.f32.vlgmr.msra.gmra.mxu2 %v10235_v25  ;;  %2986 = vmatmul.f32.vlgmr.msra.gmra.mxu3 %v10237_v26  ;;  %v1535_v25 = vld.sshfl [vmem:[#allocation1 + $0x8] sm:$0xff pattern:$0x75316420]  ;;  %v1538_v26 = vld.sshfl [vmem:[#allocation1 + $0x20] sm:$0xff pattern:$0x75316420] }
 0x297   :  { %3125 = vmatpush.xpose.msra.mxu2 %v1524_v29  ;;  %3145 = vmatpush.xpose.msra.mxu3 %v1525_v15  ;;  %v12539_v29 = vld [vmem:[#allocation7_spill] sm:$0xff]  ;;  %v12540_v15 = vld [vmem:[#allocation8_spill] sm:$0xff] }
 0x298   :  { %2926 = vmatmul.f32.vlgmr.msra.gmra.mxu0 %v10231_v23  ;;  %2946 = vmatmul.f32.vlgmr.msra.gmra.mxu1 %v10233_v24  ;;  %v146_v23 = vld [vmem:[%s12203_s1 + $0xc0] sm:$0x77]  ;;  %v1540_v24 = vld.sshfl [vmem:[#allocation1 + $0x30] sm:$0xff pattern:$0x75316420] }
 0x299   :  { %3085 = vmatpush.xpose.msra.mxu0 %v1522_v57  ;;  %3105 = vmatpush.xpose.msra.mxu1 %v1523_v0  ;;  %1542 = vst [vmem:[#allocation1] ss:$2 sm:$0xff] %v146_v23  ;;  %v1549_v52 = vld.sshfl [vmem:[#allocation1 + $0x18] sm:$0xff pattern:$0x75316420] }
 0x29a   :  { %v12542_v57 = vld [vmem:[#allocation6_spill] sm:$0xff]  ;;  %v163_v0 = vld [vmem:[%s12203_s1 + $0x148] sm:$0x77] }
 0x29e   :  { %3046 = vmatmul.f32.vlgmr.msrb.gmra.mxu2 %v10290_v50  ;;  %3066 = vmatmul.f32.vlgmr.msrb.gmra.mxu3 %v10292_v51  ;;  %v1539_v50 = vld.sshfl [vmem:[#allocation1 + $0x28] sm:$0xff pattern:$0x75316420]  ;;  %v149_v51 = vld [vmem:[%s12203_s1 + $0xd8] sm:$0x77] }
 0x29f   :  { %3205 = vmatpush.xpose.msrb.mxu2 %v1528_v13  ;;  %3225 = vmatpush.xpose.msrb.mxu3 %v1529_v14  ;;  %1545 = vst [vmem:[#allocation1 + $0x30] ss:$2 sm:$0xff] %v149_v51  ;;  %v12547_v51 = vld [vmem:[#allocation11_spill] sm:$0xff] }
 0x2a0   :  { %3006 = vmatmul.f32.vlgmr.msrb.gmra.mxu0 %v10286_v48  ;;  %3026 = vmatmul.f32.vlgmr.msrb.gmra.mxu1 %v10288_v49  ;;  %1544 = vst [vmem:[#allocation1 + $0x20] ss:$2 sm:$0xff] %v148_v19  ;;  %v151_v48 = vld [vmem:[%s12203_s1 + $0xe8] sm:$0x77] }
 0x2a1   :  { %3165 = vmatpush.xpose.msrb.mxu0 %v1526_v6  ;;  %3185 = vmatpush.xpose.msrb.mxu1 %v1527_v21  ;;  %v1548_v49 = vld.sshfl [vmem:[#allocation1 + $0x10] sm:$0xff pattern:$0x75316420]  ;;  %v1546_v9 = vld.sshfl [vmem:[#allocation1] sm:$0xff pattern:$0x75316420] }
 0x2a2   :  { %v1547_v63 = vld.sshfl [vmem:[#allocation1 + $0x8] sm:$0xff pattern:$0x75316420]  ;;  %1555 = vst [vmem:[#allocation1 + $0x10] ss:$2 sm:$0xff] %v151_v48  ;;  %v12543_v21 = vld [vmem:[#allocation26_spill] sm:$0xff] }
 0x2a3   :  { %v162_v6 = vld [vmem:[%s12203_s1 + $0x140] sm:$0x77] }
 0x2a4   :  { %v12548_v19 = vld [vmem:[#allocation12_spill] sm:$0xff] }
 0x2a6   :  { %3126 = vmatmul.f32.vlgmr.msra.gmra.mxu2 %v10257_v35  ;;  %3146 = vmatmul.f32.vlgmr.msra.gmra.mxu3 %v10259_v36  ;;  %v150_v35 = vld [vmem:[%s12203_s1 + $0xe0] sm:$0x77]  ;;  %v153_v36 = vld [vmem:[%s12203_s1 + $0xf8] sm:$0x77] }
 0x2a7   :  { %3285 = vmatpush.xpose.msra.mxu2 %v1536_v38  ;;  %3305 = vmatpush.xpose.msra.mxu3 %v1537_v39  ;;  %1554 = vst [vmem:[#allocation1] ss:$2 sm:$0xff] %v150_v35  ;;  %v1550_v10 = vld.sshfl [vmem:[#allocation1 + $0x20] sm:$0xff pattern:$0x75316420]  ;;  %v12546_v39 = vld [vmem:[#allocation25_spill] sm:$0xff] }
 0x2a8   :  { %3086 = vmatmul.f32.vlgmr.msra.gmra.mxu0 %v10253_v33  ;;  %3106 = vmatmul.f32.vlgmr.msra.gmra.mxu1 %v10255_v34  ;;  %v1552_v33 = vld.sshfl [vmem:[#allocation1 + $0x30] sm:$0xff pattern:$0x75316420]  ;;  %v1553_v34 = vld.sshfl [vmem:[#allocation1 + $0x38] sm:$0xff pattern:$0x75316420] }
 0x2a9   :  { %3245 = vmatpush.xpose.msra.mxu0 %v1534_v32  ;;  %3265 = vmatpush.xpose.msra.mxu1 %v1535_v25  ;;  %1557 = vst [vmem:[#allocation1 + $0x30] ss:$2 sm:$0xff] %v153_v36  ;;  %v1561_v7 = vld.sshfl [vmem:[#allocation1 + $0x18] sm:$0xff pattern:$0x75316420]  ;;  %v12545_v38 = vld [vmem:[#allocation24_spill] sm:$0xff] }
 0x2aa   :  { %v12550_v35 = vld [vmem:[#allocation10_spill] sm:$0xff] }
 0x2ae   :  { %3206 = vmatmul.f32.vlgmr.msrb.gmra.mxu2 %v10312_v60  ;;  %3226 = vmatmul.f32.vlgmr.msrb.gmra.mxu3 %v10314_v61  ;;  %v1551_v60 = vld.sshfl [vmem:[#allocation1 + $0x28] sm:$0xff pattern:$0x75316420]  ;;  %v1558_v61 = vld.sshfl [vmem:[#allocation1] sm:$0xff pattern:$0x75316420] }
 0x2af   :  { %3365 = vmatpush.xpose.msrb.mxu2 %v1540_v24  ;;  %3385 = vmatpush.xpose.msrb.mxu3 %v1541_v18  ;;  %v165_v24 = vld [vmem:[%s12203_s1 + $0x158] sm:$0x77] }
 0x2b0   :  { %3166 = vmatmul.f32.vlgmr.msrb.gmra.mxu0 %v10308_v58  ;;  %3186 = vmatmul.f32.vlgmr.msrb.gmra.mxu1 %v10310_v59  ;;  %v152_v58 = vld [vmem:[%s12203_s1 + $0xf0] sm:$0x77]  ;;  %v1565_v4 = vld.sshfl [vmem:[#allocation1 + $0x38] sm:$0xff pattern:$0x75316420] }
 0x2b1   :  { %3325 = vmatpush.xpose.msrb.mxu0 %v1538_v26  ;;  %3345 = vmatpush.xpose.msrb.mxu1 %v1539_v50  ;;  %1556 = vst [vmem:[#allocation1 + $0x20] ss:$2 sm:$0xff] %v152_v58  ;;  %v1560_v59 = vld.sshfl [vmem:[#allocation1 + $0x10] sm:$0xff pattern:$0x75316420] }
 0x2b2   :  { %v167_v58 = vld [vmem:[%s12203_s1 + $0x168] sm:$0x77] }
 0x2b6   :  { %3286 = vmatmul.f32.vlgmr.msra.gmra.mxu2 %v10279_v45  ;;  %3306 = vmatmul.f32.vlgmr.msra.gmra.mxu3 %v10281_v46  ;;  %v1559_v45 = vld.sshfl [vmem:[#allocation1 + $0x8] sm:$0xff pattern:$0x75316420]  ;;  %v2447_v41 = vpop.f32.mrf.mxu0  ;;  %v2467_v32 = vpop.f32.mrf.mxu1 }
 0x2b7   :  { %3445 = vmatpush.xpose.msra.mxu2 %v1548_v49  ;;  %3465 = vmatpush.xpose.msra.mxu3 %v1549_v52  ;;  %v155_v46 = vld [vmem:[%s12203_s1 + $0x108] sm:$0x77]  ;;  %1566 = vst [vmem:[#allocation1] ss:$2 sm:$0xff] %v154_v8  ;;  %v2468_v18 = vadd.f32 %v2467_v32, %v2447_v41  ;;  %v164_v52 = vld [vmem:[%s12203_s1 + $0x150] sm:$0x77] }
 0x2b8   :  { %3246 = vmatmul.f32.vlgmr.msra.gmra.mxu0 %v10275_v43  ;;  %3266 = vmatmul.f32.vlgmr.msra.gmra.mxu1 %v10277_v44  ;;  %1567 = vst [vmem:[#allocation1 + $0x10] ss:$2 sm:$0xff] %v155_v46  ;;  %v157_v43 = vld [vmem:[%s12203_s1 + $0x118] sm:$0x77]  ;;  %v170_v41 = vld [vmem:[%s12203_s1 + $0x180] sm:$0x77] }
 0x2b9   :  { %3405 = vmatpush.xpose.msra.mxu0 %v1546_v9  ;;  %3425 = vmatpush.xpose.msra.mxu1 %v1547_v63  ;;  %v1564_v44 = vld.sshfl [vmem:[#allocation1 + $0x30] sm:$0xff pattern:$0x75316420]  ;;  %v1562_v3 = vld.sshfl [vmem:[#allocation1 + $0x20] sm:$0xff pattern:$0x75316420] }
 0x2ba   :  { %v1563_v11 = vld.sshfl [vmem:[#allocation1 + $0x28] sm:$0xff pattern:$0x75316420]  ;;  %1569 = vst [vmem:[#allocation1 + $0x30] ss:$2 sm:$0xff] %v157_v43  ;;  %v2487_v26 = vpop.f32.mrf.mxu2  ;;  %v2507_v9 = vpop.f32.mrf.mxu3  ;;  %v12551_v46 = vld [vmem:[#allocation34_spill] sm:$0xff] }
 0x2bb   :  { %v2488_v48 = vadd.f32 %v2487_v26, %v2468_v18  ;;  %v12549_v63 = vld [vmem:[#allocation9_spill] sm:$0xff]  ;;  %v12552_v8 = vld [vmem:[#allocation35_spill] sm:$0xff] }
 0x2be   :  { %3366 = vmatmul.f32.vlgmr.msrb.gmra.mxu2 %v10334_v22  ;;  %3386 = vmatmul.f32.vlgmr.msrb.gmra.mxu3 %v10336_v27  ;;  %v156_v22 = vld [vmem:[%s12203_s1 + $0x110] sm:$0x77]  ;;  %v159_v27 = vld [vmem:[%s12203_s1 + $0x128] sm:$0x77] }
 0x2bf   :  { %3525 = vmatpush.xpose.msrb.mxu2 %v1552_v33  ;;  %3545 = vmatpush.xpose.msrb.mxu3 %v1553_v34  ;;  %1568 = vst [vmem:[#allocation1 + $0x20] ss:$2 sm:$0xff] %v156_v22  ;;  %v1570_v1 = vld.sshfl [vmem:[#allocation1] sm:$0xff pattern:$0x75316420]  ;;  %v2508_v34 = vadd.f32 %v2507_v9, %v2488_v48 }
 0x2c0   :  { %3326 = vmatmul.f32.vlgmr.msrb.gmra.mxu0 %v10330_v12  ;;  %3346 = vmatmul.f32.vlgmr.msrb.gmra.mxu1 %v10332_v17  ;;  %v1572_v12 = vld.sshfl [vmem:[#allocation1 + $0x10] sm:$0xff pattern:$0x75316420]  ;;  %v1573_v17 = vld.sshfl [vmem:[#allocation1 + $0x18] sm:$0xff pattern:$0x75316420] }
 0x2c1   :  { %3485 = vmatpush.xpose.msrb.mxu0 %v1550_v10  ;;  %3505 = vmatpush.xpose.msrb.mxu1 %v1551_v60  ;;  %1579 = vst [vmem:[#allocation1 + $0x10] ss:$2 sm:$0xff] %v159_v27  ;;  %v1576_v5 = vld.sshfl [vmem:[#allocation1 + $0x30] sm:$0xff pattern:$0x75316420] }
 0x2c2   :  { %v1577_v30 = vld.sshfl [vmem:[#allocation1 + $0x38] sm:$0xff pattern:$0x75316420]  ;;  %v172_v9 = vld [vmem:[%s12203_s1 + $0x190] sm:$0x77] }
 0x2c3   :  { %1581 = vst [vmem:[#allocation1 + $0x30] ss:$2 sm:$0xff] %v161_v31  ;;  %v12557_v31 = vld [vmem:[#allocation16_spill] sm:$0xff] }
 0x2c6   :  { %3446 = vmatmul.f32.vlgmr.msra.gmra.mxu2 %v10301_v55  ;;  %3466 = vmatmul.f32.vlgmr.msra.gmra.mxu3 %v10303_v56  ;;  %v12536_v55 = vld [vmem:[#allocation15_spill] sm:$0xff]  ;;  %v1571_v56 = vld.sshfl [vmem:[#allocation1 + $0x8] sm:$0xff pattern:$0x75316420] }
 0x2c7   :  { %3605 = vmatpush.xpose.msra.mxu2 %v1560_v59  ;;  %3625 = vmatpush.xpose.msra.mxu3 %v1561_v7  ;;  %v1574_v42 = vld.sshfl [vmem:[#allocation1 + $0x20] sm:$0xff pattern:$0x75316420] }
 0x2c8   :  { %3406 = vmatmul.f32.vlgmr.msra.gmra.mxu0 %v10297_v53  ;;  %3426 = vmatmul.f32.vlgmr.msra.gmra.mxu1 %v10299_v54  ;;  %v158_v53 = vld [vmem:[%s12203_s1 + $0x120] sm:$0x77]  ;;  %v12537_v54 = vld [vmem:[#allocation13_spill] sm:$0xff]  ;;  %v1585_v13 = vld.sshfl [vmem:[#allocation1 + $0x18] sm:$0xff pattern:$0x75316420] }
 0x2c9   :  { %3565 = vmatpush.xpose.msra.mxu0 %v1558_v61  ;;  %3585 = vmatpush.xpose.msra.mxu1 %v1559_v45  ;;  %1578 = vst [vmem:[#allocation1] ss:$2 sm:$0xff] %v158_v53  ;;  %v1584_v47 = vld.sshfl [vmem:[#allocation1 + $0x10] sm:$0xff pattern:$0x75316420] }
 0x2ca   :  { %1591 = vst [vmem:[#allocation1 + $0x10] ss:$2 sm:$0xff] %v163_v0  ;;  %v1588_v25 = vld.sshfl [vmem:[#allocation1 + $0x30] sm:$0xff pattern:$0x75316420] }
 0x2cb   :  { %v1589_v23 = vld.sshfl [vmem:[#allocation1 + $0x38] sm:$0xff pattern:$0x75316420]  ;;  %v166_v59 = vld [vmem:[%s12203_s1 + $0x160] sm:$0x77] }
 0x2cc   :  { %1593 = vst [vmem:[#allocation1 + $0x30] ss:$2 sm:$0xff] %v165_v24 }
 0x2ce   :  { %3526 = vmatmul.f32.vlgmr.msrb.gmra.mxu2 %v10359_v37  ;;  %3546 = vmatmul.f32.vlgmr.msrb.gmra.mxu3 %v12536_v55  ;;  %v1575_v37 = vld.sshfl [vmem:[#allocation1 + $0x28] sm:$0xff pattern:$0x75316420] }
 0x2cf   :  { %3685 = vmatpush.xpose.msrb.mxu2 %v1564_v44  ;;  %3705 = vmatpush.xpose.msrb.mxu3 %v1565_v4  ;;  %1580 = vst [vmem:[#allocation1 + $0x20] ss:$2 sm:$0xff] %v160_v28  ;;  %v12553_v44 = vld [vmem:[#allocation32_spill] sm:$0xff]  ;;  %v12554_v4 = vld [vmem:[#allocation33_spill] sm:$0xff] }
 0x2d0   :  { %3486 = vmatmul.f32.vlgmr.msrb.gmra.mxu0 %v12537_v54  ;;  %3506 = vmatmul.f32.vlgmr.msrb.gmra.mxu1 %v12538_v2  ;;  %v1582_v14 = vld.sshfl [vmem:[#allocation1] sm:$0xff pattern:$0x75316420]  ;;  %v1583_v20 = vld.sshfl [vmem:[#allocation1 + $0x8] sm:$0xff pattern:$0x75316420] }
 0x2d1   :  { %3645 = vmatpush.xpose.msrb.mxu0 %v1562_v3  ;;  %3665 = vmatpush.xpose.msrb.mxu1 %v1563_v11  ;;  %1590 = vst [vmem:[#allocation1] ss:$2 sm:$0xff] %v162_v6  ;;  %v1596_v33 = vld.sshfl [vmem:[#allocation1 + $0x10] sm:$0xff pattern:$0x75316420] }
 0x2d2   :  { %v1597_v10 = vld.sshfl [vmem:[#allocation1 + $0x18] sm:$0xff pattern:$0x75316420]  ;;  %v168_v2 = vld [vmem:[%s12203_s1 + $0x170] sm:$0x77] }
 0x2d3   :  { %1603 = vst [vmem:[#allocation1 + $0x10] ss:$2 sm:$0xff] %v167_v58  ;;  %v1601_v27 = vld.sshfl [vmem:[#allocation1 + $0x38] sm:$0xff pattern:$0x75316420]  ;;  %v12558_v28 = vld [vmem:[#allocation17_spill] sm:$0xff] }
 0x2d4   :  { %v12566_v58 = vld [vmem:[#allocation21_spill] sm:$0xff] }
 0x2d6   :  { %3606 = vmatmul.f32.vlgmr.msra.gmra.mxu2 %v12539_v29  ;;  %3626 = vmatmul.f32.vlgmr.msra.gmra.mxu3 %v12540_v15  ;;  %v1586_v50 = vld.sshfl [vmem:[#allocation1 + $0x20] sm:$0xff pattern:$0x75316420]  ;;  %v1587_v49 = vld.sshfl [vmem:[#allocation1 + $0x28] sm:$0xff pattern:$0x75316420] }
 0x2d7   :  { %3765 = vmatpush.xpose.msra.mxu2 %v1572_v12  ;;  %3785 = vmatpush.xpose.msra.mxu3 %v1573_v17  ;;  %1592 = vst [vmem:[#allocation1 + $0x20] ss:$2 sm:$0xff] %v164_v52  ;;  %v169_v12 = vld [vmem:[%s12203_s1 + $0x178] sm:$0x77] }
 0x2d8   :  { %3566 = vmatmul.f32.vlgmr.msra.gmra.mxu0 %v12541_v16  ;;  %3586 = vmatmul.f32.vlgmr.msra.gmra.mxu1 %v12542_v57  ;;  %v1594_v36 = vld.sshfl [vmem:[#allocation1] sm:$0xff pattern:$0x75316420]  ;;  %v1595_v60 = vld.sshfl [vmem:[#allocation1 + $0x8] sm:$0xff pattern:$0x75316420] }
 0x2d9   :  { %3725 = vmatpush.xpose.msra.mxu0 %v1570_v1  ;;  %3745 = vmatpush.xpose.msra.mxu1 %v1571_v56  ;;  %1602 = vst [vmem:[#allocation1] ss:$2 sm:$0xff] %v166_v59  ;;  %v1600_v17 = vld.sshfl [vmem:[#allocation1 + $0x30] sm:$0xff pattern:$0x75316420] }
 0x2da   :  { %1605 = vst [vmem:[#allocation1 + $0x30] ss:$2 sm:$0xff] %v169_v12  ;;  %v1608_v16 = vld.sshfl [vmem:[#allocation1 + $0x10] sm:$0xff pattern:$0x75316420] }
 0x2db   :  { %v1609_v0 = vld.sshfl [vmem:[#allocation1 + $0x18] sm:$0xff pattern:$0x75316420] }
 0x2de   :  { %3686 = vmatmul.f32.vlgmr.msrb.gmra.mxu2 %v12543_v21  ;;  %3706 = vmatmul.f32.vlgmr.msrb.gmra.mxu3 %v12544_v40  ;;  %v1598_v55 = vld.sshfl [vmem:[#allocation1 + $0x20] sm:$0xff pattern:$0x75316420]  ;;  %v1599_v56 = vld.sshfl [vmem:[#allocation1 + $0x28] sm:$0xff pattern:$0x75316420] }
 0x2df   :  { %3845 = vmatpush.xpose.msrb.mxu2 %v1576_v5  ;;  %3865 = vmatpush.xpose.msrb.mxu3 %v1577_v30  ;;  %v12556_v30 = vld [vmem:[#allocation19_spill] sm:$0xff]  ;;  %1604 = vst [vmem:[#allocation1 + $0x20] ss:$2 sm:$0xff] %v168_v2  ;;  %v12559_v40 = vld [vmem:[#allocation42_spill] sm:$0xff] }
 0x2e0   :  { %3646 = vmatmul.f32.vlgmr.msrb.gmra.mxu0 %v12545_v38  ;;  %3666 = vmatmul.f32.vlgmr.msrb.gmra.mxu1 %v12546_v39  ;;  %v1606_v6 = vld.sshfl [vmem:[#allocation1] sm:$0xff pattern:$0x75316420]  ;;  %v1607_v39 = vld.sshfl [vmem:[#allocation1 + $0x8] sm:$0xff pattern:$0x75316420] }
 0x2e1   :  { %3805 = vmatpush.xpose.msrb.mxu0 %v1574_v42  ;;  %3825 = vmatpush.xpose.msrb.mxu1 %v1575_v37  ;;  %v12555_v42 = vld [vmem:[#allocation18_spill] sm:$0xff]  ;;  %v12560_v38 = vld [vmem:[#allocation43_spill] sm:$0xff]  ;;  %1614 = vst [vmem:[#allocation1] ss:$2 sm:$0xff] %v170_v41 }
 0x2e2   :  { %v1612_v18 = vld.sshfl [vmem:[#allocation1 + $0x30] sm:$0xff pattern:$0x75316420] }
 0x2e6   :  { %3766 = vmatmul.f32.vlgmr.msra.gmra.mxu2 %v12547_v51  ;;  %3786 = vmatmul.f32.vlgmr.msra.gmra.mxu3 %v12548_v19  ;;  %v1610_v51 = vld.sshfl [vmem:[#allocation1 + $0x20] sm:$0xff pattern:$0x75316420]  ;;  %v1613_v19 = vld.sshfl [vmem:[#allocation1 + $0x38] sm:$0xff pattern:$0x75316420] }
 0x2e7   :  { %3925 = vmatpush.xpose.msra.mxu2 %v1584_v47  ;;  %3945 = vmatpush.xpose.msra.mxu3 %v1585_v13  ;;  %v171_v47 = vld [vmem:[%s12203_s1 + $0x188] sm:$0x77] }
 0x2e8   :  { %3726 = vmatmul.f32.vlgmr.msra.gmra.mxu0 %v12549_v63  ;;  %3746 = vmatmul.f32.vlgmr.msra.gmra.mxu1 %v12550_v35  ;;  %1615 = vst [vmem:[#allocation1 + $0x10] ss:$2 sm:$0xff] %v171_v47  ;;  %v1611_v48 = vld.sshfl [vmem:[#allocation1 + $0x28] sm:$0xff pattern:$0x75316420] }
 0x2e9   :  { %3885 = vmatpush.xpose.msra.mxu0 %v1582_v14  ;;  %3905 = vmatpush.xpose.msra.mxu1 %v1583_v20  ;;  %1616 = vst [vmem:[#allocation1 + $0x20] ss:$2 sm:$0xff] %v172_v9  ;;  %v176_v47 = vld [vmem:[%s12203_s1 + $0x1b0] sm:$0x77] }
 0x2ec   :  { %v2527_v61 = vpop.f32.mrf.mxu0  ;;  %v2547_v7 = vpop.f32.mrf.mxu1 }
 0x2ed   :  { %v2528_v45 = vadd.f32 %v2527_v61, %v2508_v34  ;;  %v12563_v34 = vld [vmem:[#allocation22_spill] sm:$0xff] }
 0x2ee   :  { %3846 = vmatmul.f32.vlgmr.msrb.gmra.mxu2 %v12551_v46  ;;  %3866 = vmatmul.f32.vlgmr.msrb.gmra.mxu3 %v12552_v8 }
 0x2ef   :  { %4005 = vmatpush.xpose.msrb.mxu2 %v1588_v25  ;;  %4025 = vmatpush.xpose.msrb.mxu3 %v1589_v23  ;;  %v2548_v43 = vadd.f32 %v2547_v7, %v2528_v45  ;;  %v12561_v25 = vld [vmem:[#allocation40_spill] sm:$0xff]  ;;  %v12562_v23 = vld [vmem:[#allocation41_spill] sm:$0xff]  ;;  %v1621_v8 = vld.sshfl [vmem:[#allocation1 + $0x18] sm:$0xff pattern:$0x75316420] }
 0x2f0   :  { %3806 = vmatmul.f32.vlgmr.msrb.gmra.mxu0 %v12553_v44  ;;  %3826 = vmatmul.f32.vlgmr.msrb.gmra.mxu1 %v12554_v4  ;;  %v175_v45 = vld [vmem:[%s12203_s1 + $0x1a8] sm:$0x77]  ;;  %v1620_v46 = vld.sshfl [vmem:[#allocation1 + $0x10] sm:$0xff pattern:$0x75316420] }
 0x2f1   :  { %v2567_v3 = vpop.f32.mrf.mxu2  ;;  %v2587_v11 = vpop.f32.mrf.mxu3  ;;  %3965 = vmatpush.xpose.msrb.mxu0 %v1586_v50  ;;  %3985 = vmatpush.xpose.msrb.mxu1 %v1587_v49  ;;  %v173_v49 = vld [vmem:[%s12203_s1 + $0x198] sm:$0x77]  ;;  %v1618_v44 = vld.sshfl [vmem:[#allocation1] sm:$0xff pattern:$0x75316420] }
 0x2f2   :  { %v2568_v22 = vadd.f32 %v2567_v3, %v2548_v43  ;;  %1617 = vst [vmem:[#allocation1 + $0x30] ss:$2 sm:$0xff] %v173_v49  ;;  %v1619_v4 = vld.sshfl [vmem:[#allocation1 + $0x8] sm:$0xff pattern:$0x75316420] }
 0x2f3   :  { %1627 = vst [vmem:[#allocation1 + $0x10] ss:$2 sm:$0xff] %v175_v45  ;;  %v12577_v49 = vld [vmem:[#allocation56_spill] sm:$0xff] }
 0x2f4   :  { %v2588_v1 = vadd.f32 %v2587_v11, %v2568_v22  ;;  %v174_v22 = vld [vmem:[%s12203_s1 + $0x1a0] sm:$0x77] }
 0x2f5   :  { %v2607_v53 = vpop.f32.mrf.mxu0  ;;  %v2627_v54 = vpop.f32.mrf.mxu1  ;;  %1626 = vst [vmem:[#allocation1] ss:$2 sm:$0xff] %v174_v22 }
 0x2f6   :  { %v2608_v5 = vadd.f32 %v2607_v53, %v2588_v1  ;;  %3926 = vmatmul.f32.vlgmr.msra.gmra.mxu2 %v12555_v42  ;;  %3946 = vmatmul.f32.vlgmr.msra.gmra.mxu3 %v12556_v30  ;;  %v177_v30 = vld [vmem:[%s12203_s1 + $0x1b8] sm:$0x77] }
 0x2f7   :  { %4085 = vmatpush.xpose.msra.mxu2 %v1596_v33  ;;  %4105 = vmatpush.xpose.msra.mxu3 %v1597_v10 }
 0x2f8   :  { %v2628_v37 = vadd.f32 %v2627_v54, %v2608_v5  ;;  %3886 = vmatmul.f32.vlgmr.msra.gmra.mxu0 %v12557_v31  ;;  %3906 = vmatmul.f32.vlgmr.msra.gmra.mxu1 %v12558_v28 }
 0x2f9   :  { %v2647_v29 = vpop.f32.mrf.mxu2  ;;  %v2667_v15 = vpop.f32.mrf.mxu3  ;;  %4045 = vmatpush.xpose.msra.mxu0 %v1594_v36  ;;  %4065 = vmatpush.xpose.msra.mxu1 %v1595_v60  ;;  %v12564_v36 = vld [vmem:[#allocation23_spill] sm:$0xff]  ;;  %v12565_v60 = vld [vmem:[#allocation20_spill] sm:$0xff]  ;;  %v1624_v2 = vld.sshfl [vmem:[#allocation1 + $0x30] sm:$0xff pattern:$0x75316420] }
 0x2fa   :  { %v2648_v57 = vadd.f32 %v2647_v29, %v2628_v37  ;;  %v1625_v42 = vld.sshfl [vmem:[#allocation1 + $0x38] sm:$0xff pattern:$0x75316420]  ;;  %v1622_v29 = vld.sshfl [vmem:[#allocation1 + $0x20] sm:$0xff pattern:$0x75316420] }
 0x2fb   :  { %1629 = vst [vmem:[#allocation1 + $0x30] ss:$2 sm:$0xff] %v177_v30  ;;  %v1633_v41 = vld.sshfl [vmem:[#allocation1 + $0x18] sm:$0xff pattern:$0x75316420] }
 0x2fc   :  { %v2668_v13 = vadd.f32 %v2667_v15, %v2648_v57  ;;  %v12572_v57 = vld [vmem:[#allocation31_spill] sm:$0xff] }
 0x2fd   :  { %v2687_v14 = vpop.f32.mrf.mxu0  ;;  %v2707_v20 = vpop.f32.mrf.mxu1  ;;  %v182_v30 = vld [vmem:[%s12203_s1 + $0x1e0] sm:$0x77] }
 0x2fe   :  { %v2688_v21 = vadd.f32 %v2687_v14, %v2668_v13  ;;  %4006 = vmatmul.f32.vlgmr.msrb.gmra.mxu2 %v12559_v40  ;;  %4026 = vmatmul.f32.vlgmr.msrb.gmra.mxu3 %v12560_v38  ;;  %v12573_v14 = vld [vmem:[#allocation28_spill] sm:$0xff]  ;;  %v1632_v40 = vld.sshfl [vmem:[#allocation1 + $0x10] sm:$0xff pattern:$0x75316420] }
 0x2ff   :  { %4165 = vmatpush.xpose.msrb.mxu2 %v1600_v17  ;;  %4185 = vmatpush.xpose.msrb.mxu3 %v1601_v27  ;;  %v12567_v17 = vld [vmem:[#allocation50_spill] sm:$0xff]  ;;  %v12568_v27 = vld [vmem:[#allocation51_spill] sm:$0xff] }
 0x300   :  { %v2708_v32 = vadd.f32 %v2707_v20, %v2688_v21  ;;  %3966 = vmatmul.f32.vlgmr.msrb.gmra.mxu0 %v12561_v25  ;;  %3986 = vmatmul.f32.vlgmr.msrb.gmra.mxu1 %v12562_v23  ;;  %v12574_v20 = vld [vmem:[#allocation29_spill] sm:$0xff] }
 0x301   :  { %v2727_v24 = vpop.f32.mrf.mxu2  ;;  %v2747_v26 = vpop.f32.mrf.mxu3  ;;  %4125 = vmatpush.xpose.msrb.mxu0 %v1598_v55  ;;  %4145 = vmatpush.xpose.msrb.mxu1 %v1599_v56  ;;  %v12569_v55 = vld [vmem:[#allocation48_spill] sm:$0xff]  ;;  %v12570_v56 = vld [vmem:[#allocation49_spill] sm:$0xff] }
 0x302   :  { %v2728_v50 = vadd.f32 %v2727_v24, %v2708_v32  ;;  %v1631_v32 = vld.sshfl [vmem:[#allocation1 + $0x8] sm:$0xff pattern:$0x75316420]  ;;  %v178_v24 = vld [vmem:[%s12203_s1 + $0x1c0] sm:$0x77] }
 0x303   :  { %v179_v25 = vld [vmem:[%s12203_s1 + $0x1c8] sm:$0x77] }
 0x304   :  { %v2748_v52 = vadd.f32 %v2747_v26, %v2728_v50  ;;  %1639 = vst [vmem:[#allocation1 + $0x10] ss:$2 sm:$0xff] %v179_v25  ;;  %v12589_v25 = vld [vmem:[#allocation44_spill] sm:$0xff] }
 0x305   :  { %v2767_v63 = vpop.f32.mrf.mxu0  ;;  %v2787_v35 = vpop.f32.mrf.mxu1 }
 0x306   :  { %v2768_v33 = vadd.f32 %v2767_v63, %v2748_v52  ;;  %4086 = vmatmul.f32.vlgmr.msra.gmra.mxu2 %v12563_v34  ;;  %4106 = vmatmul.f32.vlgmr.msra.gmra.mxu3 %v12564_v36  ;;  %v12578_v52 = vld [vmem:[#allocation57_spill] sm:$0xff]  ;;  %v1637_v36 = vld.sshfl [vmem:[#allocation1 + $0x38] sm:$0xff pattern:$0x75316420] }
 0x307   :  { %4245 = vmatpush.xpose.msra.mxu2 %v1608_v16  ;;  %4265 = vmatpush.xpose.msra.mxu3 %v1609_v0  ;;  %v12571_v16 = vld [vmem:[#allocation30_spill] sm:$0xff]  ;;  %v1623_v0 = vld.sshfl [vmem:[#allocation1 + $0x28] sm:$0xff pattern:$0x75316420] }
 0x308   :  { %v2788_v10 = vadd.f32 %v2787_v35, %v2768_v33  ;;  %4046 = vmatmul.f32.vlgmr.msra.gmra.mxu0 %v12565_v60  ;;  %4066 = vmatmul.f32.vlgmr.msra.gmra.mxu1 %v12566_v58  ;;  %1628 = vst [vmem:[#allocation1 + $0x20] ss:$2 sm:$0xff] %v176_v47  ;;  %v181_v33 = vld [vmem:[%s12203_s1 + $0x1d8] sm:$0x77] }
 0x309   :  { %v2807_v59 = vpop.f32.mrf.mxu2  ;;  %v2827_v61 = vpop.f32.mrf.mxu3  ;;  %4205 = vmatpush.xpose.msra.mxu0 %v1606_v6  ;;  %4225 = vmatpush.xpose.msra.mxu1 %v1607_v39  ;;  %v1630_v39 = vld.sshfl [vmem:[#allocation1] sm:$0xff pattern:$0x75316420]  ;;  %v1636_v34 = vld.sshfl [vmem:[#allocation1 + $0x30] sm:$0xff pattern:$0x75316420] }
 0x30a   :  { %v2808_v7 = vadd.f32 %v2807_v59, %v2788_v10  ;;  %1638 = vst [vmem:[#allocation1] ss:$2 sm:$0xff] %v178_v24 }
 0x30b   :  { %1641 = vst [vmem:[#allocation1 + $0x30] ss:$2 sm:$0xff] %v181_v33  ;;  %v1644_v22 = vld.sshfl [vmem:[#allocation1 + $0x10] sm:$0xff pattern:$0x75316420] }
 0x30c   :  { %v2828_v43 = vadd.f32 %v2827_v61, %v2808_v7  ;;  %v180_v7 = vld [vmem:[%s12203_s1 + $0x1d0] sm:$0x77] }
 0x30d   :  { %v2847_v3 = vpop.f32.mrf.mxu0  ;;  %v2867_v11 = vpop.f32.mrf.mxu1 }
 0x30e   :  { %v2848_v12 = vadd.f32 %v2847_v3, %v2828_v43  ;;  %4166 = vmatmul.f32.vlgmr.msrb.gmra.mxu2 %v12567_v17  ;;  %4186 = vmatmul.f32.vlgmr.msrb.gmra.mxu3 %v12568_v27  ;;  %v1645_v17 = vld.sshfl [vmem:[#allocation1 + $0x18] sm:$0xff pattern:$0x75316420]  ;;  %v183_v27 = vld [vmem:[%s12203_s1 + $0x1e8] sm:$0x77] }
 0x30f   :  { %4325 = vmatpush.xpose.msrb.mxu2 %v1612_v18  ;;  %4345 = vmatpush.xpose.msrb.mxu3 %v1613_v19  ;;  %v12576_v19 = vld [vmem:[#allocation59_spill] sm:$0xff]  ;;  %v1635_v58 = vld.sshfl [vmem:[#allocation1 + $0x28] sm:$0xff pattern:$0x75316420]  ;;  %1651 = vst [vmem:[#allocation1 + $0x10] ss:$2 sm:$0xff] %v183_v27 }
 0x310   :  { %v2868_v1 = vadd.f32 %v2867_v11, %v2848_v12  ;;  %4126 = vmatmul.f32.vlgmr.msrb.gmra.mxu0 %v12569_v55  ;;  %4146 = vmatmul.f32.vlgmr.msrb.gmra.mxu1 %v12570_v56  ;;  %v1634_v60 = vld.sshfl [vmem:[#allocation1 + $0x20] sm:$0xff pattern:$0x75316420]  ;;  %v188_v27 = vld [vmem:[%s12203_s1 + $0x210] sm:$0x77] }
 0x311   :  { %v2887_v53 = vpop.f32.mrf.mxu2  ;;  %v2907_v54 = vpop.f32.mrf.mxu3  ;;  %4285 = vmatpush.xpose.msrb.mxu0 %v1610_v51  ;;  %4305 = vmatpush.xpose.msrb.mxu1 %v1611_v48  ;;  %v12575_v51 = vld [vmem:[#allocation58_spill] sm:$0xff]  ;;  %1640 = vst [vmem:[#allocation1 + $0x20] ss:$2 sm:$0xff] %v180_v7 }
 0x312   :  { %v2888_v5 = vadd.f32 %v2887_v53, %v2868_v1  ;;  %v1642_v53 = vld.sshfl [vmem:[#allocation1] sm:$0xff pattern:$0x75316420]  ;;  %v1649_v47 = vld.sshfl [vmem:[#allocation1 + $0x38] sm:$0xff pattern:$0x75316420] }
 0x314   :  { %v2908_v37 = vadd.f32 %v2907_v54, %v2888_v5  ;;  %v12584_v5 = vld [vmem:[#allocation67_spill] sm:$0xff] }
 0x315   :  { %v2927_v31 = vpop.f32.mrf.mxu0  ;;  %v2947_v28 = vpop.f32.mrf.mxu1 }
 0x316   :  { %v2928_v15 = vadd.f32 %v2927_v31, %v2908_v37  ;;  %4246 = vmatmul.f32.vlgmr.msra.gmra.mxu2 %v12571_v16  ;;  %4266 = vmatmul.f32.vlgmr.msra.gmra.mxu3 %v12572_v57  ;;  %v12585_v31 = vld [vmem:[#allocation64_spill] sm:$0xff]  ;;  %v1648_v16 = vld.sshfl [vmem:[#allocation1 + $0x30] sm:$0xff pattern:$0x75316420] }
 0x317   :  { %4405 = vmatpush.xpose.msra.mxu2 %v1620_v46  ;;  %4425 = vmatpush.xpose.msra.mxu3 %v1621_v8  ;;  %v12579_v46 = vld [vmem:[#allocation38_spill] sm:$0xff]  ;;  %v12580_v8 = vld [vmem:[#allocation39_spill] sm:$0xff] }
 0x318   :  { %v2948_v13 = vadd.f32 %v2947_v28, %v2928_v15  ;;  %4206 = vmatmul.f32.vlgmr.msra.gmra.mxu0 %v12573_v14  ;;  %4226 = vmatmul.f32.vlgmr.msra.gmra.mxu1 %v12574_v20  ;;  %v12586_v28 = vld [vmem:[#allocation65_spill] sm:$0xff]  ;;  %v185_v14 = vld [vmem:[%s12203_s1 + $0x1f8] sm:$0x77] }
 0x319   :  { %v2967_v6 = vpop.f32.mrf.mxu2  ;;  %v2987_v21 = vpop.f32.mrf.mxu3  ;;  %4365 = vmatpush.xpose.msra.mxu0 %v1618_v44  ;;  %4385 = vmatpush.xpose.msra.mxu1 %v1619_v4  ;;  %v12581_v44 = vld [vmem:[#allocation36_spill] sm:$0xff]  ;;  %v12582_v4 = vld [vmem:[#allocation37_spill] sm:$0xff]  ;;  %1653 = vst [vmem:[#allocation1 + $0x30] ss:$2 sm:$0xff] %v185_v14 }
 0x31a   :  { %v2968_v38 = vadd.f32 %v2967_v6, %v2948_v13  ;;  %v1647_v13 = vld.sshfl [vmem:[#allocation1 + $0x28] sm:$0xff pattern:$0x75316420]  ;;  %v184_v6 = vld [vmem:[%s12203_s1 + $0x1f0] sm:$0x77] }
 0x31b   :  { %v12601_v14 = vld [vmem:[#allocation80_spill] sm:$0xff] }
 0x31c   :  { %v2988_v23 = vadd.f32 %v2987_v21, %v2968_v38 }
 0x31d   :  { %v3007_v26 = vpop.f32.mrf.mxu0  ;;  %v3027_v18 = vpop.f32.mrf.mxu1 }
 0x31e   :  { %v3008_v50 = vadd.f32 %v3007_v26, %v2988_v23  ;;  %4326 = vmatmul.f32.vlgmr.msrb.gmra.mxu2 %v12575_v51  ;;  %4346 = vmatmul.f32.vlgmr.msrb.gmra.mxu3 %v12576_v19  ;;  %v12590_v23 = vld [vmem:[#allocation45_spill] sm:$0xff]  ;;  %v1657_v19 = vld.sshfl [vmem:[#allocation1 + $0x18] sm:$0xff pattern:$0x75316420] }
 0x31f   :  { %4485 = vmatpush.xpose.msrb.mxu2 %v1624_v2  ;;  %4505 = vmatpush.xpose.msrb.mxu3 %v1625_v42  ;;  %v12583_v2 = vld [vmem:[#allocation66_spill] sm:$0xff]  ;;  %v1643_v42 = vld.sshfl [vmem:[#allocation1 + $0x8] sm:$0xff pattern:$0x75316420] }
 0x320   :  { %v3028_v48 = vadd.f32 %v3027_v18, %v3008_v50  ;;  %4286 = vmatmul.f32.vlgmr.msrb.gmra.mxu0 %v12577_v49  ;;  %4306 = vmatmul.f32.vlgmr.msrb.gmra.mxu1 %v12578_v52  ;;  %1650 = vst [vmem:[#allocation1] ss:$2 sm:$0xff] %v182_v30  ;;  %v187_v50 = vld [vmem:[%s12203_s1 + $0x208] sm:$0x77] }
 0x321   :  { %v3047_v9 = vpop.f32.mrf.mxu2  ;;  %v3067_v63 = vpop.f32.mrf.mxu3  ;;  %4445 = vmatpush.xpose.msrb.mxu0 %v1622_v29  ;;  %4465 = vmatpush.xpose.msrb.mxu1 %v1623_v0  ;;  %v1646_v0 = vld.sshfl [vmem:[#allocation1 + $0x20] sm:$0xff pattern:$0x75316420]  ;;  %v1656_v51 = vld.sshfl [vmem:[#allocation1 + $0x10] sm:$0xff pattern:$0x75316420] }
 0x322   :  { %v3048_v35 = vadd.f32 %v3047_v9, %v3028_v48  ;;  %1652 = vst [vmem:[#allocation1 + $0x20] ss:$2 sm:$0xff] %v184_v6  ;;  %v1660_v7 = vld.sshfl [vmem:[#allocation1 + $0x30] sm:$0xff pattern:$0x75316420] }
 0x323   :  { %1663 = vst [vmem:[#allocation1 + $0x10] ss:$2 sm:$0xff] %v187_v50 }
 0x324   :  { %v3068_v10 = vadd.f32 %v3067_v63, %v3048_v35  ;;  %v186_v35 = vld [vmem:[%s12203_s1 + $0x200] sm:$0x77] }
 0x325   :  { %v3087_v59 = vpop.f32.mrf.mxu0  ;;  %v3107_v61 = vpop.f32.mrf.mxu1 }
 0x326   :  { %v3088_v45 = vadd.f32 %v3087_v59, %v3068_v10  ;;  %4406 = vmatmul.f32.vlgmr.msra.gmra.mxu2 %v12579_v46  ;;  %4426 = vmatmul.f32.vlgmr.msra.gmra.mxu3 %v12580_v8  ;;  %v1661_v46 = vld.sshfl [vmem:[#allocation1 + $0x38] sm:$0xff pattern:$0x75316420] }
 0x327   :  { %4565 = vmatpush.xpose.msra.mxu2 %v1632_v40  ;;  %4585 = vmatpush.xpose.msra.mxu3 %v1633_v41  ;;  %v12588_v41 = vld [vmem:[#allocation47_spill] sm:$0xff]  ;;  %v1655_v52 = vld.sshfl [vmem:[#allocation1 + $0x8] sm:$0xff pattern:$0x75316420] }
 0x328   :  { %v3108_v43 = vadd.f32 %v3107_v61, %v3088_v45  ;;  %4366 = vmatmul.f32.vlgmr.msra.gmra.mxu0 %v12581_v44  ;;  %4386 = vmatmul.f32.vlgmr.msra.gmra.mxu1 %v12582_v4  ;;  %v1654_v49 = vld.sshfl [vmem:[#allocation1] sm:$0xff pattern:$0x75316420]  ;;  %v189_v8 = vld [vmem:[%s12203_s1 + $0x218] sm:$0x77] }
 0x329   :  { %v3127_v3 = vpop.f32.mrf.mxu2  ;;  %v3147_v11 = vpop.f32.mrf.mxu3  ;;  %4525 = vmatpush.xpose.msra.mxu0 %v1630_v39  ;;  %4545 = vmatpush.xpose.msra.mxu1 %v1631_v32  ;;  %v12587_v39 = vld [vmem:[#allocation46_spill] sm:$0xff]  ;;  %1662 = vst [vmem:[#allocation1] ss:$2 sm:$0xff] %v186_v35 }
 0x32a   :  { %v3128_v12 = vadd.f32 %v3127_v3, %v3108_v43  ;;  %1665 = vst [vmem:[#allocation1 + $0x30] ss:$2 sm:$0xff] %v189_v8  ;;  %v1658_v3 = vld.sshfl [vmem:[#allocation1 + $0x20] sm:$0xff pattern:$0x75316420] }
 0x32b   :  { %v1669_v30 = vld.sshfl [vmem:[#allocation1 + $0x18] sm:$0xff pattern:$0x75316420]  ;;  %v194_v8 = vld [vmem:[%s12203_s1 + $0x240] sm:$0x77] }
 0x32c   :  { %v3148_v1 = vadd.f32 %v3147_v11, %v3128_v12  ;;  %v12596_v12 = vld [vmem:[#allocation55_spill] sm:$0xff] }
 0x32d   :  { %v3167_v55 = vpop.f32.mrf.mxu0  ;;  %v3187_v56 = vpop.f32.mrf.mxu1 }
 0x32e   :  { %v3168_v54 = vadd.f32 %v3167_v55, %v3148_v1  ;;  %4486 = vmatmul.f32.vlgmr.msrb.gmra.mxu2 %v12583_v2  ;;  %4506 = vmatmul.f32.vlgmr.msrb.gmra.mxu3 %v12584_v5  ;;  %v12597_v55 = vld [vmem:[#allocation52_spill] sm:$0xff]  ;;  %v1668_v2 = vld.sshfl [vmem:[#allocation1 + $0x10] sm:$0xff pattern:$0x75316420] }
 0x32f   :  { %4645 = vmatpush.xpose.msrb.mxu2 %v1636_v34  ;;  %4665 = vmatpush.xpose.msrb.mxu3 %v1637_v36  ;;  %v12591_v34 = vld [vmem:[#allocation74_spill] sm:$0xff]  ;;  %v12592_v36 = vld [vmem:[#allocation75_spill] sm:$0xff] }
 0x330   :  { %v3188_v37 = vadd.f32 %v3187_v56, %v3168_v54  ;;  %4446 = vmatmul.f32.vlgmr.msrb.gmra.mxu0 %v12585_v31  ;;  %4466 = vmatmul.f32.vlgmr.msrb.gmra.mxu1 %v12586_v28  ;;  %v12598_v56 = vld [vmem:[#allocation53_spill] sm:$0xff] }
 0x331   :  { %v3207_v29 = vpop.f32.mrf.mxu2  ;;  %v3227_v15 = vpop.f32.mrf.mxu3  ;;  %4605 = vmatpush.xpose.msrb.mxu0 %v1634_v60  ;;  %4625 = vmatpush.xpose.msrb.mxu1 %v1635_v58  ;;  %v12593_v60 = vld [vmem:[#allocation72_spill] sm:$0xff]  ;;  %v12594_v58 = vld [vmem:[#allocation73_spill] sm:$0xff] }
 0x332   :  { %v3208_v57 = vadd.f32 %v3207_v29, %v3188_v37  ;;  %v1667_v37 = vld.sshfl [vmem:[#allocation1 + $0x8] sm:$0xff pattern:$0x75316420]  ;;  %v190_v29 = vld [vmem:[%s12203_s1 + $0x220] sm:$0x77] }
 0x333   :  { %v191_v31 = vld [vmem:[%s12203_s1 + $0x228] sm:$0x77] }
 0x334   :  { %v3228_v20 = vadd.f32 %v3227_v15, %v3208_v57  ;;  %1675 = vst [vmem:[#allocation1 + $0x10] ss:$2 sm:$0xff] %v191_v31  ;;  %v12613_v31 = vld [vmem:[#allocation68_spill] sm:$0xff] }
 0x335   :  { %v3247_v21 = vpop.f32.mrf.mxu0  ;;  %v3267_v40 = vpop.f32.mrf.mxu1 }
 0x336   :  { %v3248_v38 = vadd.f32 %v3247_v21, %v3228_v20  ;;  %4566 = vmatmul.f32.vlgmr.msra.gmra.mxu2 %v12587_v39  ;;  %4586 = vmatmul.f32.vlgmr.msra.gmra.mxu3 %v12588_v41  ;;  %v12602_v20 = vld [vmem:[#allocation81_spill] sm:$0xff]  ;;  %v1673_v41 = vld.sshfl [vmem:[#allocation1 + $0x38] sm:$0xff pattern:$0x75316420] }
 0x337   :  { %4725 = vmatpush.xpose.msra.mxu2 %v1644_v22  ;;  %4745 = vmatpush.xpose.msra.mxu3 %v1645_v17  ;;  %v12595_v22 = vld [vmem:[#allocation54_spill] sm:$0xff]  ;;  %v1659_v17 = vld.sshfl [vmem:[#allocation1 + $0x28] sm:$0xff pattern:$0x75316420] }
 0x338   :  { %v3268_v32 = vadd.f32 %v3267_v40, %v3248_v38  ;;  %4526 = vmatmul.f32.vlgmr.msra.gmra.mxu0 %v12589_v25  ;;  %4546 = vmatmul.f32.vlgmr.msra.gmra.mxu1 %v12590_v23  ;;  %1664 = vst [vmem:[#allocation1 + $0x20] ss:$2 sm:$0xff] %v188_v27  ;;  %v193_v38 = vld [vmem:[%s12203_s1 + $0x238] sm:$0x77] }
 0x339   :  { %v3287_v24 = vpop.f32.mrf.mxu2  ;;  %v3307_v26 = vpop.f32.mrf.mxu3  ;;  %4685 = vmatpush.xpose.msra.mxu0 %v1642_v53  ;;  %4705 = vmatpush.xpose.msra.mxu1 %v1643_v42  ;;  %v1666_v42 = vld.sshfl [vmem:[#allocation1] sm:$0xff pattern:$0x75316420]  ;;  %v1672_v39 = vld.sshfl [vmem:[#allocation1 + $0x30] sm:$0xff pattern:$0x75316420] }
 0x33a   :  { %v3288_v18 = vadd.f32 %v3287_v24, %v3268_v32  ;;  %1674 = vst [vmem:[#allocation1] ss:$2 sm:$0xff] %v190_v29 }
 0x33b   :  { %1677 = vst [vmem:[#allocation1 + $0x30] ss:$2 sm:$0xff] %v193_v38  ;;  %v1680_v35 = vld.sshfl [vmem:[#allocation1 + $0x10] sm:$0xff pattern:$0x75316420] }
 0x33c   :  { %v3308_v48 = vadd.f32 %v3307_v26, %v3288_v18  ;;  %v192_v18 = vld [vmem:[%s12203_s1 + $0x230] sm:$0x77] }
 0x33d   :  { %v3327_v9 = vpop.f32.mrf.mxu0  ;;  %v3347_v63 = vpop.f32.mrf.mxu1 }
 0x33e   :  { %v3328_v33 = vadd.f32 %v3327_v9, %v3308_v48  ;;  %4646 = vmatmul.f32.vlgmr.msrb.gmra.mxu2 %v12591_v34  ;;  %4666 = vmatmul.f32.vlgmr.msrb.gmra.mxu3 %v12592_v36  ;;  %v1681_v34 = vld.sshfl [vmem:[#allocation1 + $0x18] sm:$0xff pattern:$0x75316420]  ;;  %v195_v36 = vld [vmem:[%s12203_s1 + $0x248] sm:$0x77] }
 0x33f   :  { %4805 = vmatpush.xpose.msrb.mxu2 %v1648_v16  ;;  %4825 = vmatpush.xpose.msrb.mxu3 %v1649_v47  ;;  %v12600_v47 = vld [vmem:[#allocation83_spill] sm:$0xff]  ;;  %v1671_v23 = vld.sshfl [vmem:[#allocation1 + $0x28] sm:$0xff pattern:$0x75316420]  ;;  %1687 = vst [vmem:[#allocation1 + $0x10] ss:$2 sm:$0xff] %v195_v36 }
 0x340   :  { %v3348_v10 = vadd.f32 %v3347_v63, %v3328_v33  ;;  %4606 = vmatmul.f32.vlgmr.msrb.gmra.mxu0 %v12593_v60  ;;  %4626 = vmatmul.f32.vlgmr.msrb.gmra.mxu1 %v12594_v58  ;;  %v1670_v25 = vld.sshfl [vmem:[#allocation1 + $0x20] sm:$0xff pattern:$0x75316420]  ;;  %v200_v36 = vld [vmem:[%s12203_s1 + $0x270] sm:$0x77] }
 0x341   :  { %v3367_v59 = vpop.f32.mrf.mxu2  ;;  %v3387_v61 = vpop.f32.mrf.mxu3  ;;  %4765 = vmatpush.xpose.msrb.mxu0 %v1646_v0  ;;  %4785 = vmatpush.xpose.msrb.mxu1 %v1647_v13  ;;  %v12599_v0 = vld [vmem:[#allocation82_spill] sm:$0xff]  ;;  %1676 = vst [vmem:[#allocation1 + $0x20] ss:$2 sm:$0xff] %v192_v18 }
 0x342   :  { %v3368_v45 = vadd.f32 %v3367_v59, %v3348_v10  ;;  %v1678_v59 = vld.sshfl [vmem:[#allocation1] sm:$0xff pattern:$0x75316420]  ;;  %v1685_v27 = vld.sshfl [vmem:[#allocation1 + $0x38] sm:$0xff pattern:$0x75316420] }
 0x344   :  { %v3388_v43 = vadd.f32 %v3387_v61, %v3368_v45  ;;  %v12608_v45 = vld [vmem:[#allocation91_spill] sm:$0xff] }
 0x345   :  { %v3407_v44 = vpop.f32.mrf.mxu0  ;;  %v3427_v4 = vpop.f32.mrf.mxu1 }
 0x346   :  { %v3408_v11 = vadd.f32 %v3407_v44, %v3388_v43  ;;  %4726 = vmatmul.f32.vlgmr.msra.gmra.mxu2 %v12595_v22  ;;  %4746 = vmatmul.f32.vlgmr.msra.gmra.mxu3 %v12596_v12  ;;  %v12609_v44 = vld [vmem:[#allocation88_spill] sm:$0xff]  ;;  %v1684_v22 = vld.sshfl [vmem:[#allocation1 + $0x30] sm:$0xff pattern:$0x75316420] }
 0x347   :  { %4885 = vmatpush.xpose.msra.mxu2 %v1656_v51  ;;  %4905 = vmatpush.xpose.msra.mxu3 %v1657_v19  ;;  %v12603_v51 = vld [vmem:[#allocation62_spill] sm:$0xff]  ;;  %v12604_v19 = vld [vmem:[#allocation63_spill] sm:$0xff] }
 0x348   :  { %v3428_v1 = vadd.f32 %v3427_v4, %v3408_v11  ;;  %4686 = vmatmul.f32.vlgmr.msra.gmra.mxu0 %v12597_v55  ;;  %4706 = vmatmul.f32.vlgmr.msra.gmra.mxu1 %v12598_v56  ;;  %v12610_v4 = vld [vmem:[#allocation89_spill] sm:$0xff]  ;;  %v197_v55 = vld [vmem:[%s12203_s1 + $0x258] sm:$0x77] }
 0x349   :  { %v3447_v53 = vpop.f32.mrf.mxu2  ;;  %v3467_v54 = vpop.f32.mrf.mxu3  ;;  %4845 = vmatpush.xpose.msra.mxu0 %v1654_v49  ;;  %4865 = vmatpush.xpose.msra.mxu1 %v1655_v52  ;;  %v12605_v49 = vld [vmem:[#allocation60_spill] sm:$0xff]  ;;  %v12606_v52 = vld [vmem:[#allocation61_spill] sm:$0xff]  ;;  %1689 = vst [vmem:[#allocation1 + $0x30] ss:$2 sm:$0xff] %v197_v55 }
 0x34a   :  { %v3448_v5 = vadd.f32 %v3447_v53, %v3428_v1  ;;  %v1683_v1 = vld.sshfl [vmem:[#allocation1 + $0x28] sm:$0xff pattern:$0x75316420]  ;;  %v196_v53 = vld [vmem:[%s12203_s1 + $0x250] sm:$0x77] }
 0x34b   :  { %v12625_v55 = vld [vmem:[#allocation104_spill] sm:$0xff] }
 0x34c   :  { %v3468_v28 = vadd.f32 %v3467_v54, %v3448_v5 }
 0x34d   :  { %v3487_v15 = vpop.f32.mrf.mxu0  ;;  %v3507_v16 = vpop.f32.mrf.mxu1 }
 0x34e   :  { %v3488_v57 = vadd.f32 %v3487_v15, %v3468_v28  ;;  %4806 = vmatmul.f32.vlgmr.msrb.gmra.mxu2 %v12599_v0  ;;  %4826 = vmatmul.f32.vlgmr.msrb.gmra.mxu3 %v12600_v47  ;;  %v12614_v28 = vld [vmem:[#allocation69_spill] sm:$0xff]  ;;  %v1693_v47 = vld.sshfl [vmem:[#allocation1 + $0x18] sm:$0xff pattern:$0x75316420] }
 0x34f   :  { %4965 = vmatpush.xpose.msrb.mxu2 %v1660_v7  ;;  %4985 = vmatpush.xpose.msrb.mxu3 %v1661_v46  ;;  %v12607_v7 = vld [vmem:[#allocation90_spill] sm:$0xff]  ;;  %v1679_v46 = vld.sshfl [vmem:[#allocation1 + $0x8] sm:$0xff pattern:$0x75316420] }
 0x350   :  { %v3508_v13 = vadd.f32 %v3507_v16, %v3488_v57  ;;  %4766 = vmatmul.f32.vlgmr.msrb.gmra.mxu0 %v12601_v14  ;;  %4786 = vmatmul.f32.vlgmr.msrb.gmra.mxu1 %v12602_v20  ;;  %1686 = vst [vmem:[#allocation1] ss:$2 sm:$0xff] %v194_v8  ;;  %v199_v57 = vld [vmem:[%s12203_s1 + $0x268] sm:$0x77] }
 0x351   :  { %v3527_v6 = vpop.f32.mrf.mxu2  ;;  %v3547_v21 = vpop.f32.mrf.mxu3  ;;  %4925 = vmatpush.xpose.msrb.mxu0 %v1658_v3  ;;  %4945 = vmatpush.xpose.msrb.mxu1 %v1659_v17  ;;  %v1682_v17 = vld.sshfl [vmem:[#allocation1 + $0x20] sm:$0xff pattern:$0x75316420]  ;;  %v1692_v0 = vld.sshfl [vmem:[#allocation1 + $0x10] sm:$0xff pattern:$0x75316420] }
 0x352   :  { %v3528_v40 = vadd.f32 %v3527_v6, %v3508_v13  ;;  %1688 = vst [vmem:[#allocation1 + $0x20] ss:$2 sm:$0xff] %v196_v53  ;;  %v1696_v18 = vld.sshfl [vmem:[#allocation1 + $0x30] sm:$0xff pattern:$0x75316420] }
 0x353   :  { %1699 = vst [vmem:[#allocation1 + $0x10] ss:$2 sm:$0xff] %v199_v57 }
 0x354   :  { %v3548_v32 = vadd.f32 %v3547_v21, %v3528_v40  ;;  %v198_v40 = vld [vmem:[%s12203_s1 + $0x260] sm:$0x77] }
 0x355   :  { %v3567_v24 = vpop.f32.mrf.mxu0  ;;  %v3587_v26 = vpop.f32.mrf.mxu1 }
 0x356   :  { %v3568_v50 = vadd.f32 %v3567_v24, %v3548_v32  ;;  %4886 = vmatmul.f32.vlgmr.msra.gmra.mxu2 %v12603_v51  ;;  %4906 = vmatmul.f32.vlgmr.msra.gmra.mxu3 %v12604_v19  ;;  %v1697_v51 = vld.sshfl [vmem:[#allocation1 + $0x38] sm:$0xff pattern:$0x75316420] }
 0x357   :  { %5045 = vmatpush.xpose.msra.mxu2 %v1668_v2  ;;  %5065 = vmatpush.xpose.msra.mxu3 %v1669_v30  ;;  %v12612_v30 = vld [vmem:[#allocation71_spill] sm:$0xff]  ;;  %v1691_v20 = vld.sshfl [vmem:[#allocation1 + $0x8] sm:$0xff pattern:$0x75316420] }
 0x358   :  { %v3588_v48 = vadd.f32 %v3587_v26, %v3568_v50  ;;  %4846 = vmatmul.f32.vlgmr.msra.gmra.mxu0 %v12605_v49  ;;  %4866 = vmatmul.f32.vlgmr.msra.gmra.mxu1 %v12606_v52  ;;  %v1690_v14 = vld.sshfl [vmem:[#allocation1] sm:$0xff pattern:$0x75316420]  ;;  %v201_v19 = vld [vmem:[%s12203_s1 + $0x278] sm:$0x77] }
 0x359   :  { %v3607_v9 = vpop.f32.mrf.mxu2  ;;  %v3627_v63 = vpop.f32.mrf.mxu3  ;;  %5005 = vmatpush.xpose.msra.mxu0 %v1666_v42  ;;  %5025 = vmatpush.xpose.msra.mxu1 %v1667_v37  ;;  %v12611_v42 = vld [vmem:[#allocation70_spill] sm:$0xff]  ;;  %1698 = vst [vmem:[#allocation1] ss:$2 sm:$0xff] %v198_v40 }
 0x35a   :  { %v3608_v33 = vadd.f32 %v3607_v9, %v3588_v48  ;;  %1701 = vst [vmem:[#allocation1 + $0x30] ss:$2 sm:$0xff] %v201_v19  ;;  %v1694_v9 = vld.sshfl [vmem:[#allocation1 + $0x20] sm:$0xff pattern:$0x75316420] }
 0x35b   :  { %v1705_v8 = vld.sshfl [vmem:[#allocation1 + $0x18] sm:$0xff pattern:$0x75316420]  ;;  %v206_v19 = vld [vmem:[%s12203_s1 + $0x2a0] sm:$0x77] }
 0x35c   :  { %v3628_v10 = vadd.f32 %v3627_v63, %v3608_v33  ;;  %v12620_v33 = vld [vmem:[#allocation79_spill] sm:$0xff] }
 0x35d   :  { %v3647_v60 = vpop.f32.mrf.mxu0  ;;  %v3667_v58 = vpop.f32.mrf.mxu1 }
 0x35e   :  { %v3648_v61 = vadd.f32 %v3647_v60, %v3628_v10  ;;  %4966 = vmatmul.f32.vlgmr.msrb.gmra.mxu2 %v12607_v7  ;;  %4986 = vmatmul.f32.vlgmr.msrb.gmra.mxu3 %v12608_v45  ;;  %v12621_v60 = vld [vmem:[#allocation76_spill] sm:$0xff]  ;;  %v1704_v7 = vld.sshfl [vmem:[#allocation1 + $0x10] sm:$0xff pattern:$0x75316420] }
 0x35f   :  { %5125 = vmatpush.xpose.msrb.mxu2 %v1672_v39  ;;  %5145 = vmatpush.xpose.msrb.mxu3 %v1673_v41  ;;  %v12615_v39 = vld [vmem:[#allocation98_spill] sm:$0xff]  ;;  %v12616_v41 = vld [vmem:[#allocation99_spill] sm:$0xff] }
 0x360   :  { %v3668_v43 = vadd.f32 %v3667_v58, %v3648_v61  ;;  %4926 = vmatmul.f32.vlgmr.msrb.gmra.mxu0 %v12609_v44  ;;  %4946 = vmatmul.f32.vlgmr.msrb.gmra.mxu1 %v12610_v4  ;;  %v12622_v58 = vld [vmem:[#allocation77_spill] sm:$0xff] }
 0x361   :  { %v3687_v3 = vpop.f32.mrf.mxu2  ;;  %v3707_v11 = vpop.f32.mrf.mxu3  ;;  %5085 = vmatpush.xpose.msrb.mxu0 %v1670_v25  ;;  %5105 = vmatpush.xpose.msrb.mxu1 %v1671_v23  ;;  %v12617_v25 = vld [vmem:[#allocation96_spill] sm:$0xff]  ;;  %v12618_v23 = vld [vmem:[#allocation97_spill] sm:$0xff] }
 0x362   :  { %v3688_v12 = vadd.f32 %v3687_v3, %v3668_v43  ;;  %v1703_v43 = vld.sshfl [vmem:[#allocation1 + $0x8] sm:$0xff pattern:$0x75316420]  ;;  %v202_v3 = vld [vmem:[%s12203_s1 + $0x280] sm:$0x77] }
 0x363   :  { %v203_v44 = vld [vmem:[%s12203_s1 + $0x288] sm:$0x77] }
 0x364   :  { %v3708_v56 = vadd.f32 %v3707_v11, %v3688_v12  ;;  %1711 = vst [vmem:[#allocation1 + $0x10] ss:$2 sm:$0xff] %v203_v44  ;;  %v12637_v44 = vld [vmem:[#allocation92_spill] sm:$0xff] }
 0x365   :  { %v3727_v54 = vpop.f32.mrf.mxu0  ;;  %v3747_v2 = vpop.f32.mrf.mxu1 }
 0x366   :  { %v3728_v5 = vadd.f32 %v3727_v54, %v3708_v56  ;;  %5046 = vmatmul.f32.vlgmr.msra.gmra.mxu2 %v12611_v42  ;;  %5066 = vmatmul.f32.vlgmr.msra.gmra.mxu3 %v12612_v30  ;;  %v12626_v56 = vld [vmem:[#allocation105_spill] sm:$0xff]  ;;  %v1709_v30 = vld.sshfl [vmem:[#allocation1 + $0x38] sm:$0xff pattern:$0x75316420] }
 0x367   :  { %5205 = vmatpush.xpose.msra.mxu2 %v1680_v35  ;;  %5225 = vmatpush.xpose.msra.mxu3 %v1681_v34  ;;  %v12619_v35 = vld [vmem:[#allocation78_spill] sm:$0xff]  ;;  %v1695_v34 = vld.sshfl [vmem:[#allocation1 + $0x28] sm:$0xff pattern:$0x75316420] }
 0x368   :  { %v3748_v37 = vadd.f32 %v3747_v2, %v3728_v5  ;;  %5006 = vmatmul.f32.vlgmr.msra.gmra.mxu0 %v12613_v31  ;;  %5026 = vmatmul.f32.vlgmr.msra.gmra.mxu1 %v12614_v28  ;;  %1700 = vst [vmem:[#allocation1 + $0x20] ss:$2 sm:$0xff] %v200_v36  ;;  %v205_v5 = vld [vmem:[%s12203_s1 + $0x298] sm:$0x77] }
 0x369   :  { %v3767_v29 = vpop.f32.mrf.mxu2  ;;  %v3787_v15 = vpop.f32.mrf.mxu3  ;;  %5165 = vmatpush.xpose.msra.mxu0 %v1678_v59  ;;  %5185 = vmatpush.xpose.msra.mxu1 %v1679_v46  ;;  %v1702_v46 = vld.sshfl [vmem:[#allocation1] sm:$0xff pattern:$0x75316420]  ;;  %v1708_v42 = vld.sshfl [vmem:[#allocation1 + $0x30] sm:$0xff pattern:$0x75316420] }
 0x36a   :  { %v3768_v16 = vadd.f32 %v3767_v29, %v3748_v37  ;;  %1710 = vst [vmem:[#allocation1] ss:$2 sm:$0xff] %v202_v3 }
 0x36b   :  { %1713 = vst [vmem:[#allocation1 + $0x30] ss:$2 sm:$0xff] %v205_v5  ;;  %v1716_v40 = vld.sshfl [vmem:[#allocation1 + $0x10] sm:$0xff pattern:$0x75316420] }
 0x36c   :  { %v3788_v13 = vadd.f32 %v3787_v15, %v3768_v16  ;;  %v204_v16 = vld [vmem:[%s12203_s1 + $0x290] sm:$0x77] }
 0x36d   :  { %v3807_v6 = vpop.f32.mrf.mxu0  ;;  %v3827_v21 = vpop.f32.mrf.mxu1 }
 0x36e   :  { %v3808_v38 = vadd.f32 %v3807_v6, %v3788_v13  ;;  %5126 = vmatmul.f32.vlgmr.msrb.gmra.mxu2 %v12615_v39  ;;  %5146 = vmatmul.f32.vlgmr.msrb.gmra.mxu3 %v12616_v41  ;;  %v1717_v39 = vld.sshfl [vmem:[#allocation1 + $0x18] sm:$0xff pattern:$0x75316420]  ;;  %v207_v41 = vld [vmem:[%s12203_s1 + $0x2a8] sm:$0x77] }
 0x36f   :  { %5285 = vmatpush.xpose.msrb.mxu2 %v1684_v22  ;;  %5305 = vmatpush.xpose.msrb.mxu3 %v1685_v27  ;;  %v12624_v27 = vld [vmem:[#allocation107_spill] sm:$0xff]  ;;  %v1707_v28 = vld.sshfl [vmem:[#allocation1 + $0x28] sm:$0xff pattern:$0x75316420]  ;;  %1723 = vst [vmem:[#allocation1 + $0x10] ss:$2 sm:$0xff] %v207_v41 }
 0x370   :  { %v3828_v32 = vadd.f32 %v3827_v21, %v3808_v38  ;;  %5086 = vmatmul.f32.vlgmr.msrb.gmra.mxu0 %v12617_v25  ;;  %5106 = vmatmul.f32.vlgmr.msrb.gmra.mxu1 %v12618_v23  ;;  %v1706_v31 = vld.sshfl [vmem:[#allocation1 + $0x20] sm:$0xff pattern:$0x75316420]  ;;  %v212_v41 = vld [vmem:[%s12203_s1 + $0x2d0] sm:$0x77] }
 0x371   :  { %v3847_v24 = vpop.f32.mrf.mxu2  ;;  %v3867_v26 = vpop.f32.mrf.mxu3  ;;  %5245 = vmatpush.xpose.msrb.mxu0 %v1682_v17  ;;  %5265 = vmatpush.xpose.msrb.mxu1 %v1683_v1  ;;  %v12623_v17 = vld [vmem:[#allocation106_spill] sm:$0xff]  ;;  %1712 = vst [vmem:[#allocation1 + $0x20] ss:$2 sm:$0xff] %v204_v16 }
 0x372   :  { %v3848_v50 = vadd.f32 %v3847_v24, %v3828_v32  ;;  %v1714_v24 = vld.sshfl [vmem:[#allocation1] sm:$0xff pattern:$0x75316420]  ;;  %v1721_v36 = vld.sshfl [vmem:[#allocation1 + $0x38] sm:$0xff pattern:$0x75316420] }
 0x374   :  { %v3868_v48 = vadd.f32 %v3867_v26, %v3848_v50  ;;  %v12632_v50 = vld [vmem:[#allocation115_spill] sm:$0xff] }
 0x375   :  { %v3887_v49 = vpop.f32.mrf.mxu0  ;;  %v3907_v52 = vpop.f32.mrf.mxu1 }
 0x376   :  { %v3888_v63 = vadd.f32 %v3887_v49, %v3868_v48  ;;  %5206 = vmatmul.f32.vlgmr.msra.gmra.mxu2 %v12619_v35  ;;  %5226 = vmatmul.f32.vlgmr.msra.gmra.mxu3 %v12620_v33  ;;  %v12633_v49 = vld [vmem:[#allocation112_spill] sm:$0xff]  ;;  %v1720_v35 = vld.sshfl [vmem:[#allocation1 + $0x30] sm:$0xff pattern:$0x75316420] }
 0x377   :  { %5365 = vmatpush.xpose.msra.mxu2 %v1692_v0  ;;  %5385 = vmatpush.xpose.msra.mxu3 %v1693_v47  ;;  %v12627_v0 = vld [vmem:[#allocation86_spill] sm:$0xff]  ;;  %v12628_v47 = vld [vmem:[#allocation87_spill] sm:$0xff] }
 0x378   :  { %v3908_v10 = vadd.f32 %v3907_v52, %v3888_v63  ;;  %5166 = vmatmul.f32.vlgmr.msra.gmra.mxu0 %v12621_v60  ;;  %5186 = vmatmul.f32.vlgmr.msra.gmra.mxu1 %v12622_v58  ;;  %v12634_v52 = vld [vmem:[#allocation113_spill] sm:$0xff]  ;;  %v209_v60 = vld [vmem:[%s12203_s1 + $0x2b8] sm:$0x77] }
 0x379   :  { %v3927_v59 = vpop.f32.mrf.mxu2  ;;  %v3947_v61 = vpop.f32.mrf.mxu3  ;;  %5325 = vmatpush.xpose.msra.mxu0 %v1690_v14  ;;  %5345 = vmatpush.xpose.msra.mxu1 %v1691_v20  ;;  %v12629_v14 = vld [vmem:[#allocation84_spill] sm:$0xff]  ;;  %v12630_v20 = vld [vmem:[#allocation85_spill] sm:$0xff]  ;;  %1725 = vst [vmem:[#allocation1 + $0x30] ss:$2 sm:$0xff] %v209_v60 }
 0x37a   :  { %v3928_v45 = vadd.f32 %v3927_v59, %v3908_v10  ;;  %v1719_v10 = vld.sshfl [vmem:[#allocation1 + $0x28] sm:$0xff pattern:$0x75316420]  ;;  %v208_v59 = vld [vmem:[%s12203_s1 + $0x2b0] sm:$0x77] }
 0x37b   :  { %v12649_v60 = vld [vmem:[#allocation128_spill] sm:$0xff] }
 0x37c   :  { %v3948_v4 = vadd.f32 %v3947_v61, %v3928_v45 }
 0x37d   :  { %v3967_v11 = vpop.f32.mrf.mxu0  ;;  %v3987_v22 = vpop.f32.mrf.mxu1 }
 0x37e   :  { %v3968_v12 = vadd.f32 %v3967_v11, %v3948_v4  ;;  %5286 = vmatmul.f32.vlgmr.msrb.gmra.mxu2 %v12623_v17  ;;  %5306 = vmatmul.f32.vlgmr.msrb.gmra.mxu3 %v12624_v27  ;;  %v12638_v4 = vld [vmem:[#allocation93_spill] sm:$0xff]  ;;  %v1729_v27 = vld.sshfl [vmem:[#allocation1 + $0x18] sm:$0xff pattern:$0x75316420] }
 0x37f   :  { %5445 = vmatpush.xpose.msrb.mxu2 %v1696_v18  ;;  %5465 = vmatpush.xpose.msrb.mxu3 %v1697_v51  ;;  %v12631_v18 = vld [vmem:[#allocation114_spill] sm:$0xff]  ;;  %v1715_v51 = vld.sshfl [vmem:[#allocation1 + $0x8] sm:$0xff pattern:$0x75316420] }
 0x380   :  { %v3988_v1 = vadd.f32 %v3987_v22, %v3968_v12  ;;  %5246 = vmatmul.f32.vlgmr.msrb.gmra.mxu0 %v12625_v55  ;;  %5266 = vmatmul.f32.vlgmr.msrb.gmra.mxu1 %v12626_v56  ;;  %1722 = vst [vmem:[#allocation1] ss:$2 sm:$0xff] %v206_v19  ;;  %v211_v12 = vld [vmem:[%s12203_s1 + $0x2c8] sm:$0x77] }
 0x381   :  { %v4007_v53 = vpop.f32.mrf.mxu2  ;;  %v4027_v54 = vpop.f32.mrf.mxu3  ;;  %5405 = vmatpush.xpose.msrb.mxu0 %v1694_v9  ;;  %5425 = vmatpush.xpose.msrb.mxu1 %v1695_v34  ;;  %v1718_v34 = vld.sshfl [vmem:[#allocation1 + $0x20] sm:$0xff pattern:$0x75316420]  ;;  %v1728_v17 = vld.sshfl [vmem:[#allocation1 + $0x10] sm:$0xff pattern:$0x75316420] }
 0x382   :  { %v4008_v2 = vadd.f32 %v4007_v53, %v3988_v1  ;;  %1724 = vst [vmem:[#allocation1 + $0x20] ss:$2 sm:$0xff] %v208_v59  ;;  %v1732_v16 = vld.sshfl [vmem:[#allocation1 + $0x30] sm:$0xff pattern:$0x75316420] }
 0x383   :  { %1735 = vst [vmem:[#allocation1 + $0x10] ss:$2 sm:$0xff] %v211_v12 }
 0x384   :  { %v4028_v37 = vadd.f32 %v4027_v54, %v4008_v2  ;;  %v210_v2 = vld [vmem:[%s12203_s1 + $0x2c0] sm:$0x77] }
 0x385   :  { %v4047_v29 = vpop.f32.mrf.mxu0  ;;  %v4067_v15 = vpop.f32.mrf.mxu1 }
 0x386   :  { %v4048_v57 = vadd.f32 %v4047_v29, %v4028_v37  ;;  %5366 = vmatmul.f32.vlgmr.msra.gmra.mxu2 %v12627_v0  ;;  %5386 = vmatmul.f32.vlgmr.msra.gmra.mxu3 %v12628_v47  ;;  %v1733_v0 = vld.sshfl [vmem:[#allocation1 + $0x38] sm:$0xff pattern:$0x75316420] }
 0x387   :  { %5525 = vmatpush.xpose.msra.mxu2 %v1704_v7  ;;  %5545 = vmatpush.xpose.msra.mxu3 %v1705_v8  ;;  %v12636_v8 = vld [vmem:[#allocation95_spill] sm:$0xff]  ;;  %v1727_v56 = vld.sshfl [vmem:[#allocation1 + $0x8] sm:$0xff pattern:$0x75316420] }
 0x388   :  { %v4068_v13 = vadd.f32 %v4067_v15, %v4048_v57  ;;  %5326 = vmatmul.f32.vlgmr.msra.gmra.mxu0 %v12629_v14  ;;  %5346 = vmatmul.f32.vlgmr.msra.gmra.mxu1 %v12630_v20  ;;  %v1726_v55 = vld.sshfl [vmem:[#allocation1] sm:$0xff pattern:$0x75316420]  ;;  %v213_v47 = vld [vmem:[%s12203_s1 + $0x2d8] sm:$0x77] }
 0x389   :  { %v4087_v6 = vpop.f32.mrf.mxu2  ;;  %v4107_v21 = vpop.f32.mrf.mxu3  ;;  %5485 = vmatpush.xpose.msra.mxu0 %v1702_v46  ;;  %5505 = vmatpush.xpose.msra.mxu1 %v1703_v43  ;;  %v12635_v46 = vld [vmem:[#allocation94_spill] sm:$0xff]  ;;  %1734 = vst [vmem:[#allocation1] ss:$2 sm:$0xff] %v210_v2 }
 0x38a   :  { %v4088_v38 = vadd.f32 %v4087_v6, %v4068_v13  ;;  %1737 = vst [vmem:[#allocation1 + $0x30] ss:$2 sm:$0xff] %v213_v47  ;;  %v1730_v6 = vld.sshfl [vmem:[#allocation1 + $0x20] sm:$0xff pattern:$0x75316420] }
 0x38b   :  { %v1741_v19 = vld.sshfl [vmem:[#allocation1 + $0x18] sm:$0xff pattern:$0x75316420]  ;;  %v218_v47 = vld [vmem:[%s12203_s1 + $0x300] sm:$0x77] }
 0x38c   :  { %v4108_v32 = vadd.f32 %v4107_v21, %v4088_v38  ;;  %v12644_v38 = vld [vmem:[#allocation103_spill] sm:$0xff] }
 0x38d   :  { %v4127_v25 = vpop.f32.mrf.mxu0  ;;  %v4147_v23 = vpop.f32.mrf.mxu1 }
 0x38e   :  { %v4128_v26 = vadd.f32 %v4127_v25, %v4108_v32  ;;  %5446 = vmatmul.f32.vlgmr.msrb.gmra.mxu2 %v12631_v18  ;;  %5466 = vmatmul.f32.vlgmr.msrb.gmra.mxu3 %v12632_v50  ;;  %v12645_v25 = vld [vmem:[#allocation100_spill] sm:$0xff]  ;;  %v1740_v18 = vld.sshfl [vmem:[#allocation1 + $0x10] sm:$0xff pattern:$0x75316420] }
 0x38f   :  { %5605 = vmatpush.xpose.msrb.mxu2 %v1708_v42  ;;  %5625 = vmatpush.xpose.msrb.mxu3 %v1709_v30  ;;  %v12639_v42 = vld [vmem:[#allocation122_spill] sm:$0xff]  ;;  %v12640_v30 = vld [vmem:[#allocation123_spill] sm:$0xff] }
 0x390   :  { %v4148_v48 = vadd.f32 %v4147_v23, %v4128_v26  ;;  %5406 = vmatmul.f32.vlgmr.msrb.gmra.mxu0 %v12633_v49  ;;  %5426 = vmatmul.f32.vlgmr.msrb.gmra.mxu1 %v12634_v52  ;;  %v12646_v23 = vld [vmem:[#allocation101_spill] sm:$0xff] }
 0x391   :  { %v4167_v9 = vpop.f32.mrf.mxu2  ;;  %v4187_v63 = vpop.f32.mrf.mxu3  ;;  %5565 = vmatpush.xpose.msrb.mxu0 %v1706_v31  ;;  %5585 = vmatpush.xpose.msrb.mxu1 %v1707_v28  ;;  %v12641_v31 = vld [vmem:[#allocation120_spill] sm:$0xff]  ;;  %v12642_v28 = vld [vmem:[#allocation121_spill] sm:$0xff] }
 0x392   :  { %v4168_v33 = vadd.f32 %v4167_v9, %v4148_v48  ;;  %v1739_v48 = vld.sshfl [vmem:[#allocation1 + $0x8] sm:$0xff pattern:$0x75316420]  ;;  %v214_v9 = vld [vmem:[%s12203_s1 + $0x2e0] sm:$0x77] }
 0x393   :  { %v215_v49 = vld [vmem:[%s12203_s1 + $0x2e8] sm:$0x77] }
 0x394   :  { %v4188_v58 = vadd.f32 %v4187_v63, %v4168_v33  ;;  %1747 = vst [vmem:[#allocation1 + $0x10] ss:$2 sm:$0xff] %v215_v49  ;;  %v12661_v49 = vld [vmem:[#allocation116_spill] sm:$0xff] }
 0x395   :  { %v4207_v61 = vpop.f32.mrf.mxu0  ;;  %v4227_v7 = vpop.f32.mrf.mxu1 }
 0x396   :  { %v4208_v45 = vadd.f32 %v4207_v61, %v4188_v58  ;;  %5526 = vmatmul.f32.vlgmr.msra.gmra.mxu2 %v12635_v46  ;;  %5546 = vmatmul.f32.vlgmr.msra.gmra.mxu3 %v12636_v8  ;;  %v12650_v58 = vld [vmem:[#allocation129_spill] sm:$0xff]  ;;  %v1745_v8 = vld.sshfl [vmem:[#allocation1 + $0x38] sm:$0xff pattern:$0x75316420] }
 0x397   :  { %5685 = vmatpush.xpose.msra.mxu2 %v1716_v40  ;;  %5705 = vmatpush.xpose.msra.mxu3 %v1717_v39  ;;  %v12643_v40 = vld [vmem:[#allocation102_spill] sm:$0xff]  ;;  %v1731_v39 = vld.sshfl [vmem:[#allocation1 + $0x28] sm:$0xff pattern:$0x75316420] }
 0x398   :  { %v4228_v43 = vadd.f32 %v4227_v7, %v4208_v45  ;;  %5486 = vmatmul.f32.vlgmr.msra.gmra.mxu0 %v12637_v44  ;;  %5506 = vmatmul.f32.vlgmr.msra.gmra.mxu1 %v12638_v4  ;;  %1736 = vst [vmem:[#allocation1 + $0x20] ss:$2 sm:$0xff] %v212_v41  ;;  %v217_v45 = vld [vmem:[%s12203_s1 + $0x2f8] sm:$0x77] }
 0x399   :  { %v4247_v3 = vpop.f32.mrf.mxu2  ;;  %v4267_v11 = vpop.f32.mrf.mxu3  ;;  %5645 = vmatpush.xpose.msra.mxu0 %v1714_v24  ;;  %5665 = vmatpush.xpose.msra.mxu1 %v1715_v51  ;;  %v1738_v51 = vld.sshfl [vmem:[#allocation1] sm:$0xff pattern:$0x75316420]  ;;  %v1744_v46 = vld.sshfl [vmem:[#allocation1 + $0x30] sm:$0xff pattern:$0x75316420] }
 0x39a   :  { %v4248_v22 = vadd.f32 %v4247_v3, %v4228_v43  ;;  %1746 = vst [vmem:[#allocation1] ss:$2 sm:$0xff] %v214_v9 }
 0x39b   :  { %1749 = vst [vmem:[#allocation1 + $0x30] ss:$2 sm:$0xff] %v217_v45  ;;  %v1752_v2 = vld.sshfl [vmem:[#allocation1 + $0x10] sm:$0xff pattern:$0x75316420] }
 0x39c   :  { %v4268_v1 = vadd.f32 %v4267_v11, %v4248_v22  ;;  %v216_v22 = vld [vmem:[%s12203_s1 + $0x2f0] sm:$0x77] }
 0x39d   :  { %v4287_v53 = vpop.f32.mrf.mxu0  ;;  %v4307_v54 = vpop.f32.mrf.mxu1 }
 0x39e   :  { %v4288_v5 = vadd.f32 %v4287_v53, %v4268_v1  ;;  %5606 = vmatmul.f32.vlgmr.msrb.gmra.mxu2 %v12639_v42  ;;  %5626 = vmatmul.f32.vlgmr.msrb.gmra.mxu3 %v12640_v30  ;;  %v1753_v42 = vld.sshfl [vmem:[#allocation1 + $0x18] sm:$0xff pattern:$0x75316420]  ;;  %v219_v30 = vld [vmem:[%s12203_s1 + $0x308] sm:$0x77] }
 0x39f   :  { %5765 = vmatpush.xpose.msrb.mxu2 %v1720_v35  ;;  %5785 = vmatpush.xpose.msrb.mxu3 %v1721_v36  ;;  %v12648_v36 = vld [vmem:[#allocation131_spill] sm:$0xff]  ;;  %v1743_v4 = vld.sshfl [vmem:[#allocation1 + $0x28] sm:$0xff pattern:$0x75316420]  ;;  %1759 = vst [vmem:[#allocation1 + $0x10] ss:$2 sm:$0xff] %v219_v30 }
 0x3a0   :  { %v4308_v37 = vadd.f32 %v4307_v54, %v4288_v5  ;;  %5566 = vmatmul.f32.vlgmr.msrb.gmra.mxu0 %v12641_v31  ;;  %5586 = vmatmul.f32.vlgmr.msrb.gmra.mxu1 %v12642_v28  ;;  %v1742_v44 = vld.sshfl [vmem:[#allocation1 + $0x20] sm:$0xff pattern:$0x75316420]  ;;  %v224_v30 = vld [vmem:[%s12203_s1 + $0x330] sm:$0x77] }
 0x3a1   :  { %v4327_v29 = vpop.f32.mrf.mxu2  ;;  %v4347_v15 = vpop.f32.mrf.mxu3  ;;  %5725 = vmatpush.xpose.msrb.mxu0 %v1718_v34  ;;  %5745 = vmatpush.xpose.msrb.mxu1 %v1719_v10  ;;  %v12647_v34 = vld [vmem:[#allocation130_spill] sm:$0xff]  ;;  %1748 = vst [vmem:[#allocation1 + $0x20] ss:$2 sm:$0xff] %v216_v22 }
 0x3a2   :  { %v4328_v57 = vadd.f32 %v4327_v29, %v4308_v37  ;;  %v1750_v29 = vld.sshfl [vmem:[#allocation1] sm:$0xff pattern:$0x75316420]  ;;  %v1757_v41 = vld.sshfl [vmem:[#allocation1 + $0x38] sm:$0xff pattern:$0x75316420] }
 0x3a4   :  { %v4348_v13 = vadd.f32 %v4347_v15, %v4328_v57  ;;  %v12656_v57 = vld [vmem:[#allocation139_spill] sm:$0xff] }
 0x3a5   :  { %v4367_v14 = vpop.f32.mrf.mxu0  ;;  %v4387_v20 = vpop.f32.mrf.mxu1 }
 0x3a6   :  { %v4368_v21 = vadd.f32 %v4367_v14, %v4348_v13  ;;  %5686 = vmatmul.f32.vlgmr.msra.gmra.mxu2 %v12643_v40  ;;  %5706 = vmatmul.f32.vlgmr.msra.gmra.mxu3 %v12644_v38  ;;  %v12657_v14 = vld [vmem:[#allocation136_spill] sm:$0xff]  ;;  %v1756_v40 = vld.sshfl [vmem:[#allocation1 + $0x30] sm:$0xff pattern:$0x75316420] }
 0x3a7   :  { %5845 = vmatpush.xpose.msra.mxu2 %v1728_v17  ;;  %5865 = vmatpush.xpose.msra.mxu3 %v1729_v27  ;;  %v12651_v17 = vld [vmem:[#allocation110_spill] sm:$0xff]  ;;  %v12652_v27 = vld [vmem:[#allocation111_spill] sm:$0xff] }
 0x3a8   :  { %v4388_v32 = vadd.f32 %v4387_v20, %v4368_v21  ;;  %5646 = vmatmul.f32.vlgmr.msra.gmra.mxu0 %v12645_v25  ;;  %5666 = vmatmul.f32.vlgmr.msra.gmra.mxu1 %v12646_v23  ;;  %v12658_v20 = vld [vmem:[#allocation137_spill] sm:$0xff]  ;;  %v221_v25 = vld [vmem:[%s12203_s1 + $0x318] sm:$0x77] }
 0x3a9   :  { %v4407_v24 = vpop.f32.mrf.mxu2  ;;  %v4427_v26 = vpop.f32.mrf.mxu3  ;;  %5805 = vmatpush.xpose.msra.mxu0 %v1726_v55  ;;  %5825 = vmatpush.xpose.msra.mxu1 %v1727_v56  ;;  %v12653_v55 = vld [vmem:[#allocation108_spill] sm:$0xff]  ;;  %v12654_v56 = vld [vmem:[#allocation109_spill] sm:$0xff]  ;;  %1761 = vst [vmem:[#allocation1 + $0x30] ss:$2 sm:$0xff] %v221_v25 }
 0x3aa   :  { %v4408_v50 = vadd.f32 %v4407_v24, %v4388_v32  ;;  %v1755_v32 = vld.sshfl [vmem:[#allocation1 + $0x28] sm:$0xff pattern:$0x75316420]  ;;  %v220_v24 = vld [vmem:[%s12203_s1 + $0x310] sm:$0x77] }
 0x3ab   :  { %v12673_v25 = vld [vmem:[#allocation152_spill] sm:$0xff] }
 0x3ac   :  { %v4428_v52 = vadd.f32 %v4427_v26, %v4408_v50 }
 0x3ad   :  { %v4447_v63 = vpop.f32.mrf.mxu0  ;;  %v4467_v35 = vpop.f32.mrf.mxu1 }
 0x3ae   :  { %v4448_v33 = vadd.f32 %v4447_v63, %v4428_v52  ;;  %5766 = vmatmul.f32.vlgmr.msrb.gmra.mxu2 %v12647_v34  ;;  %5786 = vmatmul.f32.vlgmr.msrb.gmra.mxu3 %v12648_v36  ;;  %v12662_v52 = vld [vmem:[#allocation117_spill] sm:$0xff]  ;;  %v1765_v36 = vld.sshfl [vmem:[#allocation1 + $0x18] sm:$0xff pattern:$0x75316420] }
 0x3af   :  { %5925 = vmatpush.xpose.msrb.mxu2 %v1732_v16  ;;  %5945 = vmatpush.xpose.msrb.mxu3 %v1733_v0  ;;  %v12655_v16 = vld [vmem:[#allocation138_spill] sm:$0xff]  ;;  %v1751_v0 = vld.sshfl [vmem:[#allocation1 + $0x8] sm:$0xff pattern:$0x75316420] }
 0x3b0   :  { %v4468_v10 = vadd.f32 %v4467_v35, %v4448_v33  ;;  %5726 = vmatmul.f32.vlgmr.msrb.gmra.mxu0 %v12649_v60  ;;  %5746 = vmatmul.f32.vlgmr.msrb.gmra.mxu1 %v12650_v58  ;;  %1758 = vst [vmem:[#allocation1] ss:$2 sm:$0xff] %v218_v47  ;;  %v223_v33 = vld [vmem:[%s12203_s1 + $0x328] sm:$0x77] }
 0x3b1   :  { %v4487_v59 = vpop.f32.mrf.mxu2  ;;  %v4507_v61 = vpop.f32.mrf.mxu3  ;;  %5885 = vmatpush.xpose.msrb.mxu0 %v1730_v6  ;;  %5905 = vmatpush.xpose.msrb.mxu1 %v1731_v39  ;;  %v1754_v39 = vld.sshfl [vmem:[#allocation1 + $0x20] sm:$0xff pattern:$0x75316420]  ;;  %v1764_v34 = vld.sshfl [vmem:[#allocation1 + $0x10] sm:$0xff pattern:$0x75316420] }
 0x3b2   :  { %v4488_v7 = vadd.f32 %v4487_v59, %v4468_v10  ;;  %1760 = vst [vmem:[#allocation1 + $0x20] ss:$2 sm:$0xff] %v220_v24  ;;  %v1768_v22 = vld.sshfl [vmem:[#allocation1 + $0x30] sm:$0xff pattern:$0x75316420] }
 0x3b3   :  { %1771 = vst [vmem:[#allocation1 + $0x10] ss:$2 sm:$0xff] %v223_v33 }
 0x3b4   :  { %v4508_v43 = vadd.f32 %v4507_v61, %v4488_v7  ;;  %v222_v7 = vld [vmem:[%s12203_s1 + $0x320] sm:$0x77] }
 0x3b5   :  { %v4527_v3 = vpop.f32.mrf.mxu0  ;;  %v4547_v11 = vpop.f32.mrf.mxu1 }
 0x3b6   :  { %v4528_v12 = vadd.f32 %v4527_v3, %v4508_v43  ;;  %5846 = vmatmul.f32.vlgmr.msra.gmra.mxu2 %v12651_v17  ;;  %5866 = vmatmul.f32.vlgmr.msra.gmra.mxu3 %v12652_v27  ;;  %v1769_v17 = vld.sshfl [vmem:[#allocation1 + $0x38] sm:$0xff pattern:$0x75316420] }
 0x3b7   :  { %6005 = vmatpush.xpose.msra.mxu2 %v1740_v18  ;;  %6025 = vmatpush.xpose.msra.mxu3 %v1741_v19  ;;  %v12660_v19 = vld [vmem:[#allocation119_spill] sm:$0xff]  ;;  %v1763_v58 = vld.sshfl [vmem:[#allocation1 + $0x8] sm:$0xff pattern:$0x75316420] }
 0x3b8   :  { %v4548_v1 = vadd.f32 %v4547_v11, %v4528_v12  ;;  %5806 = vmatmul.f32.vlgmr.msra.gmra.mxu0 %v12653_v55  ;;  %5826 = vmatmul.f32.vlgmr.msra.gmra.mxu1 %v12654_v56  ;;  %v1762_v60 = vld.sshfl [vmem:[#allocation1] sm:$0xff pattern:$0x75316420]  ;;  %v225_v27 = vld [vmem:[%s12203_s1 + $0x338] sm:$0x77] }
 0x3b9   :  { %v4567_v53 = vpop.f32.mrf.mxu2  ;;  %v4587_v54 = vpop.f32.mrf.mxu3  ;;  %5965 = vmatpush.xpose.msra.mxu0 %v1738_v51  ;;  %5985 = vmatpush.xpose.msra.mxu1 %v1739_v48  ;;  %v12659_v51 = vld [vmem:[#allocation118_spill] sm:$0xff]  ;;  %1770 = vst [vmem:[#allocation1] ss:$2 sm:$0xff] %v222_v7 }
 0x3ba   :  { %v4568_v5 = vadd.f32 %v4567_v53, %v4548_v1  ;;  %1773 = vst [vmem:[#allocation1 + $0x30] ss:$2 sm:$0xff] %v225_v27  ;;  %v1766_v53 = vld.sshfl [vmem:[#allocation1 + $0x20] sm:$0xff pattern:$0x75316420] }
 0x3bb   :  { %v1777_v47 = vld.sshfl [vmem:[#allocation1 + $0x18] sm:$0xff pattern:$0x75316420]  ;;  %v230_v27 = vld [vmem:[%s12203_s1 + $0x360] sm:$0x77] }
 0x3bc   :  { %v4588_v37 = vadd.f32 %v4587_v54, %v4568_v5  ;;  %v12668_v5 = vld [vmem:[#allocation127_spill] sm:$0xff] }
 0x3bd   :  { %v4607_v31 = vpop.f32.mrf.mxu0  ;;  %v4627_v28 = vpop.f32.mrf.mxu1 }
 0x3be   :  { %v4608_v15 = vadd.f32 %v4607_v31, %v4588_v37  ;;  %5926 = vmatmul.f32.vlgmr.msrb.gmra.mxu2 %v12655_v16  ;;  %5946 = vmatmul.f32.vlgmr.msrb.gmra.mxu3 %v12656_v57  ;;  %v12669_v31 = vld [vmem:[#allocation124_spill] sm:$0xff]  ;;  %v1776_v16 = vld.sshfl [vmem:[#allocation1 + $0x10] sm:$0xff pattern:$0x75316420] }
 0x3bf   :  { %6085 = vmatpush.xpose.msrb.mxu2 %v1744_v46  ;;  %6105 = vmatpush.xpose.msrb.mxu3 %v1745_v8  ;;  %v12663_v46 = vld [vmem:[#allocation146_spill] sm:$0xff]  ;;  %v12664_v8 = vld [vmem:[#allocation147_spill] sm:$0xff] }
 0x3c0   :  { %v4628_v13 = vadd.f32 %v4627_v28, %v4608_v15  ;;  %5886 = vmatmul.f32.vlgmr.msrb.gmra.mxu0 %v12657_v14  ;;  %5906 = vmatmul.f32.vlgmr.msrb.gmra.mxu1 %v12658_v20  ;;  %v12670_v28 = vld [vmem:[#allocation125_spill] sm:$0xff] }
 0x3c1   :  { %v4647_v6 = vpop.f32.mrf.mxu2  ;;  %v4667_v21 = vpop.f32.mrf.mxu3  ;;  %6045 = vmatpush.xpose.msrb.mxu0 %v1742_v44  ;;  %6065 = vmatpush.xpose.msrb.mxu1 %v1743_v4  ;;  %v12665_v44 = vld [vmem:[#allocation144_spill] sm:$0xff]  ;;  %v12666_v4 = vld [vmem:[#allocation145_spill] sm:$0xff] }
 0x3c2   :  { %v4648_v38 = vadd.f32 %v4647_v6, %v4628_v13  ;;  %v1775_v13 = vld.sshfl [vmem:[#allocation1 + $0x8] sm:$0xff pattern:$0x75316420]  ;;  %v226_v6 = vld [vmem:[%s12203_s1 + $0x340] sm:$0x77] }
 0x3c3   :  { %v227_v14 = vld [vmem:[%s12203_s1 + $0x348] sm:$0x77] }
 0x3c4   :  { %v4668_v23 = vadd.f32 %v4667_v21, %v4648_v38  ;;  %1783 = vst [vmem:[#allocation1 + $0x10] ss:$2 sm:$0xff] %v227_v14  ;;  %v12685_v14 = vld [vmem:[#allocation140_spill] sm:$0xff] }
 0x3c5   :  { %v4687_v26 = vpop.f32.mrf.mxu0  ;;  %v4707_v18 = vpop.f32.mrf.mxu1 }
 0x3c6   :  { %v4688_v50 = vadd.f32 %v4687_v26, %v4668_v23  ;;  %6006 = vmatmul.f32.vlgmr.msra.gmra.mxu2 %v12659_v51  ;;  %6026 = vmatmul.f32.vlgmr.msra.gmra.mxu3 %v12660_v19  ;;  %v12674_v23 = vld [vmem:[#allocation153_spill] sm:$0xff]  ;;  %v1781_v19 = vld.sshfl [vmem:[#allocation1 + $0x38] sm:$0xff pattern:$0x75316420] }
 0x3c7   :  { %6165 = vmatpush.xpose.msra.mxu2 %v1752_v2  ;;  %6185 = vmatpush.xpose.msra.mxu3 %v1753_v42  ;;  %v12667_v2 = vld [vmem:[#allocation126_spill] sm:$0xff]  ;;  %v1767_v42 = vld.sshfl [vmem:[#allocation1 + $0x28] sm:$0xff pattern:$0x75316420] }
 0x3c8   :  { %v4708_v48 = vadd.f32 %v4707_v18, %v4688_v50  ;;  %5966 = vmatmul.f32.vlgmr.msra.gmra.mxu0 %v12661_v49  ;;  %5986 = vmatmul.f32.vlgmr.msra.gmra.mxu1 %v12662_v52  ;;  %1772 = vst [vmem:[#allocation1 + $0x20] ss:$2 sm:$0xff] %v224_v30  ;;  %v229_v50 = vld [vmem:[%s12203_s1 + $0x358] sm:$0x77] }
 0x3c9   :  { %v4727_v9 = vpop.f32.mrf.mxu2  ;;  %v4747_v63 = vpop.f32.mrf.mxu3  ;;  %6125 = vmatpush.xpose.msra.mxu0 %v1750_v29  ;;  %6145 = vmatpush.xpose.msra.mxu1 %v1751_v0  ;;  %v1774_v0 = vld.sshfl [vmem:[#allocation1] sm:$0xff pattern:$0x75316420]  ;;  %v1780_v51 = vld.sshfl [vmem:[#allocation1 + $0x30] sm:$0xff pattern:$0x75316420] }
 0x3ca   :  { %v4728_v35 = vadd.f32 %v4727_v9, %v4708_v48  ;;  %1782 = vst [vmem:[#allocation1] ss:$2 sm:$0xff] %v226_v6 }
 0x3cb   :  { %1785 = vst [vmem:[#allocation1 + $0x30] ss:$2 sm:$0xff] %v229_v50  ;;  %v1788_v7 = vld.sshfl [vmem:[#allocation1 + $0x10] sm:$0xff pattern:$0x75316420] }
 0x3cc   :  { %v4748_v10 = vadd.f32 %v4747_v63, %v4728_v35  ;;  %v228_v35 = vld [vmem:[%s12203_s1 + $0x350] sm:$0x77] }
 0x3cd   :  { %v4767_v59 = vpop.f32.mrf.mxu0  ;;  %v4787_v61 = vpop.f32.mrf.mxu1 }
 0x3ce   :  { %v4768_v45 = vadd.f32 %v4767_v59, %v4748_v10  ;;  %6086 = vmatmul.f32.vlgmr.msrb.gmra.mxu2 %v12663_v46  ;;  %6106 = vmatmul.f32.vlgmr.msrb.gmra.mxu3 %v12664_v8  ;;  %v1789_v46 = vld.sshfl [vmem:[#allocation1 + $0x18] sm:$0xff pattern:$0x75316420]  ;;  %v231_v8 = vld [vmem:[%s12203_s1 + $0x368] sm:$0x77] }
 0x3cf   :  { %6245 = vmatpush.xpose.msrb.mxu2 %v1756_v40  ;;  %6265 = vmatpush.xpose.msrb.mxu3 %v1757_v41  ;;  %v12672_v41 = vld [vmem:[#allocation155_spill] sm:$0xff]  ;;  %v1779_v52 = vld.sshfl [vmem:[#allocation1 + $0x28] sm:$0xff pattern:$0x75316420]  ;;  %1795 = vst [vmem:[#allocation1 + $0x10] ss:$2 sm:$0xff] %v231_v8 }
 0x3d0   :  { %v4788_v43 = vadd.f32 %v4787_v61, %v4768_v45  ;;  %6046 = vmatmul.f32.vlgmr.msrb.gmra.mxu0 %v12665_v44  ;;  %6066 = vmatmul.f32.vlgmr.msrb.gmra.mxu1 %v12666_v4  ;;  %v1778_v49 = vld.sshfl [vmem:[#allocation1 + $0x20] sm:$0xff pattern:$0x75316420]  ;;  %v236_v8 = vld [vmem:[%s12203_s1 + $0x390] sm:$0x77] }
 0x3d1   :  { %v4807_v3 = vpop.f32.mrf.mxu2  ;;  %v4827_v11 = vpop.f32.mrf.mxu3  ;;  %6205 = vmatpush.xpose.msrb.mxu0 %v1754_v39  ;;  %6225 = vmatpush.xpose.msrb.mxu1 %v1755_v32  ;;  %v12671_v39 = vld [vmem:[#allocation154_spill] sm:$0xff]  ;;  %1784 = vst [vmem:[#allocation1 + $0x20] ss:$2 sm:$0xff] %v228_v35 }
 0x3d2   :  { %v4808_v12 = vadd.f32 %v4807_v3, %v4788_v43  ;;  %v1786_v3 = vld.sshfl [vmem:[#allocation1] sm:$0xff pattern:$0x75316420]  ;;  %v1793_v30 = vld.sshfl [vmem:[#allocation1 + $0x38] sm:$0xff pattern:$0x75316420] }
 0x3d4   :  { %v4828_v1 = vadd.f32 %v4827_v11, %v4808_v12  ;;  %v12680_v12 = vld [vmem:[#allocation163_spill] sm:$0xff] }
 0x3d5   :  { %v4847_v55 = vpop.f32.mrf.mxu0  ;;  %v4867_v56 = vpop.f32.mrf.mxu1 }
 0x3d6   :  { %v4848_v54 = vadd.f32 %v4847_v55, %v4828_v1  ;;  %6166 = vmatmul.f32.vlgmr.msra.gmra.mxu2 %v12667_v2  ;;  %6186 = vmatmul.f32.vlgmr.msra.gmra.mxu3 %v12668_v5  ;;  %v12681_v55 = vld [vmem:[#allocation160_spill] sm:$0xff]  ;;  %v1792_v2 = vld.sshfl [vmem:[#allocation1 + $0x30] sm:$0xff pattern:$0x75316420] }
 0x3d7   :  { %6325 = vmatpush.xpose.msra.mxu2 %v1764_v34  ;;  %6345 = vmatpush.xpose.msra.mxu3 %v1765_v36  ;;  %v12675_v34 = vld [vmem:[#allocation134_spill] sm:$0xff]  ;;  %v12676_v36 = vld [vmem:[#allocation135_spill] sm:$0xff] }
 0x3d8   :  { %v4868_v37 = vadd.f32 %v4867_v56, %v4848_v54  ;;  %6126 = vmatmul.f32.vlgmr.msra.gmra.mxu0 %v12669_v31  ;;  %6146 = vmatmul.f32.vlgmr.msra.gmra.mxu1 %v12670_v28  ;;  %v12682_v56 = vld [vmem:[#allocation161_spill] sm:$0xff]  ;;  %v233_v31 = vld [vmem:[%s12203_s1 + $0x378] sm:$0x77] }
 0x3d9   :  { %v4887_v29 = vpop.f32.mrf.mxu2  ;;  %v4907_v15 = vpop.f32.mrf.mxu3  ;;  %6285 = vmatpush.xpose.msra.mxu0 %v1762_v60  ;;  %6305 = vmatpush.xpose.msra.mxu1 %v1763_v58  ;;  %v12677_v60 = vld [vmem:[#allocation132_spill] sm:$0xff]  ;;  %v12678_v58 = vld [vmem:[#allocation133_spill] sm:$0xff]  ;;  %1797 = vst [vmem:[#allocation1 + $0x30] ss:$2 sm:$0xff] %v233_v31 }
 0x3da   :  { %v4888_v57 = vadd.f32 %v4887_v29, %v4868_v37  ;;  %v1791_v37 = vld.sshfl [vmem:[#allocation1 + $0x28] sm:$0xff pattern:$0x75316420]  ;;  %v232_v29 = vld [vmem:[%s12203_s1 + $0x370] sm:$0x77] }
 0x3db   :  { %v12697_v31 = vld [vmem:[#allocation176_spill] sm:$0xff] }
 0x3dc   :  { %v4908_v20 = vadd.f32 %v4907_v15, %v4888_v57 }
 0x3dd   :  { %v4927_v21 = vpop.f32.mrf.mxu0  ;;  %v4947_v40 = vpop.f32.mrf.mxu1 }
 0x3de   :  { %v4928_v38 = vadd.f32 %v4927_v21, %v4908_v20  ;;  %6246 = vmatmul.f32.vlgmr.msrb.gmra.mxu2 %v12671_v39  ;;  %6266 = vmatmul.f32.vlgmr.msrb.gmra.mxu3 %v12672_v41  ;;  %v12686_v20 = vld [vmem:[#allocation141_spill] sm:$0xff]  ;;  %v1801_v41 = vld.sshfl [vmem:[#allocation1 + $0x18] sm:$0xff pattern:$0x75316420] }
 0x3df   :  { %6405 = vmatpush.xpose.msrb.mxu2 %v1768_v22  ;;  %6425 = vmatpush.xpose.msrb.mxu3 %v1769_v17  ;;  %v12679_v22 = vld [vmem:[#allocation162_spill] sm:$0xff]  ;;  %v1787_v17 = vld.sshfl [vmem:[#allocation1 + $0x8] sm:$0xff pattern:$0x75316420] }
 0x3e0   :  { %v4948_v32 = vadd.f32 %v4947_v40, %v4928_v38  ;;  %6206 = vmatmul.f32.vlgmr.msrb.gmra.mxu0 %v12673_v25  ;;  %6226 = vmatmul.f32.vlgmr.msrb.gmra.mxu1 %v12674_v23  ;;  %1794 = vst [vmem:[#allocation1] ss:$2 sm:$0xff] %v230_v27  ;;  %v235_v38 = vld [vmem:[%s12203_s1 + $0x388] sm:$0x77] }
 0x3e1   :  { %v4967_v24 = vpop.f32.mrf.mxu2  ;;  %v4987_v26 = vpop.f32.mrf.mxu3  ;;  %6365 = vmatpush.xpose.msrb.mxu0 %v1766_v53  ;;  %6385 = vmatpush.xpose.msrb.mxu1 %v1767_v42  ;;  %v1790_v42 = vld.sshfl [vmem:[#allocation1 + $0x20] sm:$0xff pattern:$0x75316420]  ;;  %v1800_v39 = vld.sshfl [vmem:[#allocation1 + $0x10] sm:$0xff pattern:$0x75316420] }
 0x3e2   :  { %v4968_v18 = vadd.f32 %v4967_v24, %v4948_v32  ;;  %1796 = vst [vmem:[#allocation1 + $0x20] ss:$2 sm:$0xff] %v232_v29  ;;  %v1804_v35 = vld.sshfl [vmem:[#allocation1 + $0x30] sm:$0xff pattern:$0x75316420] }
 0x3e3   :  { %1807 = vst [vmem:[#allocation1 + $0x10] ss:$2 sm:$0xff] %v235_v38 }
 0x3e4   :  { %v4988_v48 = vadd.f32 %v4987_v26, %v4968_v18  ;;  %v234_v18 = vld [vmem:[%s12203_s1 + $0x380] sm:$0x77] }
 0x3e5   :  { %v5007_v9 = vpop.f32.mrf.mxu0  ;;  %v5027_v63 = vpop.f32.mrf.mxu1 }
 0x3e6   :  { %v5008_v33 = vadd.f32 %v5007_v9, %v4988_v48  ;;  %6326 = vmatmul.f32.vlgmr.msra.gmra.mxu2 %v12675_v34  ;;  %6346 = vmatmul.f32.vlgmr.msra.gmra.mxu3 %v12676_v36  ;;  %v1805_v34 = vld.sshfl [vmem:[#allocation1 + $0x38] sm:$0xff pattern:$0x75316420] }
 0x3e7   :  { %6485 = vmatpush.xpose.msra.mxu2 %v1776_v16  ;;  %6505 = vmatpush.xpose.msra.mxu3 %v1777_v47  ;;  %v12684_v47 = vld [vmem:[#allocation143_spill] sm:$0xff]  ;;  %v1799_v23 = vld.sshfl [vmem:[#allocation1 + $0x8] sm:$0xff pattern:$0x75316420] }
 0x3e8   :  { %v5028_v10 = vadd.f32 %v5027_v63, %v5008_v33  ;;  %6286 = vmatmul.f32.vlgmr.msra.gmra.mxu0 %v12677_v60  ;;  %6306 = vmatmul.f32.vlgmr.msra.gmra.mxu1 %v12678_v58  ;;  %v1798_v25 = vld.sshfl [vmem:[#allocation1] sm:$0xff pattern:$0x75316420]  ;;  %v237_v36 = vld [vmem:[%s12203_s1 + $0x398] sm:$0x77] }
 0x3e9   :  { %v5047_v59 = vpop.f32.mrf.mxu2  ;;  %v5067_v61 = vpop.f32.mrf.mxu3  ;;  %6445 = vmatpush.xpose.msra.mxu0 %v1774_v0  ;;  %6465 = vmatpush.xpose.msra.mxu1 %v1775_v13  ;;  %v12683_v0 = vld [vmem:[#allocation142_spill] sm:$0xff]  ;;  %1806 = vst [vmem:[#allocation1] ss:$2 sm:$0xff] %v234_v18 }
 0x3ea   :  { %v5048_v45 = vadd.f32 %v5047_v59, %v5028_v10  ;;  %1809 = vst [vmem:[#allocation1 + $0x30] ss:$2 sm:$0xff] %v237_v36  ;;  %v1802_v59 = vld.sshfl [vmem:[#allocation1 + $0x20] sm:$0xff pattern:$0x75316420] }
 0x3eb   :  { %v1813_v27 = vld.sshfl [vmem:[#allocation1 + $0x18] sm:$0xff pattern:$0x75316420]  ;;  %v242_v36 = vld [vmem:[%s12203_s1 + $0x3c0] sm:$0x77] }
 0x3ec   :  { %v5068_v43 = vadd.f32 %v5067_v61, %v5048_v45  ;;  %v12692_v45 = vld [vmem:[#allocation151_spill] sm:$0xff] }
 0x3ed   :  { %v5087_v44 = vpop.f32.mrf.mxu0  ;;  %v5107_v4 = vpop.f32.mrf.mxu1 }
 0x3ee   :  { %v5088_v11 = vadd.f32 %v5087_v44, %v5068_v43  ;;  %6406 = vmatmul.f32.vlgmr.msrb.gmra.mxu2 %v12679_v22  ;;  %6426 = vmatmul.f32.vlgmr.msrb.gmra.mxu3 %v12680_v12  ;;  %v12693_v44 = vld [vmem:[#allocation148_spill] sm:$0xff]  ;;  %v1812_v22 = vld.sshfl [vmem:[#allocation1 + $0x10] sm:$0xff pattern:$0x75316420] }
 0x3ef   :  { %6565 = vmatpush.xpose.msrb.mxu2 %v1780_v51  ;;  %6585 = vmatpush.xpose.msrb.mxu3 %v1781_v19  ;;  %v12687_v51 = vld [vmem:[#allocation170_spill] sm:$0xff]  ;;  %v12688_v19 = vld [vmem:[#allocation171_spill] sm:$0xff] }
 0x3f0   :  { %v5108_v1 = vadd.f32 %v5107_v4, %v5088_v11  ;;  %6366 = vmatmul.f32.vlgmr.msrb.gmra.mxu0 %v12681_v55  ;;  %6386 = vmatmul.f32.vlgmr.msrb.gmra.mxu1 %v12682_v56  ;;  %v12694_v4 = vld [vmem:[#allocation149_spill] sm:$0xff] }
 0x3f1   :  { %v5127_v53 = vpop.f32.mrf.mxu2  ;;  %v5147_v54 = vpop.f32.mrf.mxu3  ;;  %6525 = vmatpush.xpose.msrb.mxu0 %v1778_v49  ;;  %6545 = vmatpush.xpose.msrb.mxu1 %v1779_v52  ;;  %v12689_v49 = vld [vmem:[#allocation168_spill] sm:$0xff]  ;;  %v12690_v52 = vld [vmem:[#allocation169_spill] sm:$0xff] }
 0x3f2   :  { %v5128_v5 = vadd.f32 %v5127_v53, %v5108_v1  ;;  %v1811_v1 = vld.sshfl [vmem:[#allocation1 + $0x8] sm:$0xff pattern:$0x75316420]  ;;  %v238_v53 = vld [vmem:[%s12203_s1 + $0x3a0] sm:$0x77] }
 0x3f3   :  { %v239_v55 = vld [vmem:[%s12203_s1 + $0x3a8] sm:$0x77] }
 0x3f4   :  { %v5148_v28 = vadd.f32 %v5147_v54, %v5128_v5  ;;  %1819 = vst [vmem:[#allocation1 + $0x10] ss:$2 sm:$0xff] %v239_v55  ;;  %v12709_v55 = vld [vmem:[#allocation164_spill] sm:$0xff] }
 0x3f5   :  { %v5167_v15 = vpop.f32.mrf.mxu0  ;;  %v5187_v16 = vpop.f32.mrf.mxu1 }
 0x3f6   :  { %v5168_v57 = vadd.f32 %v5167_v15, %v5148_v28  ;;  %6486 = vmatmul.f32.vlgmr.msra.gmra.mxu2 %v12683_v0  ;;  %6506 = vmatmul.f32.vlgmr.msra.gmra.mxu3 %v12684_v47  ;;  %v12698_v28 = vld [vmem:[#allocation177_spill] sm:$0xff]  ;;  %v1817_v47 = vld.sshfl [vmem:[#allocation1 + $0x38] sm:$0xff pattern:$0x75316420] }
 0x3f7   :  { %6645 = vmatpush.xpose.msra.mxu2 %v1788_v7  ;;  %6665 = vmatpush.xpose.msra.mxu3 %v1789_v46  ;;  %v12691_v7 = vld [vmem:[#allocation150_spill] sm:$0xff]  ;;  %v1803_v46 = vld.sshfl [vmem:[#allocation1 + $0x28] sm:$0xff pattern:$0x75316420] }
 0x3f8   :  { %v5188_v13 = vadd.f32 %v5187_v16, %v5168_v57  ;;  %6446 = vmatmul.f32.vlgmr.msra.gmra.mxu0 %v12685_v14  ;;  %6466 = vmatmul.f32.vlgmr.msra.gmra.mxu1 %v12686_v20  ;;  %1808 = vst [vmem:[#allocation1 + $0x20] ss:$2 sm:$0xff] %v236_v8  ;;  %v241_v57 = vld [vmem:[%s12203_s1 + $0x3b8] sm:$0x77] }
 0x3f9   :  { %v5207_v6 = vpop.f32.mrf.mxu2  ;;  %v5227_v21 = vpop.f32.mrf.mxu3  ;;  %6605 = vmatpush.xpose.msra.mxu0 %v1786_v3  ;;  %6625 = vmatpush.xpose.msra.mxu1 %v1787_v17  ;;  %v1810_v17 = vld.sshfl [vmem:[#allocation1] sm:$0xff pattern:$0x75316420]  ;;  %v1816_v0 = vld.sshfl [vmem:[#allocation1 + $0x30] sm:$0xff pattern:$0x75316420] }
 0x3fa   :  { %v5208_v40 = vadd.f32 %v5207_v6, %v5188_v13  ;;  %1818 = vst [vmem:[#allocation1] ss:$2 sm:$0xff] %v238_v53 }
 0x3fb   :  { %1821 = vst [vmem:[#allocation1 + $0x30] ss:$2 sm:$0xff] %v241_v57  ;;  %v1824_v18 = vld.sshfl [vmem:[#allocation1 + $0x10] sm:$0xff pattern:$0x75316420] }
 0x3fc   :  { %v5228_v32 = vadd.f32 %v5227_v21, %v5208_v40  ;;  %v240_v40 = vld [vmem:[%s12203_s1 + $0x3b0] sm:$0x77] }
 0x3fd   :  { %v5247_v24 = vpop.f32.mrf.mxu0  ;;  %v5267_v26 = vpop.f32.mrf.mxu1 }
 0x3fe   :  { %v5248_v50 = vadd.f32 %v5247_v24, %v5228_v32  ;;  %6566 = vmatmul.f32.vlgmr.msrb.gmra.mxu2 %v12687_v51  ;;  %6586 = vmatmul.f32.vlgmr.msrb.gmra.mxu3 %v12688_v19  ;;  %v1825_v51 = vld.sshfl [vmem:[#allocation1 + $0x18] sm:$0xff pattern:$0x75316420]  ;;  %v243_v19 = vld [vmem:[%s12203_s1 + $0x3c8] sm:$0x77] }
 0x3ff   :  { %6725 = vmatpush.xpose.msrb.mxu2 %v1792_v2  ;;  %6745 = vmatpush.xpose.msrb.mxu3 %v1793_v30  ;;  %v12696_v30 = vld [vmem:[#allocation179_spill] sm:$0xff]  ;;  %v1815_v20 = vld.sshfl [vmem:[#allocation1 + $0x28] sm:$0xff pattern:$0x75316420]  ;;  %1831 = vst [vmem:[#allocation1 + $0x10] ss:$2 sm:$0xff] %v243_v19 }
 0x400   :  { %v5268_v48 = vadd.f32 %v5267_v26, %v5248_v50  ;;  %6526 = vmatmul.f32.vlgmr.msrb.gmra.mxu0 %v12689_v49  ;;  %6546 = vmatmul.f32.vlgmr.msrb.gmra.mxu1 %v12690_v52  ;;  %v1814_v14 = vld.sshfl [vmem:[#allocation1 + $0x20] sm:$0xff pattern:$0x75316420]  ;;  %v248_v19 = vld [vmem:[%s12203_s1 + $0x3f0] sm:$0x77] }
 0x401   :  { %v5287_v9 = vpop.f32.mrf.mxu2  ;;  %v5307_v63 = vpop.f32.mrf.mxu3  ;;  %6685 = vmatpush.xpose.msrb.mxu0 %v1790_v42  ;;  %6705 = vmatpush.xpose.msrb.mxu1 %v1791_v37  ;;  %v12695_v42 = vld [vmem:[#allocation178_spill] sm:$0xff]  ;;  %1820 = vst [vmem:[#allocation1 + $0x20] ss:$2 sm:$0xff] %v240_v40 }
 0x402   :  { %v5288_v33 = vadd.f32 %v5287_v9, %v5268_v48  ;;  %v1822_v9 = vld.sshfl [vmem:[#allocation1] sm:$0xff pattern:$0x75316420]  ;;  %v1829_v8 = vld.sshfl [vmem:[#allocation1 + $0x38] sm:$0xff pattern:$0x75316420] }
 0x404   :  { %v5308_v10 = vadd.f32 %v5307_v63, %v5288_v33  ;;  %v12704_v33 = vld [vmem:[#allocation187_spill] sm:$0xff] }
 0x405   :  { %v5327_v60 = vpop.f32.mrf.mxu0  ;;  %v5347_v58 = vpop.f32.mrf.mxu1 }
 0x406   :  { %v5328_v61 = vadd.f32 %v5327_v60, %v5308_v10  ;;  %6646 = vmatmul.f32.vlgmr.msra.gmra.mxu2 %v12691_v7  ;;  %6666 = vmatmul.f32.vlgmr.msra.gmra.mxu3 %v12692_v45  ;;  %v12705_v60 = vld [vmem:[#allocation184_spill] sm:$0xff]  ;;  %v1828_v7 = vld.sshfl [vmem:[#allocation1 + $0x30] sm:$0xff pattern:$0x75316420] }
 0x407   :  { %6805 = vmatpush.xpose.msra.mxu2 %v1800_v39  ;;  %6825 = vmatpush.xpose.msra.mxu3 %v1801_v41  ;;  %v12699_v39 = vld [vmem:[#allocation158_spill] sm:$0xff]  ;;  %v12700_v41 = vld [vmem:[#allocation159_spill] sm:$0xff] }
 0x408   :  { %v5348_v43 = vadd.f32 %v5347_v58, %v5328_v61  ;;  %6606 = vmatmul.f32.vlgmr.msra.gmra.mxu0 %v12693_v44  ;;  %6626 = vmatmul.f32.vlgmr.msra.gmra.mxu1 %v12694_v4  ;;  %v12706_v58 = vld [vmem:[#allocation185_spill] sm:$0xff]  ;;  %v245_v44 = vld [vmem:[%s12203_s1 + $0x3d8] sm:$0x77] }
 0x409   :  { %v5367_v3 = vpop.f32.mrf.mxu2  ;;  %v5387_v11 = vpop.f32.mrf.mxu3  ;;  %6765 = vmatpush.xpose.msra.mxu0 %v1798_v25  ;;  %6785 = vmatpush.xpose.msra.mxu1 %v1799_v23  ;;  %v12701_v25 = vld [vmem:[#allocation156_spill] sm:$0xff]  ;;  %v12702_v23 = vld [vmem:[#allocation157_spill] sm:$0xff]  ;;  %1833 = vst [vmem:[#allocation1 + $0x30] ss:$2 sm:$0xff] %v245_v44 }
 0x40a   :  { %v5368_v12 = vadd.f32 %v5367_v3, %v5348_v43  ;;  %v1827_v43 = vld.sshfl [vmem:[#allocation1 + $0x28] sm:$0xff pattern:$0x75316420]  ;;  %v244_v3 = vld [vmem:[%s12203_s1 + $0x3d0] sm:$0x77] }
 0x40b   :  { %v12721_v44 = vld [vmem:[#allocation200_spill] sm:$0xff] }
 0x40c   :  { %v5388_v56 = vadd.f32 %v5387_v11, %v5368_v12 }
 0x40d   :  { %v5407_v54 = vpop.f32.mrf.mxu0  ;;  %v5427_v2 = vpop.f32.mrf.mxu1 }
 0x40e   :  { %v5408_v5 = vadd.f32 %v5407_v54, %v5388_v56  ;;  %6726 = vmatmul.f32.vlgmr.msrb.gmra.mxu2 %v12695_v42  ;;  %6746 = vmatmul.f32.vlgmr.msrb.gmra.mxu3 %v12696_v30  ;;  %v12710_v56 = vld [vmem:[#allocation165_spill] sm:$0xff]  ;;  %v1837_v30 = vld.sshfl [vmem:[#allocation1 + $0x18] sm:$0xff pattern:$0x75316420] }
 0x40f   :  { %6885 = vmatpush.xpose.msrb.mxu2 %v1804_v35  ;;  %6905 = vmatpush.xpose.msrb.mxu3 %v1805_v34  ;;  %v12703_v35 = vld [vmem:[#allocation186_spill] sm:$0xff]  ;;  %v1823_v34 = vld.sshfl [vmem:[#allocation1 + $0x8] sm:$0xff pattern:$0x75316420] }
 0x410   :  { %v5428_v37 = vadd.f32 %v5427_v2, %v5408_v5  ;;  %6686 = vmatmul.f32.vlgmr.msrb.gmra.mxu0 %v12697_v31  ;;  %6706 = vmatmul.f32.vlgmr.msrb.gmra.mxu1 %v12698_v28  ;;  %1830 = vst [vmem:[#allocation1] ss:$2 sm:$0xff] %v242_v36  ;;  %v247_v5 = vld [vmem:[%s12203_s1 + $0x3e8] sm:$0x77] }
 0x411   :  { %v5447_v29 = vpop.f32.mrf.mxu2  ;;  %v5467_v15 = vpop.f32.mrf.mxu3  ;;  %6845 = vmatpush.xpose.msrb.mxu0 %v1802_v59  ;;  %6865 = vmatpush.xpose.msrb.mxu1 %v1803_v46  ;;  %v1826_v46 = vld.sshfl [vmem:[#allocation1 + $0x20] sm:$0xff pattern:$0x75316420]  ;;  %v1836_v42 = vld.sshfl [vmem:[#allocation1 + $0x10] sm:$0xff pattern:$0x75316420] }
 0x412   :  { %v5448_v16 = vadd.f32 %v5447_v29, %v5428_v37  ;;  %1832 = vst [vmem:[#allocation1 + $0x20] ss:$2 sm:$0xff] %v244_v3  ;;  %v1840_v40 = vld.sshfl [vmem:[#allocation1 + $0x30] sm:$0xff pattern:$0x75316420] }
 0x413   :  { %1843 = vst [vmem:[#allocation1 + $0x10] ss:$2 sm:$0xff] %v247_v5 }
 0x414   :  { %v5468_v13 = vadd.f32 %v5467_v15, %v5448_v16  ;;  %v246_v16 = vld [vmem:[%s12203_s1 + $0x3e0] sm:$0x77] }
 0x415   :  { %v5487_v6 = vpop.f32.mrf.mxu0  ;;  %v5507_v21 = vpop.f32.mrf.mxu1 }
 0x416   :  { %v5488_v38 = vadd.f32 %v5487_v6, %v5468_v13  ;;  %6806 = vmatmul.f32.vlgmr.msra.gmra.mxu2 %v12699_v39  ;;  %6826 = vmatmul.f32.vlgmr.msra.gmra.mxu3 %v12700_v41  ;;  %v1841_v39 = vld.sshfl [vmem:[#allocation1 + $0x38] sm:$0xff pattern:$0x75316420] }
 0x417   :  { %6965 = vmatpush.xpose.msra.mxu2 %v1812_v22  ;;  %6985 = vmatpush.xpose.msra.mxu3 %v1813_v27  ;;  %v12708_v27 = vld [vmem:[#allocation167_spill] sm:$0xff]  ;;  %v1835_v28 = vld.sshfl [vmem:[#allocation1 + $0x8] sm:$0xff pattern:$0x75316420] }
 0x418   :  { %v5508_v32 = vadd.f32 %v5507_v21, %v5488_v38  ;;  %6766 = vmatmul.f32.vlgmr.msra.gmra.mxu0 %v12701_v25  ;;  %6786 = vmatmul.f32.vlgmr.msra.gmra.mxu1 %v12702_v23  ;;  %v1834_v31 = vld.sshfl [vmem:[#allocation1] sm:$0xff pattern:$0x75316420]  ;;  %v249_v41 = vld [vmem:[%s12203_s1 + $0x3f8] sm:$0x77] }
 0x419   :  { %v5527_v24 = vpop.f32.mrf.mxu2  ;;  %v5547_v26 = vpop.f32.mrf.mxu3  ;;  %6925 = vmatpush.xpose.msra.mxu0 %v1810_v17  ;;  %6945 = vmatpush.xpose.msra.mxu1 %v1811_v1  ;;  %v12707_v17 = vld [vmem:[#allocation166_spill] sm:$0xff]  ;;  %1842 = vst [vmem:[#allocation1] ss:$2 sm:$0xff] %v246_v16 }
 0x41a   :  { %v5528_v50 = vadd.f32 %v5527_v24, %v5508_v32  ;;  %1845 = vst [vmem:[#allocation1 + $0x30] ss:$2 sm:$0xff] %v249_v41  ;;  %v1838_v24 = vld.sshfl [vmem:[#allocation1 + $0x20] sm:$0xff pattern:$0x75316420] }
 0x41b   :  { %v1849_v36 = vld.sshfl [vmem:[#allocation1 + $0x18] sm:$0xff pattern:$0x75316420]  ;;  %v254_v41 = vld [vmem:[%s12203_s1 + $0x420] sm:$0x77] }
 0x41c   :  { %v5548_v48 = vadd.f32 %v5547_v26, %v5528_v50  ;;  %v12716_v50 = vld [vmem:[#allocation175_spill] sm:$0xff] }
 0x41d   :  { %v5567_v49 = vpop.f32.mrf.mxu0  ;;  %v5587_v52 = vpop.f32.mrf.mxu1 }
 0x41e   :  { %v5568_v63 = vadd.f32 %v5567_v49, %v5548_v48  ;;  %6886 = vmatmul.f32.vlgmr.msrb.gmra.mxu2 %v12703_v35  ;;  %6906 = vmatmul.f32.vlgmr.msrb.gmra.mxu3 %v12704_v33  ;;  %v12717_v49 = vld [vmem:[#allocation172_spill] sm:$0xff]  ;;  %v1848_v35 = vld.sshfl [vmem:[#allocation1 + $0x10] sm:$0xff pattern:$0x75316420] }
 0x41f   :  { %7045 = vmatpush.xpose.msrb.mxu2 %v1816_v0  ;;  %7065 = vmatpush.xpose.msrb.mxu3 %v1817_v47  ;;  %v12711_v0 = vld [vmem:[#allocation194_spill] sm:$0xff]  ;;  %v12712_v47 = vld [vmem:[#allocation195_spill] sm:$0xff] }
 0x420   :  { %v5588_v10 = vadd.f32 %v5587_v52, %v5568_v63  ;;  %6846 = vmatmul.f32.vlgmr.msrb.gmra.mxu0 %v12705_v60  ;;  %6866 = vmatmul.f32.vlgmr.msrb.gmra.mxu1 %v12706_v58  ;;  %v12718_v52 = vld [vmem:[#allocation173_spill] sm:$0xff] }
 0x421   :  { %v5607_v59 = vpop.f32.mrf.mxu2  ;;  %v5627_v61 = vpop.f32.mrf.mxu3  ;;  %7005 = vmatpush.xpose.msrb.mxu0 %v1814_v14  ;;  %7025 = vmatpush.xpose.msrb.mxu1 %v1815_v20  ;;  %v12713_v14 = vld [vmem:[#allocation192_spill] sm:$0xff]  ;;  %v12714_v20 = vld [vmem:[#allocation193_spill] sm:$0xff] }
 0x422   :  { %v5608_v45 = vadd.f32 %v5607_v59, %v5588_v10  ;;  %v1847_v10 = vld.sshfl [vmem:[#allocation1 + $0x8] sm:$0xff pattern:$0x75316420]  ;;  %v250_v59 = vld [vmem:[%s12203_s1 + $0x400] sm:$0x77] }
 0x423   :  { %v251_v60 = vld [vmem:[%s12203_s1 + $0x408] sm:$0x77] }
 0x424   :  { %v5628_v4 = vadd.f32 %v5627_v61, %v5608_v45  ;;  %1855 = vst [vmem:[#allocation1 + $0x10] ss:$2 sm:$0xff] %v251_v60  ;;  %v12733_v60 = vld [vmem:[#allocation188_spill] sm:$0xff] }
 0x425   :  { %v5647_v11 = vpop.f32.mrf.mxu0  ;;  %v5667_v22 = vpop.f32.mrf.mxu1 }
 0x426   :  { %v5648_v12 = vadd.f32 %v5647_v11, %v5628_v4  ;;  %6966 = vmatmul.f32.vlgmr.msra.gmra.mxu2 %v12707_v17  ;;  %6986 = vmatmul.f32.vlgmr.msra.gmra.mxu3 %v12708_v27  ;;  %v12722_v4 = vld [vmem:[#allocation201_spill] sm:$0xff]  ;;  %v1853_v27 = vld.sshfl [vmem:[#allocation1 + $0x38] sm:$0xff pattern:$0x75316420] }
 0x427   :  { %7125 = vmatpush.xpose.msra.mxu2 %v1824_v18  ;;  %7145 = vmatpush.xpose.msra.mxu3 %v1825_v51  ;;  %v12715_v18 = vld [vmem:[#allocation174_spill] sm:$0xff]  ;;  %v1839_v51 = vld.sshfl [vmem:[#allocation1 + $0x28] sm:$0xff pattern:$0x75316420] }
 0x428   :  { %v5668_v1 = vadd.f32 %v5667_v22, %v5648_v12  ;;  %6926 = vmatmul.f32.vlgmr.msra.gmra.mxu0 %v12709_v55  ;;  %6946 = vmatmul.f32.vlgmr.msra.gmra.mxu1 %v12710_v56  ;;  %1844 = vst [vmem:[#allocation1 + $0x20] ss:$2 sm:$0xff] %v248_v19  ;;  %v253_v12 = vld [vmem:[%s12203_s1 + $0x418] sm:$0x77] }
 0x429   :  { %v5687_v53 = vpop.f32.mrf.mxu2  ;;  %v5707_v54 = vpop.f32.mrf.mxu3  ;;  %7085 = vmatpush.xpose.msra.mxu0 %v1822_v9  ;;  %7105 = vmatpush.xpose.msra.mxu1 %v1823_v34  ;;  %v1846_v34 = vld.sshfl [vmem:[#allocation1] sm:$0xff pattern:$0x75316420]  ;;  %v1852_v17 = vld.sshfl [vmem:[#allocation1 + $0x30] sm:$0xff pattern:$0x75316420] }
 0x42a   :  { %v5688_v2 = vadd.f32 %v5687_v53, %v5668_v1  ;;  %1854 = vst [vmem:[#allocation1] ss:$2 sm:$0xff] %v250_v59 }
 0x42b   :  { %1857 = vst [vmem:[#allocation1 + $0x30] ss:$2 sm:$0xff] %v253_v12  ;;  %v1860_v16 = vld.sshfl [vmem:[#allocation1 + $0x10] sm:$0xff pattern:$0x75316420] }
 0x42c   :  { %v5708_v37 = vadd.f32 %v5707_v54, %v5688_v2  ;;  %v252_v2 = vld [vmem:[%s12203_s1 + $0x410] sm:$0x77] }
 0x42d   :  { %v5727_v29 = vpop.f32.mrf.mxu0  ;;  %v5747_v15 = vpop.f32.mrf.mxu1 }
 0x42e   :  { %v5728_v57 = vadd.f32 %v5727_v29, %v5708_v37  ;;  %7046 = vmatmul.f32.vlgmr.msrb.gmra.mxu2 %v12711_v0  ;;  %7066 = vmatmul.f32.vlgmr.msrb.gmra.mxu3 %v12712_v47  ;;  %v1861_v0 = vld.sshfl [vmem:[#allocation1 + $0x18] sm:$0xff pattern:$0x75316420]  ;;  %v255_v47 = vld [vmem:[%s12203_s1 + $0x428] sm:$0x77] }
 0x42f   :  { %7205 = vmatpush.xpose.msrb.mxu2 %v1828_v7  ;;  %7225 = vmatpush.xpose.msrb.mxu3 %v1829_v8  ;;  %v12720_v8 = vld [vmem:[#allocation203_spill] sm:$0xff]  ;;  %v1851_v56 = vld.sshfl [vmem:[#allocation1 + $0x28] sm:$0xff pattern:$0x75316420]  ;;  %1867 = vst [vmem:[#allocation1 + $0x10] ss:$2 sm:$0xff] %v255_v47 }
 0x430   :  { %v5748_v13 = vadd.f32 %v5747_v15, %v5728_v57  ;;  %7006 = vmatmul.f32.vlgmr.msrb.gmra.mxu0 %v12713_v14  ;;  %7026 = vmatmul.f32.vlgmr.msrb.gmra.mxu1 %v12714_v20  ;;  %v1850_v55 = vld.sshfl [vmem:[#allocation1 + $0x20] sm:$0xff pattern:$0x75316420]  ;;  %v260_v47 = vld [vmem:[%s12203_s1 + $0x450] sm:$0x77] }
 0x431   :  { %v5767_v6 = vpop.f32.mrf.mxu2  ;;  %v5787_v21 = vpop.f32.mrf.mxu3  ;;  %7165 = vmatpush.xpose.msrb.mxu0 %v1826_v46  ;;  %7185 = vmatpush.xpose.msrb.mxu1 %v1827_v43  ;;  %v12719_v46 = vld [vmem:[#allocation202_spill] sm:$0xff]  ;;  %1856 = vst [vmem:[#allocation1 + $0x20] ss:$2 sm:$0xff] %v252_v2 }
 0x432   :  { %v5768_v38 = vadd.f32 %v5767_v6, %v5748_v13  ;;  %v1858_v6 = vld.sshfl [vmem:[#allocation1] sm:$0xff pattern:$0x75316420]  ;;  %v1865_v19 = vld.sshfl [vmem:[#allocation1 + $0x38] sm:$0xff pattern:$0x75316420] }
 0x434   :  { %v5788_v32 = vadd.f32 %v5787_v21, %v5768_v38  ;;  %v12728_v38 = vld [vmem:[#allocation215_spill] sm:$0xff] }
 0x435   :  { %v5807_v25 = vpop.f32.mrf.mxu0  ;;  %v5827_v23 = vpop.f32.mrf.mxu1 }
 0x436   :  { %v5808_v26 = vadd.f32 %v5807_v25, %v5788_v32  ;;  %7126 = vmatmul.f32.vlgmr.msra.gmra.mxu2 %v12715_v18  ;;  %7146 = vmatmul.f32.vlgmr.msra.gmra.mxu3 %v12716_v50  ;;  %v12729_v25 = vld [vmem:[#allocation212_spill] sm:$0xff]  ;;  %v1864_v18 = vld.sshfl [vmem:[#allocation1 + $0x30] sm:$0xff pattern:$0x75316420] }
 0x437   :  { %7285 = vmatpush.xpose.msra.mxu2 %v1836_v42  ;;  %7305 = vmatpush.xpose.msra.mxu3 %v1837_v30  ;;  %v12723_v42 = vld [vmem:[#allocation182_spill] sm:$0xff]  ;;  %v12724_v30 = vld [vmem:[#allocation183_spill] sm:$0xff] }
 0x438   :  { %v5828_v48 = vadd.f32 %v5827_v23, %v5808_v26  ;;  %7086 = vmatmul.f32.vlgmr.msra.gmra.mxu0 %v12717_v49  ;;  %7106 = vmatmul.f32.vlgmr.msra.gmra.mxu1 %v12718_v52  ;;  %v12730_v23 = vld [vmem:[#allocation213_spill] sm:$0xff]  ;;  %v257_v49 = vld [vmem:[%s12203_s1 + $0x438] sm:$0x77] }
 0x439   :  { %v5847_v9 = vpop.f32.mrf.mxu2  ;;  %v5867_v63 = vpop.f32.mrf.mxu3  ;;  %7245 = vmatpush.xpose.msra.mxu0 %v1834_v31  ;;  %7265 = vmatpush.xpose.msra.mxu1 %v1835_v28  ;;  %v12725_v31 = vld [vmem:[#allocation180_spill] sm:$0xff]  ;;  %v12726_v28 = vld [vmem:[#allocation181_spill] sm:$0xff]  ;;  %1869 = vst [vmem:[#allocation1 + $0x30] ss:$2 sm:$0xff] %v257_v49 }
 0x43a   :  { %v5848_v33 = vadd.f32 %v5847_v9, %v5828_v48  ;;  %v1863_v48 = vld.sshfl [vmem:[#allocation1 + $0x28] sm:$0xff pattern:$0x75316420]  ;;  %v256_v9 = vld [vmem:[%s12203_s1 + $0x430] sm:$0x77] }
 0x43b   :  { %v12745_v49 = vld [vmem:[#allocation228_spill] sm:$0xff] }
 0x43c   :  { %v5868_v58 = vadd.f32 %v5867_v63, %v5848_v33 }
 0x43d   :  { %v5887_v61 = vpop.f32.mrf.mxu0  ;;  %v5907_v7 = vpop.f32.mrf.mxu1 }
 0x43e   :  { %v5888_v45 = vadd.f32 %v5887_v61, %v5868_v58  ;;  %7206 = vmatmul.f32.vlgmr.msrb.gmra.mxu2 %v12719_v46  ;;  %7226 = vmatmul.f32.vlgmr.msrb.gmra.mxu3 %v12720_v8  ;;  %v12734_v58 = vld [vmem:[#allocation189_spill] sm:$0xff]  ;;  %v1873_v8 = vld.sshfl [vmem:[#allocation1 + $0x18] sm:$0xff pattern:$0x75316420] }
 0x43f   :  { %7365 = vmatpush.xpose.msrb.mxu2 %v1840_v40  ;;  %7385 = vmatpush.xpose.msrb.mxu3 %v1841_v39  ;;  %v12727_v40 = vld [vmem:[#allocation214_spill] sm:$0xff]  ;;  %v1859_v39 = vld.sshfl [vmem:[#allocation1 + $0x8] sm:$0xff pattern:$0x75316420] }
 0x440   :  { %v5908_v43 = vadd.f32 %v5907_v7, %v5888_v45  ;;  %7166 = vmatmul.f32.vlgmr.msrb.gmra.mxu0 %v12721_v44  ;;  %7186 = vmatmul.f32.vlgmr.msrb.gmra.mxu1 %v12722_v4  ;;  %1866 = vst [vmem:[#allocation1] ss:$2 sm:$0xff] %v254_v41  ;;  %v259_v45 = vld [vmem:[%s12203_s1 + $0x448] sm:$0x77] }
 0x441   :  { %v5927_v3 = vpop.f32.mrf.mxu2  ;;  %v5947_v11 = vpop.f32.mrf.mxu3  ;;  %7325 = vmatpush.xpose.msrb.mxu0 %v1838_v24  ;;  %7345 = vmatpush.xpose.msrb.mxu1 %v1839_v51  ;;  %v1862_v51 = vld.sshfl [vmem:[#allocation1 + $0x20] sm:$0xff pattern:$0x75316420]  ;;  %v1872_v46 = vld.sshfl [vmem:[#allocation1 + $0x10] sm:$0xff pattern:$0x75316420] }
 0x442   :  { %v5928_v22 = vadd.f32 %v5927_v3, %v5908_v43  ;;  %1868 = vst [vmem:[#allocation1 + $0x20] ss:$2 sm:$0xff] %v256_v9  ;;  %v1876_v2 = vld.sshfl [vmem:[#allocation1 + $0x30] sm:$0xff pattern:$0x75316420] }
 0x443   :  { %1879 = vst [vmem:[#allocation1 + $0x10] ss:$2 sm:$0xff] %v259_v45 }
 0x444   :  { %v5948_v1 = vadd.f32 %v5947_v11, %v5928_v22  ;;  %v258_v22 = vld [vmem:[%s12203_s1 + $0x440] sm:$0x77] }
 0x445   :  { %v5967_v53 = vpop.f32.mrf.mxu0  ;;  %v5987_v54 = vpop.f32.mrf.mxu1 }
 0x446   :  { %v5968_v5 = vadd.f32 %v5967_v53, %v5948_v1  ;;  %7286 = vmatmul.f32.vlgmr.msra.gmra.mxu2 %v12723_v42  ;;  %7306 = vmatmul.f32.vlgmr.msra.gmra.mxu3 %v12724_v30  ;;  %v1877_v42 = vld.sshfl [vmem:[#allocation1 + $0x38] sm:$0xff pattern:$0x75316420] }
 0x447   :  { %7445 = vmatpush.xpose.msra.mxu2 %v1848_v35  ;;  %7465 = vmatpush.xpose.msra.mxu3 %v1849_v36  ;;  %v12732_v36 = vld [vmem:[#allocation191_spill] sm:$0xff]  ;;  %v1871_v4 = vld.sshfl [vmem:[#allocation1 + $0x8] sm:$0xff pattern:$0x75316420] }
 0x448   :  { %v5988_v37 = vadd.f32 %v5987_v54, %v5968_v5  ;;  %7246 = vmatmul.f32.vlgmr.msra.gmra.mxu0 %v12725_v31  ;;  %7266 = vmatmul.f32.vlgmr.msra.gmra.mxu1 %v12726_v28  ;;  %v1870_v44 = vld.sshfl [vmem:[#allocation1] sm:$0xff pattern:$0x75316420]  ;;  %v261_v30 = vld [vmem:[%s12203_s1 + $0x458] sm:$0x77] }
 0x449   :  { %v6007_v29 = vpop.f32.mrf.mxu2  ;;  %v6027_v15 = vpop.f32.mrf.mxu3  ;;  %7405 = vmatpush.xpose.msra.mxu0 %v1846_v34  ;;  %7425 = vmatpush.xpose.msra.mxu1 %v1847_v10  ;;  %v12731_v34 = vld [vmem:[#allocation190_spill] sm:$0xff]  ;;  %1878 = vst [vmem:[#allocation1] ss:$2 sm:$0xff] %v258_v22 }
 0x44a   :  { %v6008_v57 = vadd.f32 %v6007_v29, %v5988_v37  ;;  %1881 = vst [vmem:[#allocation1 + $0x30] ss:$2 sm:$0xff] %v261_v30  ;;  %v1874_v29 = vld.sshfl [vmem:[#allocation1 + $0x20] sm:$0xff pattern:$0x75316420] }
 0x44b   :  { %v1885_v41 = vld.sshfl [vmem:[#allocation1 + $0x18] sm:$0xff pattern:$0x75316420]  ;;  %v266_v30 = vld [vmem:[%s12203_s1 + $0x480] sm:$0x77] }
 0x44c   :  { %v6028_v13 = vadd.f32 %v6027_v15, %v6008_v57  ;;  %v12740_v57 = vld [vmem:[#allocation199_spill] sm:$0xff] }
 0x44d   :  { %v6047_v14 = vpop.f32.mrf.mxu0  ;;  %v6067_v20 = vpop.f32.mrf.mxu1 }
 0x44e   :  { %v6048_v21 = vadd.f32 %v6047_v14, %v6028_v13  ;;  %7366 = vmatmul.f32.vlgmr.msrb.gmra.mxu2 %v12727_v40  ;;  %7386 = vmatmul.f32.vlgmr.msrb.gmra.mxu3 %v12728_v38  ;;  %v12741_v14 = vld [vmem:[#allocation196_spill] sm:$0xff]  ;;  %v1884_v40 = vld.sshfl [vmem:[#allocation1 + $0x10] sm:$0xff pattern:$0x75316420] }
 0x44f   :  { %7525 = vmatpush.xpose.msrb.mxu2 %v1852_v17  ;;  %7545 = vmatpush.xpose.msrb.mxu3 %v1853_v27  ;;  %v12735_v17 = vld [vmem:[#allocation222_spill] sm:$0xff]  ;;  %v12736_v27 = vld [vmem:[#allocation223_spill] sm:$0xff] }
 0x450   :  { %v6068_v32 = vadd.f32 %v6067_v20, %v6048_v21  ;;  %7326 = vmatmul.f32.vlgmr.msrb.gmra.mxu0 %v12729_v25  ;;  %7346 = vmatmul.f32.vlgmr.msrb.gmra.mxu1 %v12730_v23  ;;  %v12742_v20 = vld [vmem:[#allocation197_spill] sm:$0xff] }
 0x451   :  { %v6087_v24 = vpop.f32.mrf.mxu2  ;;  %v6107_v26 = vpop.f32.mrf.mxu3  ;;  %7485 = vmatpush.xpose.msrb.mxu0 %v1850_v55  ;;  %7505 = vmatpush.xpose.msrb.mxu1 %v1851_v56  ;;  %v12737_v55 = vld [vmem:[#allocation220_spill] sm:$0xff]  ;;  %v12738_v56 = vld [vmem:[#allocation221_spill] sm:$0xff] }
 0x452   :  { %v6088_v50 = vadd.f32 %v6087_v24, %v6068_v32  ;;  %v1883_v32 = vld.sshfl [vmem:[#allocation1 + $0x8] sm:$0xff pattern:$0x75316420]  ;;  %v262_v24 = vld [vmem:[%s12203_s1 + $0x460] sm:$0x77] }
 0x453   :  { %v263_v25 = vld [vmem:[%s12203_s1 + $0x468] sm:$0x77] }
 0x454   :  { %v6108_v52 = vadd.f32 %v6107_v26, %v6088_v50  ;;  %1891 = vst [vmem:[#allocation1 + $0x10] ss:$2 sm:$0xff] %v263_v25  ;;  %v12757_v25 = vld [vmem:[#allocation208_spill] sm:$0xff] }
 0x455   :  { %v6127_v63 = vpop.f32.mrf.mxu0  ;;  %v6147_v35 = vpop.f32.mrf.mxu1 }
 0x456   :  { %v6128_v33 = vadd.f32 %v6127_v63, %v6108_v52  ;;  %7446 = vmatmul.f32.vlgmr.msra.gmra.mxu2 %v12731_v34  ;;  %7466 = vmatmul.f32.vlgmr.msra.gmra.mxu3 %v12732_v36  ;;  %v12746_v52 = vld [vmem:[#allocation229_spill] sm:$0xff]  ;;  %v1889_v36 = vld.sshfl [vmem:[#allocation1 + $0x38] sm:$0xff pattern:$0x75316420] }
 0x457   :  { %7605 = vmatpush.xpose.msra.mxu2 %v1860_v16  ;;  %7625 = vmatpush.xpose.msra.mxu3 %v1861_v0  ;;  %v12739_v16 = vld [vmem:[#allocation198_spill] sm:$0xff]  ;;  %v1875_v0 = vld.sshfl [vmem:[#allocation1 + $0x28] sm:$0xff pattern:$0x75316420] }
 0x458   :  { %v6148_v10 = vadd.f32 %v6147_v35, %v6128_v33  ;;  %7406 = vmatmul.f32.vlgmr.msra.gmra.mxu0 %v12733_v60  ;;  %7426 = vmatmul.f32.vlgmr.msra.gmra.mxu1 %v12734_v58  ;;  %1880 = vst [vmem:[#allocation1 + $0x20] ss:$2 sm:$0xff] %v260_v47  ;;  %v265_v33 = vld [vmem:[%s12203_s1 + $0x478] sm:$0x77] }
 0x459   :  { %v6167_v59 = vpop.f32.mrf.mxu2  ;;  %v6187_v61 = vpop.f32.mrf.mxu3  ;;  %7565 = vmatpush.xpose.msra.mxu0 %v1858_v6  ;;  %7585 = vmatpush.xpose.msra.mxu1 %v1859_v39  ;;  %v1882_v39 = vld.sshfl [vmem:[#allocation1] sm:$0xff pattern:$0x75316420]  ;;  %v1888_v34 = vld.sshfl [vmem:[#allocation1 + $0x30] sm:$0xff pattern:$0x75316420] }
 0x45a   :  { %v6168_v7 = vadd.f32 %v6167_v59, %v6148_v10  ;;  %1890 = vst [vmem:[#allocation1] ss:$2 sm:$0xff] %v262_v24 }
 0x45b   :  { %1893 = vst [vmem:[#allocation1 + $0x30] ss:$2 sm:$0xff] %v265_v33  ;;  %v1896_v22 = vld.sshfl [vmem:[#allocation1 + $0x10] sm:$0xff pattern:$0x75316420] }
 0x45c   :  { %v6188_v43 = vadd.f32 %v6187_v61, %v6168_v7  ;;  %v264_v7 = vld [vmem:[%s12203_s1 + $0x470] sm:$0x77] }
 0x45d   :  { %v6207_v3 = vpop.f32.mrf.mxu0  ;;  %v6227_v11 = vpop.f32.mrf.mxu1 }
 0x45e   :  { %v6208_v12 = vadd.f32 %v6207_v3, %v6188_v43  ;;  %7526 = vmatmul.f32.vlgmr.msrb.gmra.mxu2 %v12735_v17  ;;  %7546 = vmatmul.f32.vlgmr.msrb.gmra.mxu3 %v12736_v27  ;;  %v1897_v17 = vld.sshfl [vmem:[#allocation1 + $0x18] sm:$0xff pattern:$0x75316420]  ;;  %v267_v27 = vld [vmem:[%s12203_s1 + $0x488] sm:$0x77] }
 0x45f   :  { %7685 = vmatpush.xpose.msrb.mxu2 %v1864_v18  ;;  %7705 = vmatpush.xpose.msrb.mxu3 %v1865_v19  ;;  %v12744_v19 = vld [vmem:[#allocation231_spill] sm:$0xff]  ;;  %v1887_v58 = vld.sshfl [vmem:[#allocation1 + $0x28] sm:$0xff pattern:$0x75316420]  ;;  %1903 = vst [vmem:[#allocation1 + $0x10] ss:$2 sm:$0xff] %v267_v27 }
 0x460   :  { %v6228_v1 = vadd.f32 %v6227_v11, %v6208_v12  ;;  %7486 = vmatmul.f32.vlgmr.msrb.gmra.mxu0 %v12737_v55  ;;  %7506 = vmatmul.f32.vlgmr.msrb.gmra.mxu1 %v12738_v56  ;;  %v1886_v60 = vld.sshfl [vmem:[#allocation1 + $0x20] sm:$0xff pattern:$0x75316420]  ;;  %v272_v27 = vld [vmem:[%s12203_s1 + $0x4b0] sm:$0x77] }
 0x461   :  { %v6247_v53 = vpop.f32.mrf.mxu2  ;;  %v6267_v54 = vpop.f32.mrf.mxu3  ;;  %7645 = vmatpush.xpose.msrb.mxu0 %v1862_v51  ;;  %7665 = vmatpush.xpose.msrb.mxu1 %v1863_v48  ;;  %v12743_v51 = vld [vmem:[#allocation230_spill] sm:$0xff]  ;;  %1892 = vst [vmem:[#allocation1 + $0x20] ss:$2 sm:$0xff] %v264_v7 }
 0x462   :  { %v6248_v5 = vadd.f32 %v6247_v53, %v6228_v1  ;;  %v1894_v53 = vld.sshfl [vmem:[#allocation1] sm:$0xff pattern:$0x75316420]  ;;  %v1901_v47 = vld.sshfl [vmem:[#allocation1 + $0x38] sm:$0xff pattern:$0x75316420] }
 0x464   :  { %v6268_v37 = vadd.f32 %v6267_v54, %v6248_v5  ;;  %v12752_v5 = vld [vmem:[#allocation239_spill] sm:$0xff] }
 0x465   :  { %v6287_v31 = vpop.f32.mrf.mxu0  ;;  %v6307_v28 = vpop.f32.mrf.mxu1 }
 0x466   :  { %v6288_v15 = vadd.f32 %v6287_v31, %v6268_v37  ;;  %7606 = vmatmul.f32.vlgmr.msra.gmra.mxu2 %v12739_v16  ;;  %7626 = vmatmul.f32.vlgmr.msra.gmra.mxu3 %v12740_v57  ;;  %v12753_v31 = vld [vmem:[#allocation236_spill] sm:$0xff]  ;;  %v1900_v16 = vld.sshfl [vmem:[#allocation1 + $0x30] sm:$0xff pattern:$0x75316420] }
 0x467   :  { %7765 = vmatpush.xpose.msra.mxu2 %v1872_v46  ;;  %7785 = vmatpush.xpose.msra.mxu3 %v1873_v8  ;;  %v12747_v46 = vld [vmem:[#allocation206_spill] sm:$0xff]  ;;  %v12748_v8 = vld [vmem:[#allocation207_spill] sm:$0xff] }
 0x468   :  { %v6308_v13 = vadd.f32 %v6307_v28, %v6288_v15  ;;  %7566 = vmatmul.f32.vlgmr.msra.gmra.mxu0 %v12741_v14  ;;  %7586 = vmatmul.f32.vlgmr.msra.gmra.mxu1 %v12742_v20  ;;  %v12754_v28 = vld [vmem:[#allocation237_spill] sm:$0xff]  ;;  %v269_v14 = vld [vmem:[%s12203_s1 + $0x498] sm:$0x77] }
 0x469   :  { %v6327_v6 = vpop.f32.mrf.mxu2  ;;  %v6347_v21 = vpop.f32.mrf.mxu3  ;;  %7725 = vmatpush.xpose.msra.mxu0 %v1870_v44  ;;  %7745 = vmatpush.xpose.msra.mxu1 %v1871_v4  ;;  %v12749_v44 = vld [vmem:[#allocation204_spill] sm:$0xff]  ;;  %v12750_v4 = vld [vmem:[#allocation205_spill] sm:$0xff]  ;;  %1905 = vst [vmem:[#allocation1 + $0x30] ss:$2 sm:$0xff] %v269_v14 }
 0x46a   :  { %v6328_v38 = vadd.f32 %v6327_v6, %v6308_v13  ;;  %v1899_v13 = vld.sshfl [vmem:[#allocation1 + $0x28] sm:$0xff pattern:$0x75316420]  ;;  %v268_v6 = vld [vmem:[%s12203_s1 + $0x490] sm:$0x77] }
 0x46b   :  { %v12769_v14 = vld [vmem:[#allocation252_spill] sm:$0xff] }
 0x46c   :  { %v6348_v23 = vadd.f32 %v6347_v21, %v6328_v38 }
 0x46d   :  { %v6367_v26 = vpop.f32.mrf.mxu0  ;;  %v6387_v18 = vpop.f32.mrf.mxu1 }
 0x46e   :  { %v6368_v50 = vadd.f32 %v6367_v26, %v6348_v23  ;;  %7686 = vmatmul.f32.vlgmr.msrb.gmra.mxu2 %v12743_v51  ;;  %7706 = vmatmul.f32.vlgmr.msrb.gmra.mxu3 %v12744_v19  ;;  %v12758_v23 = vld [vmem:[#allocation209_spill] sm:$0xff]  ;;  %v1909_v19 = vld.sshfl [vmem:[#allocation1 + $0x18] sm:$0xff pattern:$0x75316420] }
 0x46f   :  { %7845 = vmatpush.xpose.msrb.mxu2 %v1876_v2  ;;  %7865 = vmatpush.xpose.msrb.mxu3 %v1877_v42  ;;  %v12751_v2 = vld [vmem:[#allocation238_spill] sm:$0xff]  ;;  %v1895_v42 = vld.sshfl [vmem:[#allocation1 + $0x8] sm:$0xff pattern:$0x75316420] }
 0x470   :  { %v6388_v48 = vadd.f32 %v6387_v18, %v6368_v50  ;;  %7646 = vmatmul.f32.vlgmr.msrb.gmra.mxu0 %v12745_v49  ;;  %7666 = vmatmul.f32.vlgmr.msrb.gmra.mxu1 %v12746_v52  ;;  %1902 = vst [vmem:[#allocation1] ss:$2 sm:$0xff] %v266_v30  ;;  %v271_v50 = vld [vmem:[%s12203_s1 + $0x4a8] sm:$0x77] }
 0x471   :  { %v6407_v9 = vpop.f32.mrf.mxu2  ;;  %v6427_v63 = vpop.f32.mrf.mxu3  ;;  %7805 = vmatpush.xpose.msrb.mxu0 %v1874_v29  ;;  %7825 = vmatpush.xpose.msrb.mxu1 %v1875_v0  ;;  %v1898_v0 = vld.sshfl [vmem:[#allocation1 + $0x20] sm:$0xff pattern:$0x75316420]  ;;  %v1908_v51 = vld.sshfl [vmem:[#allocation1 + $0x10] sm:$0xff pattern:$0x75316420] }
 0x472   :  { %v6408_v35 = vadd.f32 %v6407_v9, %v6388_v48  ;;  %1904 = vst [vmem:[#allocation1 + $0x20] ss:$2 sm:$0xff] %v268_v6  ;;  %v1912_v7 = vld.sshfl [vmem:[#allocation1 + $0x30] sm:$0xff pattern:$0x75316420] }
 0x473   :  { %1915 = vst [vmem:[#allocation1 + $0x10] ss:$2 sm:$0xff] %v271_v50 }
 0x474   :  { %v6428_v10 = vadd.f32 %v6427_v63, %v6408_v35  ;;  %v270_v35 = vld [vmem:[%s12203_s1 + $0x4a0] sm:$0x77] }
 0x475   :  { %v6447_v59 = vpop.f32.mrf.mxu0  ;;  %v6467_v61 = vpop.f32.mrf.mxu1 }
 0x476   :  { %v6448_v45 = vadd.f32 %v6447_v59, %v6428_v10  ;;  %7766 = vmatmul.f32.vlgmr.msra.gmra.mxu2 %v12747_v46  ;;  %7786 = vmatmul.f32.vlgmr.msra.gmra.mxu3 %v12748_v8  ;;  %v1913_v46 = vld.sshfl [vmem:[#allocation1 + $0x38] sm:$0xff pattern:$0x75316420] }
 0x477   :  { %7925 = vmatpush.xpose.msra.mxu2 %v1884_v40  ;;  %7945 = vmatpush.xpose.msra.mxu3 %v1885_v41  ;;  %v12756_v41 = vld [vmem:[#allocation211_spill] sm:$0xff]  ;;  %v1907_v52 = vld.sshfl [vmem:[#allocation1 + $0x8] sm:$0xff pattern:$0x75316420] }
 0x478   :  { %v6468_v43 = vadd.f32 %v6467_v61, %v6448_v45  ;;  %7726 = vmatmul.f32.vlgmr.msra.gmra.mxu0 %v12749_v44  ;;  %7746 = vmatmul.f32.vlgmr.msra.gmra.mxu1 %v12750_v4  ;;  %v1906_v49 = vld.sshfl [vmem:[#allocation1] sm:$0xff pattern:$0x75316420]  ;;  %v273_v8 = vld [vmem:[%s12203_s1 + $0x4b8] sm:$0x77] }
 0x479   :  { %v6487_v3 = vpop.f32.mrf.mxu2  ;;  %v6507_v11 = vpop.f32.mrf.mxu3  ;;  %7885 = vmatpush.xpose.msra.mxu0 %v1882_v39  ;;  %7905 = vmatpush.xpose.msra.mxu1 %v1883_v32  ;;  %v12755_v39 = vld [vmem:[#allocation210_spill] sm:$0xff]  ;;  %1914 = vst [vmem:[#allocation1] ss:$2 sm:$0xff] %v270_v35 }
 0x47a   :  { %v6488_v12 = vadd.f32 %v6487_v3, %v6468_v43  ;;  %1917 = vst [vmem:[#allocation1 + $0x30] ss:$2 sm:$0xff] %v273_v8  ;;  %v1910_v3 = vld.sshfl [vmem:[#allocation1 + $0x20] sm:$0xff pattern:$0x75316420] }
 0x47b   :  { %v1921_v30 = vld.sshfl [vmem:[#allocation1 + $0x18] sm:$0xff pattern:$0x75316420]  ;;  %v278_v8 = vld [vmem:[%s12203_s1 + $0x4e0] sm:$0x77] }
 0x47c   :  { %v6508_v1 = vadd.f32 %v6507_v11, %v6488_v12  ;;  %v12764_v12 = vld [vmem:[#allocation219_spill] sm:$0xff] }
 0x47d   :  { %v6527_v55 = vpop.f32.mrf.mxu0  ;;  %v6547_v56 = vpop.f32.mrf.mxu1 }
 0x47e   :  { %v6528_v54 = vadd.f32 %v6527_v55, %v6508_v1  ;;  %7846 = vmatmul.f32.vlgmr.msrb.gmra.mxu2 %v12751_v2  ;;  %7866 = vmatmul.f32.vlgmr.msrb.gmra.mxu3 %v12752_v5  ;;  %v12765_v55 = vld [vmem:[#allocation216_spill] sm:$0xff]  ;;  %v1920_v2 = vld.sshfl [vmem:[#allocation1 + $0x10] sm:$0xff pattern:$0x75316420] }
 0x47f   :  { %8005 = vmatpush.xpose.msrb.mxu2 %v1888_v34  ;;  %8025 = vmatpush.xpose.msrb.mxu3 %v1889_v36  ;;  %v12759_v34 = vld [vmem:[#allocation246_spill] sm:$0xff]  ;;  %v12760_v36 = vld [vmem:[#allocation247_spill] sm:$0xff] }
 0x480   :  { %v6548_v37 = vadd.f32 %v6547_v56, %v6528_v54  ;;  %7806 = vmatmul.f32.vlgmr.msrb.gmra.mxu0 %v12753_v31  ;;  %7826 = vmatmul.f32.vlgmr.msrb.gmra.mxu1 %v12754_v28  ;;  %v12766_v56 = vld [vmem:[#allocation217_spill] sm:$0xff] }
 0x481   :  { %v6567_v29 = vpop.f32.mrf.mxu2  ;;  %v6587_v15 = vpop.f32.mrf.mxu3  ;;  %7965 = vmatpush.xpose.msrb.mxu0 %v1886_v60  ;;  %7985 = vmatpush.xpose.msrb.mxu1 %v1887_v58  ;;  %v12761_v60 = vld [vmem:[#allocation244_spill] sm:$0xff]  ;;  %v12762_v58 = vld [vmem:[#allocation245_spill] sm:$0xff] }
 0x482   :  { %v6568_v57 = vadd.f32 %v6567_v29, %v6548_v37  ;;  %v1919_v37 = vld.sshfl [vmem:[#allocation1 + $0x8] sm:$0xff pattern:$0x75316420]  ;;  %v274_v29 = vld [vmem:[%s12203_s1 + $0x4c0] sm:$0x77] }
 0x483   :  { %v275_v31 = vld [vmem:[%s12203_s1 + $0x4c8] sm:$0x77] }
 0x484   :  { %v6588_v20 = vadd.f32 %v6587_v15, %v6568_v57  ;;  %1927 = vst [vmem:[#allocation1 + $0x10] ss:$2 sm:$0xff] %v275_v31  ;;  %v12781_v31 = vld [vmem:[#allocation232_spill] sm:$0xff] }
 0x485   :  { %v6607_v21 = vpop.f32.mrf.mxu0  ;;  %v6627_v40 = vpop.f32.mrf.mxu1 }
 0x486   :  { %v6608_v38 = vadd.f32 %v6607_v21, %v6588_v20  ;;  %7926 = vmatmul.f32.vlgmr.msra.gmra.mxu2 %v12755_v39  ;;  %7946 = vmatmul.f32.vlgmr.msra.gmra.mxu3 %v12756_v41  ;;  %v12770_v20 = vld [vmem:[#allocation253_spill] sm:$0xff]  ;;  %v1925_v41 = vld.sshfl [vmem:[#allocation1 + $0x38] sm:$0xff pattern:$0x75316420] }
 0x487   :  { %8085 = vmatpush.xpose.msra.mxu2 %v1896_v22  ;;  %8105 = vmatpush.xpose.msra.mxu3 %v1897_v17  ;;  %v12763_v22 = vld [vmem:[#allocation218_spill] sm:$0xff]  ;;  %v1911_v17 = vld.sshfl [vmem:[#allocation1 + $0x28] sm:$0xff pattern:$0x75316420] }
 0x488   :  { %v6628_v32 = vadd.f32 %v6627_v40, %v6608_v38  ;;  %7886 = vmatmul.f32.vlgmr.msra.gmra.mxu0 %v12757_v25  ;;  %7906 = vmatmul.f32.vlgmr.msra.gmra.mxu1 %v12758_v23  ;;  %1916 = vst [vmem:[#allocation1 + $0x20] ss:$2 sm:$0xff] %v272_v27  ;;  %v277_v38 = vld [vmem:[%s12203_s1 + $0x4d8] sm:$0x77] }
 0x489   :  { %v6647_v24 = vpop.f32.mrf.mxu2  ;;  %v6667_v26 = vpop.f32.mrf.mxu3  ;;  %8045 = vmatpush.xpose.msra.mxu0 %v1894_v53  ;;  %8065 = vmatpush.xpose.msra.mxu1 %v1895_v42  ;;  %v1918_v42 = vld.sshfl [vmem:[#allocation1] sm:$0xff pattern:$0x75316420]  ;;  %v1924_v39 = vld.sshfl [vmem:[#allocation1 + $0x30] sm:$0xff pattern:$0x75316420] }
 0x48a   :  { %v6648_v18 = vadd.f32 %v6647_v24, %v6628_v32  ;;  %1926 = vst [vmem:[#allocation1] ss:$2 sm:$0xff] %v274_v29 }
 0x48b   :  { %1929 = vst [vmem:[#allocation1 + $0x30] ss:$2 sm:$0xff] %v277_v38  ;;  %v1932_v35 = vld.sshfl [vmem:[#allocation1 + $0x10] sm:$0xff pattern:$0x75316420] }
 0x48c   :  { %v6668_v48 = vadd.f32 %v6667_v26, %v6648_v18  ;;  %v276_v18 = vld [vmem:[%s12203_s1 + $0x4d0] sm:$0x77] }
 0x48d   :  { %v6687_v9 = vpop.f32.mrf.mxu0  ;;  %v6707_v63 = vpop.f32.mrf.mxu1 }
 0x48e   :  { %v6688_v33 = vadd.f32 %v6687_v9, %v6668_v48  ;;  %8006 = vmatmul.f32.vlgmr.msrb.gmra.mxu2 %v12759_v34  ;;  %8026 = vmatmul.f32.vlgmr.msrb.gmra.mxu3 %v12760_v36  ;;  %v1933_v34 = vld.sshfl [vmem:[#allocation1 + $0x18] sm:$0xff pattern:$0x75316420]  ;;  %v279_v36 = vld [vmem:[%s12203_s1 + $0x4e8] sm:$0x77] }
 0x48f   :  { %8165 = vmatpush.xpose.msrb.mxu2 %v1900_v16  ;;  %8185 = vmatpush.xpose.msrb.mxu3 %v1901_v47  ;;  %v12768_v47 = vld [vmem:[#allocation255_spill] sm:$0xff]  ;;  %v1923_v23 = vld.sshfl [vmem:[#allocation1 + $0x28] sm:$0xff pattern:$0x75316420]  ;;  %1939 = vst [vmem:[#allocation1 + $0x10] ss:$2 sm:$0xff] %v279_v36 }
 0x490   :  { %v6708_v10 = vadd.f32 %v6707_v63, %v6688_v33  ;;  %7966 = vmatmul.f32.vlgmr.msrb.gmra.mxu0 %v12761_v60  ;;  %7986 = vmatmul.f32.vlgmr.msrb.gmra.mxu1 %v12762_v58  ;;  %v1922_v25 = vld.sshfl [vmem:[#allocation1 + $0x20] sm:$0xff pattern:$0x75316420]  ;;  %v284_v36 = vld [vmem:[%s12203_s1 + $0x510] sm:$0x77] }
 0x491   :  { %v6727_v59 = vpop.f32.mrf.mxu2  ;;  %v6747_v61 = vpop.f32.mrf.mxu3  ;;  %8125 = vmatpush.xpose.msrb.mxu0 %v1898_v0  ;;  %8145 = vmatpush.xpose.msrb.mxu1 %v1899_v13  ;;  %v12767_v0 = vld [vmem:[#allocation254_spill] sm:$0xff]  ;;  %1928 = vst [vmem:[#allocation1 + $0x20] ss:$2 sm:$0xff] %v276_v18 }
 0x492   :  { %v6728_v45 = vadd.f32 %v6727_v59, %v6708_v10  ;;  %v1930_v59 = vld.sshfl [vmem:[#allocation1] sm:$0xff pattern:$0x75316420]  ;;  %v1937_v27 = vld.sshfl [vmem:[#allocation1 + $0x38] sm:$0xff pattern:$0x75316420] }
 0x494   :  { %v6748_v43 = vadd.f32 %v6747_v61, %v6728_v45  ;;  %v12776_v45 = vld [vmem:[#allocation263_spill] sm:$0xff] }
 0x495   :  { %v6767_v44 = vpop.f32.mrf.mxu0  ;;  %v6787_v4 = vpop.f32.mrf.mxu1 }
 0x496   :  { %v6768_v11 = vadd.f32 %v6767_v44, %v6748_v43  ;;  %8086 = vmatmul.f32.vlgmr.msra.gmra.mxu2 %v12763_v22  ;;  %8106 = vmatmul.f32.vlgmr.msra.gmra.mxu3 %v12764_v12  ;;  %v12777_v44 = vld [vmem:[#allocation260_spill] sm:$0xff]  ;;  %v1936_v22 = vld.sshfl [vmem:[#allocation1 + $0x30] sm:$0xff pattern:$0x75316420] }
 0x497   :  { %8245 = vmatpush.xpose.msra.mxu2 %v1908_v51  ;;  %8265 = vmatpush.xpose.msra.mxu3 %v1909_v19  ;;  %v12771_v51 = vld [vmem:[#allocation226_spill] sm:$0xff]  ;;  %v12772_v19 = vld [vmem:[#allocation227_spill] sm:$0xff] }
 0x498   :  { %v6788_v1 = vadd.f32 %v6787_v4, %v6768_v11  ;;  %8046 = vmatmul.f32.vlgmr.msra.gmra.mxu0 %v12765_v55  ;;  %8066 = vmatmul.f32.vlgmr.msra.gmra.mxu1 %v12766_v56  ;;  %v12778_v4 = vld [vmem:[#allocation261_spill] sm:$0xff]  ;;  %v281_v55 = vld [vmem:[%s12203_s1 + $0x4f8] sm:$0x77] }
 0x499   :  { %v6807_v53 = vpop.f32.mrf.mxu2  ;;  %v6827_v54 = vpop.f32.mrf.mxu3  ;;  %8205 = vmatpush.xpose.msra.mxu0 %v1906_v49  ;;  %8225 = vmatpush.xpose.msra.mxu1 %v1907_v52  ;;  %v12773_v49 = vld [vmem:[#allocation224_spill] sm:$0xff]  ;;  %v12774_v52 = vld [vmem:[#allocation225_spill] sm:$0xff]  ;;  %1941 = vst [vmem:[#allocation1 + $0x30] ss:$2 sm:$0xff] %v281_v55 }
 0x49a   :  { %v6808_v5 = vadd.f32 %v6807_v53, %v6788_v1  ;;  %v1935_v1 = vld.sshfl [vmem:[#allocation1 + $0x28] sm:$0xff pattern:$0x75316420]  ;;  %v280_v53 = vld [vmem:[%s12203_s1 + $0x4f0] sm:$0x77] }
 0x49b   :  { %v12793_v55 = vld [vmem:[#allocation276_spill] sm:$0xff] }
 0x49c   :  { %v6828_v28 = vadd.f32 %v6827_v54, %v6808_v5 }
 0x49d   :  { %v6847_v15 = vpop.f32.mrf.mxu0  ;;  %v6867_v16 = vpop.f32.mrf.mxu1 }
 0x49e   :  { %v6848_v57 = vadd.f32 %v6847_v15, %v6828_v28  ;;  %8166 = vmatmul.f32.vlgmr.msrb.gmra.mxu2 %v12767_v0  ;;  %8186 = vmatmul.f32.vlgmr.msrb.gmra.mxu3 %v12768_v47  ;;  %v12782_v28 = vld [vmem:[#allocation233_spill] sm:$0xff]  ;;  %v1945_v47 = vld.sshfl [vmem:[#allocation1 + $0x18] sm:$0xff pattern:$0x75316420] }
 0x49f   :  { %8325 = vmatpush.xpose.msrb.mxu2 %v1912_v7  ;;  %8345 = vmatpush.xpose.msrb.mxu3 %v1913_v46  ;;  %v12775_v7 = vld [vmem:[#allocation262_spill] sm:$0xff]  ;;  %v1931_v46 = vld.sshfl [vmem:[#allocation1 + $0x8] sm:$0xff pattern:$0x75316420] }
 0x4a0   :  { %v6868_v13 = vadd.f32 %v6867_v16, %v6848_v57  ;;  %8126 = vmatmul.f32.vlgmr.msrb.gmra.mxu0 %v12769_v14  ;;  %8146 = vmatmul.f32.vlgmr.msrb.gmra.mxu1 %v12770_v20  ;;  %1938 = vst [vmem:[#allocation1] ss:$2 sm:$0xff] %v278_v8  ;;  %v283_v57 = vld [vmem:[%s12203_s1 + $0x508] sm:$0x77] }
 0x4a1   :  { %v6887_v6 = vpop.f32.mrf.mxu2  ;;  %v6907_v21 = vpop.f32.mrf.mxu3  ;;  %8285 = vmatpush.xpose.msrb.mxu0 %v1910_v3  ;;  %8305 = vmatpush.xpose.msrb.mxu1 %v1911_v17  ;;  %v1934_v17 = vld.sshfl [vmem:[#allocation1 + $0x20] sm:$0xff pattern:$0x75316420]  ;;  %v1944_v0 = vld.sshfl [vmem:[#allocation1 + $0x10] sm:$0xff pattern:$0x75316420] }
 0x4a2   :  { %v6888_v40 = vadd.f32 %v6887_v6, %v6868_v13  ;;  %1940 = vst [vmem:[#allocation1 + $0x20] ss:$2 sm:$0xff] %v280_v53  ;;  %v1948_v18 = vld.sshfl [vmem:[#allocation1 + $0x30] sm:$0xff pattern:$0x75316420] }
 0x4a3   :  { %1951 = vst [vmem:[#allocation1 + $0x10] ss:$2 sm:$0xff] %v283_v57 }
 0x4a4   :  { %v6908_v32 = vadd.f32 %v6907_v21, %v6888_v40  ;;  %v282_v40 = vld [vmem:[%s12203_s1 + $0x500] sm:$0x77] }
 0x4a5   :  { %v6927_v24 = vpop.f32.mrf.mxu0  ;;  %v6947_v26 = vpop.f32.mrf.mxu1 }
 0x4a6   :  { %v6928_v50 = vadd.f32 %v6927_v24, %v6908_v32  ;;  %8246 = vmatmul.f32.vlgmr.msra.gmra.mxu2 %v12771_v51  ;;  %8266 = vmatmul.f32.vlgmr.msra.gmra.mxu3 %v12772_v19  ;;  %v1949_v51 = vld.sshfl [vmem:[#allocation1 + $0x38] sm:$0xff pattern:$0x75316420] }
 0x4a7   :  { %8405 = vmatpush.xpose.msra.mxu2 %v1920_v2  ;;  %8425 = vmatpush.xpose.msra.mxu3 %v1921_v30  ;;  %v12780_v30 = vld [vmem:[#allocation235_spill] sm:$0xff]  ;;  %v1943_v20 = vld.sshfl [vmem:[#allocation1 + $0x8] sm:$0xff pattern:$0x75316420] }
 0x4a8   :  { %v6948_v48 = vadd.f32 %v6947_v26, %v6928_v50  ;;  %8206 = vmatmul.f32.vlgmr.msra.gmra.mxu0 %v12773_v49  ;;  %8226 = vmatmul.f32.vlgmr.msra.gmra.mxu1 %v12774_v52  ;;  %v1942_v14 = vld.sshfl [vmem:[#allocation1] sm:$0xff pattern:$0x75316420]  ;;  %v285_v19 = vld [vmem:[%s12203_s1 + $0x518] sm:$0x77] }
 0x4a9   :  { %v6967_v9 = vpop.f32.mrf.mxu2  ;;  %v6987_v63 = vpop.f32.mrf.mxu3  ;;  %8365 = vmatpush.xpose.msra.mxu0 %v1918_v42  ;;  %8385 = vmatpush.xpose.msra.mxu1 %v1919_v37  ;;  %v12779_v42 = vld [vmem:[#allocation234_spill] sm:$0xff]  ;;  %1950 = vst [vmem:[#allocation1] ss:$2 sm:$0xff] %v282_v40 }
 0x4aa   :  { %v6968_v33 = vadd.f32 %v6967_v9, %v6948_v48  ;;  %1953 = vst [vmem:[#allocation1 + $0x30] ss:$2 sm:$0xff] %v285_v19  ;;  %v1946_v9 = vld.sshfl [vmem:[#allocation1 + $0x20] sm:$0xff pattern:$0x75316420] }
 0x4ab   :  { %v1957_v8 = vld.sshfl [vmem:[#allocation1 + $0x18] sm:$0xff pattern:$0x75316420]  ;;  %v290_v19 = vld [vmem:[%s12203_s1 + $0x540] sm:$0x77] }
 0x4ac   :  { %v6988_v10 = vadd.f32 %v6987_v63, %v6968_v33  ;;  %v12788_v33 = vld [vmem:[#allocation243_spill] sm:$0xff] }
 0x4ad   :  { %v7007_v60 = vpop.f32.mrf.mxu0  ;;  %v7027_v58 = vpop.f32.mrf.mxu1 }
 0x4ae   :  { %v7008_v61 = vadd.f32 %v7007_v60, %v6988_v10  ;;  %8326 = vmatmul.f32.vlgmr.msrb.gmra.mxu2 %v12775_v7  ;;  %8346 = vmatmul.f32.vlgmr.msrb.gmra.mxu3 %v12776_v45  ;;  %v12789_v60 = vld [vmem:[#allocation240_spill] sm:$0xff]  ;;  %v1956_v7 = vld.sshfl [vmem:[#allocation1 + $0x10] sm:$0xff pattern:$0x75316420] }
 0x4af   :  { %8485 = vmatpush.xpose.msrb.mxu2 %v1924_v39  ;;  %8505 = vmatpush.xpose.msrb.mxu3 %v1925_v41  ;;  %v12783_v39 = vld [vmem:[#allocation270_spill] sm:$0xff]  ;;  %v12784_v41 = vld [vmem:[#allocation271_spill] sm:$0xff] }
 0x4b0   :  { %v7028_v43 = vadd.f32 %v7027_v58, %v7008_v61  ;;  %8286 = vmatmul.f32.vlgmr.msrb.gmra.mxu0 %v12777_v44  ;;  %8306 = vmatmul.f32.vlgmr.msrb.gmra.mxu1 %v12778_v4  ;;  %v12790_v58 = vld [vmem:[#allocation241_spill] sm:$0xff] }
 0x4b1   :  { %v7047_v3 = vpop.f32.mrf.mxu2  ;;  %v7067_v11 = vpop.f32.mrf.mxu3  ;;  %8445 = vmatpush.xpose.msrb.mxu0 %v1922_v25  ;;  %8465 = vmatpush.xpose.msrb.mxu1 %v1923_v23  ;;  %v12785_v25 = vld [vmem:[#allocation268_spill] sm:$0xff]  ;;  %v12786_v23 = vld [vmem:[#allocation269_spill] sm:$0xff] }
 0x4b2   :  { %v7048_v12 = vadd.f32 %v7047_v3, %v7028_v43  ;;  %v1955_v43 = vld.sshfl [vmem:[#allocation1 + $0x8] sm:$0xff pattern:$0x75316420]  ;;  %v286_v3 = vld [vmem:[%s12203_s1 + $0x520] sm:$0x77] }
 0x4b3   :  { %v287_v44 = vld [vmem:[%s12203_s1 + $0x528] sm:$0x77] }
 0x4b4   :  { %v7068_v56 = vadd.f32 %v7067_v11, %v7048_v12  ;;  %1963 = vst [vmem:[#allocation1 + $0x10] ss:$2 sm:$0xff] %v287_v44  ;;  %v12805_v44 = vld [vmem:[#allocation256_spill] sm:$0xff] }
 0x4b5   :  { %v7087_v54 = vpop.f32.mrf.mxu0  ;;  %v7107_v2 = vpop.f32.mrf.mxu1 }
 0x4b6   :  { %v7088_v5 = vadd.f32 %v7087_v54, %v7068_v56  ;;  %8406 = vmatmul.f32.vlgmr.msra.gmra.mxu2 %v12779_v42  ;;  %8426 = vmatmul.f32.vlgmr.msra.gmra.mxu3 %v12780_v30  ;;  %v12794_v56 = vld [vmem:[#allocation277_spill] sm:$0xff]  ;;  %v1961_v30 = vld.sshfl [vmem:[#allocation1 + $0x38] sm:$0xff pattern:$0x75316420] }
 0x4b7   :  { %8565 = vmatpush.xpose.msra.mxu2 %v1932_v35  ;;  %8585 = vmatpush.xpose.msra.mxu3 %v1933_v34  ;;  %v12787_v35 = vld [vmem:[#allocation242_spill] sm:$0xff]  ;;  %v1947_v34 = vld.sshfl [vmem:[#allocation1 + $0x28] sm:$0xff pattern:$0x75316420] }
 0x4b8   :  { %v7108_v37 = vadd.f32 %v7107_v2, %v7088_v5  ;;  %8366 = vmatmul.f32.vlgmr.msra.gmra.mxu0 %v12781_v31  ;;  %8386 = vmatmul.f32.vlgmr.msra.gmra.mxu1 %v12782_v28  ;;  %1952 = vst [vmem:[#allocation1 + $0x20] ss:$2 sm:$0xff] %v284_v36  ;;  %v289_v5 = vld [vmem:[%s12203_s1 + $0x538] sm:$0x77] }
 0x4b9   :  { %v7127_v29 = vpop.f32.mrf.mxu2  ;;  %v7147_v15 = vpop.f32.mrf.mxu3  ;;  %8525 = vmatpush.xpose.msra.mxu0 %v1930_v59  ;;  %8545 = vmatpush.xpose.msra.mxu1 %v1931_v46  ;;  %v1954_v46 = vld.sshfl [vmem:[#allocation1] sm:$0xff pattern:$0x75316420]  ;;  %v1960_v42 = vld.sshfl [vmem:[#allocation1 + $0x30] sm:$0xff pattern:$0x75316420] }
 0x4ba   :  { %v7128_v16 = vadd.f32 %v7127_v29, %v7108_v37  ;;  %1962 = vst [vmem:[#allocation1] ss:$2 sm:$0xff] %v286_v3 }
 0x4bb   :  { %1965 = vst [vmem:[#allocation1 + $0x30] ss:$2 sm:$0xff] %v289_v5  ;;  %v1968_v40 = vld.sshfl [vmem:[#allocation1 + $0x10] sm:$0xff pattern:$0x75316420] }
 0x4bc   :  { %v7148_v13 = vadd.f32 %v7147_v15, %v7128_v16  ;;  %v288_v16 = vld [vmem:[%s12203_s1 + $0x530] sm:$0x77] }
 0x4bd   :  { %v7167_v6 = vpop.f32.mrf.mxu0  ;;  %v7187_v21 = vpop.f32.mrf.mxu1 }
 0x4be   :  { %v7168_v38 = vadd.f32 %v7167_v6, %v7148_v13  ;;  %8486 = vmatmul.f32.vlgmr.msrb.gmra.mxu2 %v12783_v39  ;;  %8506 = vmatmul.f32.vlgmr.msrb.gmra.mxu3 %v12784_v41  ;;  %v1969_v39 = vld.sshfl [vmem:[#allocation1 + $0x18] sm:$0xff pattern:$0x75316420]  ;;  %v291_v41 = vld [vmem:[%s12203_s1 + $0x548] sm:$0x77] }
 0x4bf   :  { %8645 = vmatpush.xpose.msrb.mxu2 %v1936_v22  ;;  %8665 = vmatpush.xpose.msrb.mxu3 %v1937_v27  ;;  %v12792_v27 = vld [vmem:[#allocation279_spill] sm:$0xff]  ;;  %v1959_v28 = vld.sshfl [vmem:[#allocation1 + $0x28] sm:$0xff pattern:$0x75316420]  ;;  %1975 = vst [vmem:[#allocation1 + $0x10] ss:$2 sm:$0xff] %v291_v41 }
 0x4c0   :  { %v7188_v32 = vadd.f32 %v7187_v21, %v7168_v38  ;;  %8446 = vmatmul.f32.vlgmr.msrb.gmra.mxu0 %v12785_v25  ;;  %8466 = vmatmul.f32.vlgmr.msrb.gmra.mxu1 %v12786_v23  ;;  %v1958_v31 = vld.sshfl [vmem:[#allocation1 + $0x20] sm:$0xff pattern:$0x75316420]  ;;  %v296_v41 = vld [vmem:[%s12203_s1 + $0x570] sm:$0x77] }
 0x4c1   :  { %v7207_v24 = vpop.f32.mrf.mxu2  ;;  %v7227_v26 = vpop.f32.mrf.mxu3  ;;  %8605 = vmatpush.xpose.msrb.mxu0 %v1934_v17  ;;  %8625 = vmatpush.xpose.msrb.mxu1 %v1935_v1  ;;  %v12791_v17 = vld [vmem:[#allocation278_spill] sm:$0xff]  ;;  %1964 = vst [vmem:[#allocation1 + $0x20] ss:$2 sm:$0xff] %v288_v16 }
 0x4c2   :  { %v7208_v50 = vadd.f32 %v7207_v24, %v7188_v32  ;;  %v1966_v24 = vld.sshfl [vmem:[#allocation1] sm:$0xff pattern:$0x75316420]  ;;  %v1973_v36 = vld.sshfl [vmem:[#allocation1 + $0x38] sm:$0xff pattern:$0x75316420] }
 0x4c4   :  { %v7228_v48 = vadd.f32 %v7227_v26, %v7208_v50  ;;  %v12800_v50 = vld [vmem:[#allocation287_spill] sm:$0xff] }
 0x4c5   :  { %v7247_v49 = vpop.f32.mrf.mxu0  ;;  %v7267_v52 = vpop.f32.mrf.mxu1 }
 0x4c6   :  { %v7248_v63 = vadd.f32 %v7247_v49, %v7228_v48  ;;  %8566 = vmatmul.f32.vlgmr.msra.gmra.mxu2 %v12787_v35  ;;  %8586 = vmatmul.f32.vlgmr.msra.gmra.mxu3 %v12788_v33  ;;  %v12801_v49 = vld [vmem:[#allocation284_spill] sm:$0xff]  ;;  %v1972_v35 = vld.sshfl [vmem:[#allocation1 + $0x30] sm:$0xff pattern:$0x75316420] }
 0x4c7   :  { %8725 = vmatpush.xpose.msra.mxu2 %v1944_v0  ;;  %8745 = vmatpush.xpose.msra.mxu3 %v1945_v47  ;;  %v12795_v0 = vld [vmem:[#allocation250_spill] sm:$0xff]  ;;  %v12796_v47 = vld [vmem:[#allocation251_spill] sm:$0xff] }
 0x4c8   :  { %v7268_v10 = vadd.f32 %v7267_v52, %v7248_v63  ;;  %8526 = vmatmul.f32.vlgmr.msra.gmra.mxu0 %v12789_v60  ;;  %8546 = vmatmul.f32.vlgmr.msra.gmra.mxu1 %v12790_v58  ;;  %v12802_v52 = vld [vmem:[#allocation285_spill] sm:$0xff]  ;;  %v293_v60 = vld [vmem:[%s12203_s1 + $0x558] sm:$0x77] }
 0x4c9   :  { %v7287_v59 = vpop.f32.mrf.mxu2  ;;  %v7307_v61 = vpop.f32.mrf.mxu3  ;;  %8685 = vmatpush.xpose.msra.mxu0 %v1942_v14  ;;  %8705 = vmatpush.xpose.msra.mxu1 %v1943_v20  ;;  %v12797_v14 = vld [vmem:[#allocation248_spill] sm:$0xff]  ;;  %v12798_v20 = vld [vmem:[#allocation249_spill] sm:$0xff]  ;;  %1977 = vst [vmem:[#allocation1 + $0x30] ss:$2 sm:$0xff] %v293_v60 }
 0x4ca   :  { %v7288_v45 = vadd.f32 %v7287_v59, %v7268_v10  ;;  %v1971_v10 = vld.sshfl [vmem:[#allocation1 + $0x28] sm:$0xff pattern:$0x75316420]  ;;  %v292_v59 = vld [vmem:[%s12203_s1 + $0x550] sm:$0x77] }
 0x4cb   :  { %v12817_v60 = vld [vmem:[#allocation300_spill] sm:$0xff] }
 0x4cc   :  { %v7308_v4 = vadd.f32 %v7307_v61, %v7288_v45 }
 0x4cd   :  { %v7327_v11 = vpop.f32.mrf.mxu0  ;;  %v7347_v22 = vpop.f32.mrf.mxu1 }
 0x4ce   :  { %v7328_v12 = vadd.f32 %v7327_v11, %v7308_v4  ;;  %8646 = vmatmul.f32.vlgmr.msrb.gmra.mxu2 %v12791_v17  ;;  %8666 = vmatmul.f32.vlgmr.msrb.gmra.mxu3 %v12792_v27  ;;  %v12806_v4 = vld [vmem:[#allocation257_spill] sm:$0xff]  ;;  %v1981_v27 = vld.sshfl [vmem:[#allocation1 + $0x18] sm:$0xff pattern:$0x75316420] }
 0x4cf   :  { %8805 = vmatpush.xpose.msrb.mxu2 %v1948_v18  ;;  %8825 = vmatpush.xpose.msrb.mxu3 %v1949_v51  ;;  %v12799_v18 = vld [vmem:[#allocation286_spill] sm:$0xff]  ;;  %v1967_v51 = vld.sshfl [vmem:[#allocation1 + $0x8] sm:$0xff pattern:$0x75316420] }
 0x4d0   :  { %v7348_v1 = vadd.f32 %v7347_v22, %v7328_v12  ;;  %8606 = vmatmul.f32.vlgmr.msrb.gmra.mxu0 %v12793_v55  ;;  %8626 = vmatmul.f32.vlgmr.msrb.gmra.mxu1 %v12794_v56  ;;  %1974 = vst [vmem:[#allocation1] ss:$2 sm:$0xff] %v290_v19  ;;  %v295_v12 = vld [vmem:[%s12203_s1 + $0x568] sm:$0x77] }
 0x4d1   :  { %v7367_v53 = vpop.f32.mrf.mxu2  ;;  %v7387_v54 = vpop.f32.mrf.mxu3  ;;  %8765 = vmatpush.xpose.msrb.mxu0 %v1946_v9  ;;  %8785 = vmatpush.xpose.msrb.mxu1 %v1947_v34  ;;  %v1970_v34 = vld.sshfl [vmem:[#allocation1 + $0x20] sm:$0xff pattern:$0x75316420]  ;;  %v1980_v17 = vld.sshfl [vmem:[#allocation1 + $0x10] sm:$0xff pattern:$0x75316420] }
 0x4d2   :  { %v7368_v2 = vadd.f32 %v7367_v53, %v7348_v1  ;;  %1976 = vst [vmem:[#allocation1 + $0x20] ss:$2 sm:$0xff] %v292_v59  ;;  %v1984_v16 = vld.sshfl [vmem:[#allocation1 + $0x30] sm:$0xff pattern:$0x75316420] }
 0x4d3   :  { %1987 = vst [vmem:[#allocation1 + $0x10] ss:$2 sm:$0xff] %v295_v12 }
 0x4d4   :  { %v7388_v37 = vadd.f32 %v7387_v54, %v7368_v2  ;;  %v294_v2 = vld [vmem:[%s12203_s1 + $0x560] sm:$0x77] }
 0x4d5   :  { %v7407_v29 = vpop.f32.mrf.mxu0  ;;  %v7427_v15 = vpop.f32.mrf.mxu1 }
 0x4d6   :  { %v7408_v57 = vadd.f32 %v7407_v29, %v7388_v37  ;;  %8726 = vmatmul.f32.vlgmr.msra.gmra.mxu2 %v12795_v0  ;;  %8746 = vmatmul.f32.vlgmr.msra.gmra.mxu3 %v12796_v47  ;;  %v1985_v0 = vld.sshfl [vmem:[#allocation1 + $0x38] sm:$0xff pattern:$0x75316420] }
 0x4d7   :  { %8885 = vmatpush.xpose.msra.mxu2 %v1956_v7  ;;  %8905 = vmatpush.xpose.msra.mxu3 %v1957_v8  ;;  %v12804_v8 = vld [vmem:[#allocation259_spill] sm:$0xff]  ;;  %v1979_v56 = vld.sshfl [vmem:[#allocation1 + $0x8] sm:$0xff pattern:$0x75316420] }
 0x4d8   :  { %v7428_v13 = vadd.f32 %v7427_v15, %v7408_v57  ;;  %8686 = vmatmul.f32.vlgmr.msra.gmra.mxu0 %v12797_v14  ;;  %8706 = vmatmul.f32.vlgmr.msra.gmra.mxu1 %v12798_v20  ;;  %v1978_v55 = vld.sshfl [vmem:[#allocation1] sm:$0xff pattern:$0x75316420]  ;;  %v297_v47 = vld [vmem:[%s12203_s1 + $0x578] sm:$0x77] }
 0x4d9   :  { %v7447_v6 = vpop.f32.mrf.mxu2  ;;  %v7467_v21 = vpop.f32.mrf.mxu3  ;;  %8845 = vmatpush.xpose.msra.mxu0 %v1954_v46  ;;  %8865 = vmatpush.xpose.msra.mxu1 %v1955_v43  ;;  %v12803_v46 = vld [vmem:[#allocation258_spill] sm:$0xff]  ;;  %1986 = vst [vmem:[#allocation1] ss:$2 sm:$0xff] %v294_v2 }
 0x4da   :  { %v7448_v38 = vadd.f32 %v7447_v6, %v7428_v13  ;;  %1989 = vst [vmem:[#allocation1 + $0x30] ss:$2 sm:$0xff] %v297_v47  ;;  %v1982_v6 = vld.sshfl [vmem:[#allocation1 + $0x20] sm:$0xff pattern:$0x75316420] }
 0x4db   :  { %v1993_v19 = vld.sshfl [vmem:[#allocation1 + $0x18] sm:$0xff pattern:$0x75316420]  ;;  %v302_v47 = vld [vmem:[%s12203_s1 + $0x5a0] sm:$0x77] }
 0x4dc   :  { %v7468_v32 = vadd.f32 %v7467_v21, %v7448_v38  ;;  %v12812_v38 = vld [vmem:[#allocation267_spill] sm:$0xff] }
 0x4dd   :  { %v7487_v25 = vpop.f32.mrf.mxu0  ;;  %v7507_v23 = vpop.f32.mrf.mxu1 }
 0x4de   :  { %v7488_v26 = vadd.f32 %v7487_v25, %v7468_v32  ;;  %8806 = vmatmul.f32.vlgmr.msrb.gmra.mxu2 %v12799_v18  ;;  %8826 = vmatmul.f32.vlgmr.msrb.gmra.mxu3 %v12800_v50  ;;  %v12813_v25 = vld [vmem:[#allocation264_spill] sm:$0xff]  ;;  %v1992_v18 = vld.sshfl [vmem:[#allocation1 + $0x10] sm:$0xff pattern:$0x75316420] }
 0x4df   :  { %8965 = vmatpush.xpose.msrb.mxu2 %v1960_v42  ;;  %8985 = vmatpush.xpose.msrb.mxu3 %v1961_v30  ;;  %v12807_v42 = vld [vmem:[#allocation294_spill] sm:$0xff]  ;;  %v12808_v30 = vld [vmem:[#allocation295_spill] sm:$0xff] }
 0x4e0   :  { %v7508_v48 = vadd.f32 %v7507_v23, %v7488_v26  ;;  %8766 = vmatmul.f32.vlgmr.msrb.gmra.mxu0 %v12801_v49  ;;  %8786 = vmatmul.f32.vlgmr.msrb.gmra.mxu1 %v12802_v52  ;;  %v12814_v23 = vld [vmem:[#allocation265_spill] sm:$0xff] }
 0x4e1   :  { %v7527_v9 = vpop.f32.mrf.mxu2  ;;  %v7547_v63 = vpop.f32.mrf.mxu3  ;;  %8925 = vmatpush.xpose.msrb.mxu0 %v1958_v31  ;;  %8945 = vmatpush.xpose.msrb.mxu1 %v1959_v28  ;;  %v12809_v31 = vld [vmem:[#allocation292_spill] sm:$0xff]  ;;  %v12810_v28 = vld [vmem:[#allocation293_spill] sm:$0xff] }
 0x4e2   :  { %v7528_v33 = vadd.f32 %v7527_v9, %v7508_v48  ;;  %v1991_v48 = vld.sshfl [vmem:[#allocation1 + $0x8] sm:$0xff pattern:$0x75316420]  ;;  %v298_v9 = vld [vmem:[%s12203_s1 + $0x580] sm:$0x77] }
 0x4e3   :  { %v299_v49 = vld [vmem:[%s12203_s1 + $0x588] sm:$0x77] }
 0x4e4   :  { %v7548_v58 = vadd.f32 %v7547_v63, %v7528_v33  ;;  %1999 = vst [vmem:[#allocation1 + $0x10] ss:$2 sm:$0xff] %v299_v49  ;;  %v12829_v49 = vld [vmem:[#allocation280_spill] sm:$0xff] }
 0x4e5   :  { %v7567_v61 = vpop.f32.mrf.mxu0  ;;  %v7587_v7 = vpop.f32.mrf.mxu1 }
 0x4e6   :  { %v7568_v45 = vadd.f32 %v7567_v61, %v7548_v58  ;;  %8886 = vmatmul.f32.vlgmr.msra.gmra.mxu2 %v12803_v46  ;;  %8906 = vmatmul.f32.vlgmr.msra.gmra.mxu3 %v12804_v8  ;;  %v12818_v58 = vld [vmem:[#allocation301_spill] sm:$0xff]  ;;  %v1997_v8 = vld.sshfl [vmem:[#allocation1 + $0x38] sm:$0xff pattern:$0x75316420] }
 0x4e7   :  { %9045 = vmatpush.xpose.msra.mxu2 %v1968_v40  ;;  %9065 = vmatpush.xpose.msra.mxu3 %v1969_v39  ;;  %v12811_v40 = vld [vmem:[#allocation266_spill] sm:$0xff]  ;;  %v1983_v39 = vld.sshfl [vmem:[#allocation1 + $0x28] sm:$0xff pattern:$0x75316420] }
 0x4e8   :  { %v7588_v43 = vadd.f32 %v7587_v7, %v7568_v45  ;;  %8846 = vmatmul.f32.vlgmr.msra.gmra.mxu0 %v12805_v44  ;;  %8866 = vmatmul.f32.vlgmr.msra.gmra.mxu1 %v12806_v4  ;;  %1988 = vst [vmem:[#allocation1 + $0x20] ss:$2 sm:$0xff] %v296_v41  ;;  %v301_v45 = vld [vmem:[%s12203_s1 + $0x598] sm:$0x77] }
 0x4e9   :  { %v7607_v3 = vpop.f32.mrf.mxu2  ;;  %v7627_v11 = vpop.f32.mrf.mxu3  ;;  %9005 = vmatpush.xpose.msra.mxu0 %v1966_v24  ;;  %9025 = vmatpush.xpose.msra.mxu1 %v1967_v51  ;;  %v1990_v51 = vld.sshfl [vmem:[#allocation1] sm:$0xff pattern:$0x75316420]  ;;  %v1996_v46 = vld.sshfl [vmem:[#allocation1 + $0x30] sm:$0xff pattern:$0x75316420] }
 0x4ea   :  { %v7608_v22 = vadd.f32 %v7607_v3, %v7588_v43  ;;  %1998 = vst [vmem:[#allocation1] ss:$2 sm:$0xff] %v298_v9 }
 0x4eb   :  { %2001 = vst [vmem:[#allocation1 + $0x30] ss:$2 sm:$0xff] %v301_v45  ;;  %v2004_v2 = vld.sshfl [vmem:[#allocation1 + $0x10] sm:$0xff pattern:$0x75316420] }
 0x4ec   :  { %v7628_v1 = vadd.f32 %v7627_v11, %v7608_v22  ;;  %v300_v22 = vld [vmem:[%s12203_s1 + $0x590] sm:$0x77] }
 0x4ed   :  { %v7647_v53 = vpop.f32.mrf.mxu0  ;;  %v7667_v54 = vpop.f32.mrf.mxu1 }
 0x4ee   :  { %v7648_v5 = vadd.f32 %v7647_v53, %v7628_v1  ;;  %8966 = vmatmul.f32.vlgmr.msrb.gmra.mxu2 %v12807_v42  ;;  %8986 = vmatmul.f32.vlgmr.msrb.gmra.mxu3 %v12808_v30  ;;  %v2005_v42 = vld.sshfl [vmem:[#allocation1 + $0x18] sm:$0xff pattern:$0x75316420]  ;;  %v303_v30 = vld [vmem:[%s12203_s1 + $0x5a8] sm:$0x77] }
 0x4ef   :  { %9125 = vmatpush.xpose.msrb.mxu2 %v1972_v35  ;;  %9145 = vmatpush.xpose.msrb.mxu3 %v1973_v36  ;;  %v12816_v36 = vld [vmem:[#allocation303_spill] sm:$0xff]  ;;  %v1995_v4 = vld.sshfl [vmem:[#allocation1 + $0x28] sm:$0xff pattern:$0x75316420]  ;;  %2011 = vst [vmem:[#allocation1 + $0x10] ss:$2 sm:$0xff] %v303_v30 }
 0x4f0   :  { %v7668_v37 = vadd.f32 %v7667_v54, %v7648_v5  ;;  %8926 = vmatmul.f32.vlgmr.msrb.gmra.mxu0 %v12809_v31  ;;  %8946 = vmatmul.f32.vlgmr.msrb.gmra.mxu1 %v12810_v28  ;;  %v1994_v44 = vld.sshfl [vmem:[#allocation1 + $0x20] sm:$0xff pattern:$0x75316420] }
 0x4f1   :  { %v7687_v29 = vpop.f32.mrf.mxu2  ;;  %v7707_v15 = vpop.f32.mrf.mxu3  ;;  %9085 = vmatpush.xpose.msrb.mxu0 %v1970_v34  ;;  %9105 = vmatpush.xpose.msrb.mxu1 %v1971_v10  ;;  %v12815_v34 = vld [vmem:[#allocation302_spill] sm:$0xff]  ;;  %2000 = vst [vmem:[#allocation1 + $0x20] ss:$2 sm:$0xff] %v300_v22  ;;  %v12836_v30 = vld [vmem:[#allocation288_spill] sm:$0xff] }
 0x4f2   :  { %v7688_v57 = vadd.f32 %v7687_v29, %v7668_v37  ;;  %v2002_v29 = vld.sshfl [vmem:[#allocation1] sm:$0xff pattern:$0x75316420]  ;;  %v2009_v41 = vld.sshfl [vmem:[#allocation1 + $0x38] sm:$0xff pattern:$0x75316420] }
 0x4f4   :  { %v7708_v13 = vadd.f32 %v7707_v15, %v7688_v57  ;;  %v12824_v57 = vld [vmem:[#allocation311_spill] sm:$0xff] }
 0x4f5   :  { %v7727_v14 = vpop.f32.mrf.mxu0  ;;  %v7747_v20 = vpop.f32.mrf.mxu1 }
 0x4f6   :  { %v7728_v21 = vadd.f32 %v7727_v14, %v7708_v13  ;;  %9046 = vmatmul.f32.vlgmr.msra.gmra.mxu2 %v12811_v40  ;;  %9066 = vmatmul.f32.vlgmr.msra.gmra.mxu3 %v12812_v38  ;;  %v12825_v14 = vld [vmem:[#allocation308_spill] sm:$0xff]  ;;  %v2008_v40 = vld.sshfl [vmem:[#allocation1 + $0x30] sm:$0xff pattern:$0x75316420] }
 0x4f7   :  { %9205 = vmatpush.xpose.msra.mxu2 %v1980_v17  ;;  %9225 = vmatpush.xpose.msra.mxu3 %v1981_v27  ;;  %v12819_v17 = vld [vmem:[#allocation274_spill] sm:$0xff]  ;;  %v12820_v27 = vld [vmem:[#allocation275_spill] sm:$0xff] }
 0x4f8   :  { %v7748_v32 = vadd.f32 %v7747_v20, %v7728_v21  ;;  %9006 = vmatmul.f32.vlgmr.msra.gmra.mxu0 %v12813_v25  ;;  %9026 = vmatmul.f32.vlgmr.msra.gmra.mxu1 %v12814_v23  ;;  %v12826_v20 = vld [vmem:[#allocation309_spill] sm:$0xff]  ;;  %v305_v25 = vld [vmem:[%s12203_s1 + $0x5b8] sm:$0x77] }
 0x4f9   :  { %v7767_v24 = vpop.f32.mrf.mxu2  ;;  %v7787_v26 = vpop.f32.mrf.mxu3  ;;  %9165 = vmatpush.xpose.msra.mxu0 %v1978_v55  ;;  %9185 = vmatpush.xpose.msra.mxu1 %v1979_v56  ;;  %v12821_v55 = vld [vmem:[#allocation272_spill] sm:$0xff]  ;;  %v12822_v56 = vld [vmem:[#allocation273_spill] sm:$0xff]  ;;  %2013 = vst [vmem:[#allocation1 + $0x30] ss:$2 sm:$0xff] %v305_v25 }
 0x4fa   :  { %v7768_v50 = vadd.f32 %v7767_v24, %v7748_v32  ;;  %v2007_v32 = vld.sshfl [vmem:[#allocation1 + $0x28] sm:$0xff pattern:$0x75316420]  ;;  %v304_v24 = vld [vmem:[%s12203_s1 + $0x5b0] sm:$0x77] }
 0x4fc   :  { %v7788_v52 = vadd.f32 %v7787_v26, %v7768_v50 }
 0x4fd   :  { %v7807_v63 = vpop.f32.mrf.mxu0  ;;  %v7827_v35 = vpop.f32.mrf.mxu1 }
 0x4fe   :  { %v7808_v33 = vadd.f32 %v7807_v63, %v7788_v52  ;;  %9126 = vmatmul.f32.vlgmr.msrb.gmra.mxu2 %v12815_v34  ;;  %9146 = vmatmul.f32.vlgmr.msrb.gmra.mxu3 %v12816_v36  ;;  %v12830_v52 = vld [vmem:[#allocation281_spill] sm:$0xff]  ;;  %v2017_v36 = vld.sshfl [vmem:[#allocation1 + $0x18] sm:$0xff pattern:$0x75316420] }
 0x4ff   :  { %9285 = vmatpush.xpose.msrb.mxu2 %v1984_v16  ;;  %9305 = vmatpush.xpose.msrb.mxu3 %v1985_v0  ;;  %v12823_v16 = vld [vmem:[#allocation310_spill] sm:$0xff]  ;;  %v2003_v0 = vld.sshfl [vmem:[#allocation1 + $0x8] sm:$0xff pattern:$0x75316420] }
 0x500   :  { %v7828_v10 = vadd.f32 %v7827_v35, %v7808_v33  ;;  %9086 = vmatmul.f32.vlgmr.msrb.gmra.mxu0 %v12817_v60  ;;  %9106 = vmatmul.f32.vlgmr.msrb.gmra.mxu1 %v12818_v58  ;;  %2010 = vst [vmem:[#allocation1] ss:$2 sm:$0xff] %v302_v47  ;;  %v307_v33 = vld [vmem:[%s12203_s1 + $0x5c8] sm:$0x77] }
 0x501   :  { %v7847_v59 = vpop.f32.mrf.mxu2  ;;  %v7867_v61 = vpop.f32.mrf.mxu3  ;;  %9245 = vmatpush.xpose.msrb.mxu0 %v1982_v6  ;;  %9265 = vmatpush.xpose.msrb.mxu1 %v1983_v39  ;;  %v2006_v39 = vld.sshfl [vmem:[#allocation1 + $0x20] sm:$0xff pattern:$0x75316420]  ;;  %v2016_v34 = vld.sshfl [vmem:[#allocation1 + $0x10] sm:$0xff pattern:$0x75316420] }
 0x502   :  { %v7848_v7 = vadd.f32 %v7847_v59, %v7828_v10  ;;  %2012 = vst [vmem:[#allocation1 + $0x20] ss:$2 sm:$0xff] %v304_v24  ;;  %v311_v47 = vld [vmem:[%s12203_s1 + $0x5e8] sm:$0x77] }
 0x503   :  { %2023 = vst [vmem:[#allocation1 + $0x10] ss:$2 sm:$0xff] %v307_v33  ;;  %v12843_v33 = vld [vmem:[#allocation299_spill] sm:$0xff] }
 0x504   :  { %v7868_v43 = vadd.f32 %v7867_v61, %v7848_v7  ;;  %v306_v7 = vld [vmem:[%s12203_s1 + $0x5c0] sm:$0x77] }
 0x505   :  { %v7887_v3 = vpop.f32.mrf.mxu0  ;;  %v7907_v11 = vpop.f32.mrf.mxu1 }
 0x506   :  { %v7888_v12 = vadd.f32 %v7887_v3, %v7868_v43  ;;  %9206 = vmatmul.f32.vlgmr.msra.gmra.mxu2 %v12819_v17  ;;  %9226 = vmatmul.f32.vlgmr.msra.gmra.mxu3 %v12820_v27  ;;  %v12832_v43 = vld [vmem:[#allocation316_spill] sm:$0xff] }
 0x507   :  { %9365 = vmatpush.xpose.msra.mxu2 %v1992_v18  ;;  %9385 = vmatpush.xpose.msra.mxu3 %v1993_v19  ;;  %v12828_v19 = vld [vmem:[#allocation283_spill] sm:$0xff]  ;;  %v2015_v58 = vld.sshfl [vmem:[#allocation1 + $0x8] sm:$0xff pattern:$0x75316420] }
 0x508   :  { %v7908_v1 = vadd.f32 %v7907_v11, %v7888_v12  ;;  %9166 = vmatmul.f32.vlgmr.msra.gmra.mxu0 %v12821_v55  ;;  %9186 = vmatmul.f32.vlgmr.msra.gmra.mxu1 %v12822_v56  ;;  %v2014_v60 = vld.sshfl [vmem:[#allocation1] sm:$0xff pattern:$0x75316420]  ;;  %v2020_v11 = vld.sshfl [vmem:[#allocation1 + $0x30] sm:$0xff pattern:$0x75316420] }
 0x509   :  { %v7927_v53 = vpop.f32.mrf.mxu2  ;;  %v7947_v54 = vpop.f32.mrf.mxu3  ;;  %9325 = vmatpush.xpose.msra.mxu0 %v1990_v51  ;;  %9345 = vmatpush.xpose.msra.mxu1 %v1991_v48  ;;  %v12827_v51 = vld [vmem:[#allocation282_spill] sm:$0xff]  ;;  %2022 = vst [vmem:[#allocation1] ss:$2 sm:$0xff] %v306_v7  ;;  %v2018_v55 = vld.sshfl [vmem:[#allocation1 + $0x20] sm:$0xff pattern:$0x75316420] }
 0x50a   :  { %v7928_v5 = vadd.f32 %v7927_v53, %v7908_v1  ;;  %v2021_v12 = vld.sshfl [vmem:[#allocation1 + $0x38] sm:$0xff pattern:$0x75316420] }
 0x50b   :  { %v12834_v53 = vld [vmem:[#allocation290_spill] sm:$0xff] }
 0x50c   :  { %v7948_v37 = vadd.f32 %v7947_v54, %v7928_v5  ;;  %v12835_v54 = vld [vmem:[#allocation291_spill] sm:$0xff]  ;;  %v308_v5 = vld [vmem:[%s12203_s1 + $0x5d0] sm:$0x77] }
 0x50d   :  { %v7967_v31 = vpop.f32.mrf.mxu0  ;;  %v7987_v28 = vpop.f32.mrf.mxu1 }
 0x50e   :  { %v7968_v15 = vadd.f32 %v7967_v31, %v7948_v37  ;;  %9286 = vmatmul.f32.vlgmr.msrb.gmra.mxu2 %v12823_v16  ;;  %9306 = vmatmul.f32.vlgmr.msrb.gmra.mxu3 %v12824_v57  ;;  %v12837_v37 = vld [vmem:[#allocation289_spill] sm:$0xff]  ;;  %v2029_v57 = vld.sshfl [vmem:[#allocation1 + $0x18] sm:$0xff pattern:$0x75316420] }
 0x50f   :  { %9445 = vmatpush.xpose.msrb.mxu2 %v1996_v46  ;;  %9465 = vmatpush.xpose.msrb.mxu3 %v1997_v8  ;;  %v12831_v46 = vld [vmem:[#allocation318_spill] sm:$0xff] }
 0x510   :  { %v7988_v13 = vadd.f32 %v7987_v28, %v7968_v15  ;;  %9246 = vmatmul.f32.vlgmr.msrb.gmra.mxu0 %v12825_v14  ;;  %9266 = vmatmul.f32.vlgmr.msrb.gmra.mxu1 %v12826_v20  ;;  %v2026_v16 = vld.sshfl [vmem:[#allocation1] sm:$0xff pattern:$0x75316420] }
 0x511   :  { %v8007_v6 = vpop.f32.mrf.mxu2  ;;  %v8027_v21 = vpop.f32.mrf.mxu3  ;;  %9405 = vmatpush.xpose.msrb.mxu0 %v1994_v44  ;;  %9425 = vmatpush.xpose.msrb.mxu1 %v1995_v4  ;;  %v12833_v44 = vld [vmem:[#allocation317_spill] sm:$0xff]  ;;  %v310_v14 = vld [vmem:[%s12203_s1 + $0x5e0] sm:$0x77] }
 0x512   :  { %v8008_v38 = vadd.f32 %v8007_v6, %v7988_v13 }
 0x514   :  { %v8028_v23 = vadd.f32 %v8027_v21, %v8008_v38  ;;  %v12839_v38 = vld [vmem:[#allocation322_spill] sm:$0xff] }
 0x515   :  { %v8047_v26 = vpop.f32.mrf.mxu0  ;;  %v8067_v18 = vpop.f32.mrf.mxu1 }
 0x516   :  { %v8048_v50 = vadd.f32 %v8047_v26, %v8028_v23  ;;  %9366 = vmatmul.f32.vlgmr.msra.gmra.mxu2 %v12827_v51  ;;  %9386 = vmatmul.f32.vlgmr.msra.gmra.mxu3 %v12828_v19  ;;  %v313_v26 = vld [vmem:[%s12203_s1 + $0x5f8] sm:$0x77] }
 0x517   :  { %9525 = vmatpush.xpose.msra.mxu2 %v2004_v2  ;;  %9545 = vmatpush.xpose.msra.mxu3 %v2005_v42  ;;  %v2019_v2 = vld.sshfl [vmem:[#allocation1 + $0x28] sm:$0xff pattern:$0x75316420] }
 0x518   :  { %v8068_v48 = vadd.f32 %v8067_v18, %v8048_v50  ;;  %9326 = vmatmul.f32.vlgmr.msra.gmra.mxu0 %v12829_v49  ;;  %9346 = vmatmul.f32.vlgmr.msra.gmra.mxu1 %v12830_v52  ;;  %2024 = vst [vmem:[#allocation1 + $0x20] ss:$2 sm:$0xff] %v308_v5 }
 0x519   :  { %v8087_v9 = vpop.f32.mrf.mxu2  ;;  %v8107_v63 = vpop.f32.mrf.mxu3  ;;  %9485 = vmatpush.xpose.msra.mxu0 %v2002_v29  ;;  %9505 = vmatpush.xpose.msra.mxu1 %v2003_v0  ;;  %v2028_v29 = vld.sshfl [vmem:[#allocation1 + $0x10] sm:$0xff pattern:$0x75316420]  ;;  %v2027_v0 = vld.sshfl [vmem:[#allocation1 + $0x8] sm:$0xff pattern:$0x75316420] }
 0x51a   :  { %v8088_v35 = vadd.f32 %v8087_v9, %v8068_v48  ;;  %2035 = vst [vmem:[#allocation1 + $0x10] ss:$2 sm:$0xff] %v311_v47  ;;  %v312_v9 = vld [vmem:[%s12203_s1 + $0x5f0] sm:$0x77] }
 0x51b   :  { %2034 = vst [vmem:[#allocation1] ss:$2 sm:$0xff] %v310_v14  ;;  %v12854_v14 = vld [vmem:[#allocation329_spill] sm:$0xff] }
 0x51c   :  { %v8108_v10 = vadd.f32 %v8107_v63, %v8088_v35  ;;  %v12842_v35 = vld [vmem:[#allocation298_spill] sm:$0xff] }
 0x51d   :  { %v8127_v59 = vpop.f32.mrf.mxu0  ;;  %v8147_v61 = vpop.f32.mrf.mxu1 }
 0x51e   :  { %v8128_v45 = vadd.f32 %v8127_v59, %v8108_v10  ;;  %9446 = vmatmul.f32.vlgmr.msrb.gmra.mxu2 %v11195_v62  ;;  %9466 = vmatmul.f32.vlgmr.msrb.gmra.mxu3 %v12831_v46  ;;  %v309_v62 = vld [vmem:[%s12203_s1 + $0x5d8] sm:$0x77]  ;;  %v12845_v10 = vld [vmem:[#allocation297_spill] sm:$0xff] }
 0x51f   :  { %9605 = vmatpush.xpose.msrb.mxu2 %v2008_v40  ;;  %9625 = vmatpush.xpose.msrb.mxu3 %v2009_v41  ;;  %2025 = vst [vmem:[#allocation1 + $0x30] ss:$2 sm:$0xff] %v309_v62  ;;  %v12838_v40 = vld [vmem:[#allocation321_spill] sm:$0xff]  ;;  %v12840_v41 = vld [vmem:[#allocation319_spill] sm:$0xff] }
 0x520   :  { %v8148_v8 = vadd.f32 %v8147_v61, %v8128_v45  ;;  %9406 = vmatmul.f32.vlgmr.msrb.gmra.mxu0 %v12832_v43  ;;  %9426 = vmatmul.f32.vlgmr.msrb.gmra.mxu1 %v12833_v44  ;;  %v2030_v19 = vld.sshfl [vmem:[#allocation1 + $0x20] sm:$0xff pattern:$0x75316420]  ;;  %v2031_v48 = vld.sshfl [vmem:[#allocation1 + $0x28] sm:$0xff pattern:$0x75316420] }
 0x521   :  { %v8167_v4 = vpop.f32.mrf.mxu2  ;;  %v8187_v3 = vpop.f32.mrf.mxu3  ;;  %9565 = vmatpush.xpose.msrb.mxu0 %v2006_v39  ;;  %9585 = vmatpush.xpose.msrb.mxu1 %v2007_v32  ;;  %v12841_v32 = vld [vmem:[#allocation320_spill] sm:$0xff]  ;;  %2036 = vst [vmem:[#allocation1 + $0x20] ss:$2 sm:$0xff] %v312_v9  ;;  %v12847_v43 = vld [vmem:[#allocation326_spill] sm:$0xff] }
 0x522   :  { %v8168_v22 = vadd.f32 %v8167_v4, %v8148_v8  ;;  %v12846_v8 = vld [vmem:[#allocation325_spill] sm:$0xff]  ;;  %v12848_v4 = vld [vmem:[#allocation323_spill] sm:$0xff] }
 0x523   :  { %v2039_v5 = vld.sshfl [vmem:[#allocation1 + $0x8] sm:$0xff pattern:$0x75316420] }
 0x524   :  { %v8188_v17 = vadd.f32 %v8187_v3, %v8168_v22  ;;  %v12849_v3 = vld [vmem:[#allocation324_spill] sm:$0xff] }
 0x525   :  { %v8207_v27 = vpop.f32.mrf.mxu0  ;;  %v8227_v1 = vpop.f32.mrf.mxu1 }
 0x526   :  { %v8208_v56 = vadd.f32 %v8207_v27, %v8188_v17  ;;  %9526 = vmatmul.f32.vlgmr.msra.gmra.mxu2 %v12834_v53  ;;  %9546 = vmatmul.f32.vlgmr.msra.gmra.mxu3 %v12835_v54  ;;  %v2032_v18 = vld.sshfl [vmem:[#allocation1 + $0x30] sm:$0xff pattern:$0x75316420]  ;;  %v2033_v50 = vld.sshfl [vmem:[#allocation1 + $0x38] sm:$0xff pattern:$0x75316420] }
 0x527   :  { %9685 = vmatpush.xpose.msra.mxu2 %v2016_v34  ;;  %9705 = vmatpush.xpose.msra.mxu3 %v2017_v36  ;;  %2037 = vst [vmem:[#allocation1 + $0x30] ss:$2 sm:$0xff] %v313_v26  ;;  %v12844_v36 = vld [vmem:[#allocation296_spill] sm:$0xff]  ;;  %v2040_v17 = vld.sshfl [vmem:[#allocation1 + $0x10] sm:$0xff pattern:$0x75316420] }
 0x528   :  { %v8228_v42 = vadd.f32 %v8227_v1, %v8208_v56  ;;  %9486 = vmatmul.f32.vlgmr.msra.gmra.mxu0 %v12836_v30  ;;  %9506 = vmatmul.f32.vlgmr.msra.gmra.mxu1 %v12837_v37  ;;  %v2041_v27 = vld.sshfl [vmem:[#allocation1 + $0x18] sm:$0xff pattern:$0x75316420]  ;;  %v12852_v30 = vld [vmem:[#allocation304_spill] sm:$0xff]  ;;  %v12853_v37 = vld [vmem:[#allocation305_spill] sm:$0xff] }
 0x529   :  { %v8247_v31 = vpop.f32.mrf.mxu2  ;;  %v8267_v28 = vpop.f32.mrf.mxu3  ;;  %9645 = vmatpush.xpose.msra.mxu0 %v2014_v60  ;;  %9665 = vmatpush.xpose.msra.mxu1 %v2015_v58  ;;  %v12850_v53 = vld [vmem:[#allocation306_spill] sm:$0xff]  ;;  %v12851_v54 = vld [vmem:[#allocation307_spill] sm:$0xff] }
 0x52a   :  { %v8248_v15 = vadd.f32 %v8247_v31, %v8228_v42 }
 0x52c   :  { %v8268_v13 = vadd.f32 %v8267_v28, %v8248_v15 }
 0x52d   :  { %v8287_v20 = vpop.f32.mrf.mxu0  ;;  %v8307_v6 = vpop.f32.mrf.mxu1 }
 0x52e   :  { %v8288_v21 = vadd.f32 %v8287_v20, %v8268_v13  ;;  %9606 = vmatmul.f32.vlgmr.msrb.gmra.mxu2 %v12838_v40  ;;  %9626 = vmatmul.f32.vlgmr.msrb.gmra.mxu3 %v12839_v38  ;;  %v12855_v20 = vld [vmem:[#allocation330_spill] sm:$0xff]  ;;  %v12856_v38 = vld [vmem:[#allocation327_spill] sm:$0xff] }
 0x52f   :  { %9765 = vmatpush.xpose.msrb.mxu2 %v2020_v11  ;;  %9785 = vmatpush.xpose.msrb.mxu3 %v2021_v12 }
 0x530   :  { %v8308_v39 = vadd.f32 %v8307_v6, %v8288_v21  ;;  %9566 = vmatmul.f32.vlgmr.msrb.gmra.mxu0 %v12840_v41  ;;  %9586 = vmatmul.f32.vlgmr.msrb.gmra.mxu1 %v12841_v32  ;;  %v2042_v6 = vld.sshfl [vmem:[#allocation1 + $0x20] sm:$0xff pattern:$0x75316420]  ;;  %v2043_v21 = vld.sshfl [vmem:[#allocation1 + $0x28] sm:$0xff pattern:$0x75316420] }
 0x531   :  { %v8327_v25 = vpop.f32.mrf.mxu2  ;;  %v8347_v23 = vpop.f32.mrf.mxu3  ;;  %9725 = vmatpush.xpose.msrb.mxu0 %v2018_v55  ;;  %9745 = vmatpush.xpose.msrb.mxu1 %v2019_v2  ;;  %v2038_v2 = vld.sshfl [vmem:[#allocation1] sm:$0xff pattern:$0x75316420] }
 0x532   :  { %v8328_v24 = vadd.f32 %v8327_v25, %v8308_v39  ;;  %v12857_v39 = vld [vmem:[#allocation328_spill] sm:$0xff] }
 0x534   :  { %v8348_v51 = vadd.f32 %v8347_v23, %v8328_v24 }
 0x535   :  { %v8367_v49 = vpop.f32.mrf.mxu0  ;;  %v8387_v52 = vpop.f32.mrf.mxu1 }
 0x536   :  { %v8368_v63 = vadd.f32 %v8367_v49, %v8348_v51  ;;  %9686 = vmatmul.f32.vlgmr.msra.gmra.mxu2 %v12842_v35  ;;  %9706 = vmatmul.f32.vlgmr.msra.gmra.mxu3 %v12843_v33  ;;  %v12859_v51 = vld [vmem:[#allocation313_spill] sm:$0xff]  ;;  %v12861_v49 = vld [vmem:[#allocation315_spill] sm:$0xff] }
 0x537   :  { %9845 = vmatpush.xpose.msra.mxu2 %v2028_v29  ;;  %9865 = vmatpush.xpose.msra.mxu3 %v2029_v57  ;;  %v2045_v57 = vld.sshfl [vmem:[#allocation1 + $0x38] sm:$0xff pattern:$0x75316420] }
 0x538   :  { %v8388_v34 = vadd.f32 %v8387_v52, %v8368_v63  ;;  %9646 = vmatmul.f32.vlgmr.msra.gmra.mxu0 %v12844_v36  ;;  %9666 = vmatmul.f32.vlgmr.msra.gmra.mxu1 %v12845_v10  ;;  %v12862_v10 = vld [vmem:[#allocation331_spill] sm:$0xff] }
 0x539   :  { %v8407_v60 = vpop.f32.mrf.mxu2  ;;  %v8427_v58 = vpop.f32.mrf.mxu3  ;;  %9805 = vmatpush.xpose.msra.mxu0 %v2026_v16  ;;  %9825 = vmatpush.xpose.msra.mxu1 %v2027_v0  ;;  %v2044_v16 = vld.sshfl [vmem:[#allocation1 + $0x30] sm:$0xff pattern:$0x75316420] }
 0x53a   :  { %v8408_v59 = vadd.f32 %v8407_v60, %v8388_v34  ;;  %v12863_v60 = vld [vmem:[#allocation332_spill] sm:$0xff] }
 0x53c   :  { %v8428_v61 = vadd.f32 %v8427_v58, %v8408_v59  ;;  %v12864_v59 = vld [vmem:[#allocation333_spill] sm:$0xff] }
 0x53d   :  { %v8447_v7 = vpop.f32.mrf.mxu0  ;;  %v8467_v45 = vpop.f32.mrf.mxu1 }
 0x53e   :  { %v8448_v46 = vadd.f32 %v8447_v7, %v8428_v61  ;;  %9766 = vmatmul.f32.vlgmr.msrb.gmra.mxu2 %v12846_v8  ;;  %9786 = vmatmul.f32.vlgmr.msrb.gmra.mxu3 %v12847_v43  ;;  %v12865_v61 = vld [vmem:[#allocation334_spill] sm:$0xff] }
 0x53f   :  { %9925 = vmatpush.xpose.msrb.mxu2 %v2032_v18  ;;  %9945 = vmatpush.xpose.msrb.mxu3 %v2033_v50  ;;  %v12858_v50 = vld [vmem:[#allocation312_spill] sm:$0xff] }
 0x540   :  { %v8468_v44 = vadd.f32 %v8467_v45, %v8448_v46  ;;  %9726 = vmatmul.f32.vlgmr.msrb.gmra.mxu0 %v12848_v4  ;;  %9746 = vmatmul.f32.vlgmr.msrb.gmra.mxu1 %v12849_v3 }
 0x541   :  { %v8487_v11 = vpop.f32.mrf.mxu2  ;;  %v8507_v22 = vpop.f32.mrf.mxu3  ;;  %9885 = vmatpush.xpose.msrb.mxu0 %v2030_v19  ;;  %9905 = vmatpush.xpose.msrb.mxu1 %v2031_v48  ;;  %v12860_v48 = vld [vmem:[#allocation314_spill] sm:$0xff] }
 0x542   :  { %v8488_v12 = vadd.f32 %v8487_v11, %v8468_v44 }
 0x544   :  { %v8508_v62 = vadd.f32 %v8507_v22, %v8488_v12 }
 0x545   :  { %v8527_v1 = vpop.f32.mrf.mxu0  ;;  %v8547_v55 = vpop.f32.mrf.mxu1 }
 0x546   :  { %v8528_v56 = vadd.f32 %v8527_v1, %v8508_v62  ;;  %9846 = vmatmul.f32.vlgmr.msra.gmra.mxu2 %v12850_v53  ;;  %9866 = vmatmul.f32.vlgmr.msra.gmra.mxu3 %v12851_v54 }
 0x547   :  { %10005 = vmatpush.xpose.msra.mxu2 %v2040_v17  ;;  %10025 = vmatpush.xpose.msra.mxu3 %v2041_v27 }
 0x548   :  { %v8548_v42 = vadd.f32 %v8547_v55, %v8528_v56  ;;  %9806 = vmatmul.f32.vlgmr.msra.gmra.mxu0 %v12852_v30  ;;  %9826 = vmatmul.f32.vlgmr.msra.gmra.mxu1 %v12853_v37 }
 0x549   :  { %v8567_v31 = vpop.f32.mrf.mxu2  ;;  %v8587_v28 = vpop.f32.mrf.mxu3  ;;  %9965 = vmatpush.xpose.msra.mxu0 %v2038_v2  ;;  %9985 = vmatpush.xpose.msra.mxu1 %v2039_v5 }
 0x54a   :  { %v8568_v29 = vadd.f32 %v8567_v31, %v8548_v42 }
 0x54c   :  { %v8588_v15 = vadd.f32 %v8587_v28, %v8568_v29 }
 0x54d   :  { %v8607_v0 = vpop.f32.mrf.mxu0  ;;  %v8627_v47 = vpop.f32.mrf.mxu1 }
 0x54e   :  { %v8608_v13 = vadd.f32 %v8607_v0, %v8588_v15  ;;  %9926 = vmatmul.f32.vlgmr.msrb.gmra.mxu2 %v12854_v14  ;;  %9946 = vmatmul.f32.vlgmr.msrb.gmra.mxu3 %v12855_v20 }
 0x54f   :  { %10085 = vmatpush.xpose.msrb.mxu2 %v2044_v16  ;;  %10105 = vmatpush.xpose.msrb.mxu3 %v2045_v57 }
 0x550   :  { %v8628_v40 = vadd.f32 %v8627_v47, %v8608_v13  ;;  %9886 = vmatmul.f32.vlgmr.msrb.gmra.mxu0 %v12856_v38  ;;  %9906 = vmatmul.f32.vlgmr.msrb.gmra.mxu1 %v12857_v39 }
 0x551   :  { %v8647_v41 = vpop.f32.mrf.mxu2  ;;  %v8667_v32 = vpop.f32.mrf.mxu3  ;;  %10045 = vmatpush.xpose.msrb.mxu0 %v2042_v6  ;;  %10065 = vmatpush.xpose.msrb.mxu1 %v2043_v21 }
 0x552   :  { %v8648_v25 = vadd.f32 %v8647_v41, %v8628_v40 }
 0x554   :  { %v8668_v23 = vadd.f32 %v8667_v32, %v8648_v25 }
 0x555   :  { %v8687_v24 = vpop.f32.mrf.mxu0  ;;  %v8707_v26 = vpop.f32.mrf.mxu1 }
 0x556   :  { %v8688_v18 = vadd.f32 %v8687_v24, %v8668_v23  ;;  %10006 = vmatmul.f32.vlgmr.msra.gmra.mxu2 %v12858_v50  ;;  %10026 = vmatmul.f32.vlgmr.msra.gmra.mxu3 %v12859_v51 }
 0x558   :  { %v8708_v19 = vadd.f32 %v8707_v26, %v8688_v18  ;;  %9966 = vmatmul.f32.vlgmr.msra.gmra.mxu0 %v12860_v48  ;;  %9986 = vmatmul.f32.vlgmr.msra.gmra.mxu1 %v12861_v49 }
 0x559   :  { %v8727_v52 = vpop.f32.mrf.mxu2  ;;  %v8747_v9 = vpop.f32.mrf.mxu3 }
 0x55a   :  { %v8728_v63 = vadd.f32 %v8727_v52, %v8708_v19 }
 0x55c   :  { %v8748_v35 = vadd.f32 %v8747_v9, %v8728_v63 }
 0x55d   :  { %v8767_v33 = vpop.f32.mrf.mxu0  ;;  %v8787_v34 = vpop.f32.mrf.mxu1 }
 0x55e   :  { %v8768_v36 = vadd.f32 %v8767_v33, %v8748_v35  ;;  %10086 = vmatmul.f32.vlgmr.msrb.gmra.mxu2 %v12862_v10  ;;  %10106 = vmatmul.f32.vlgmr.msrb.gmra.mxu3 %v12863_v60 }
 0x560   :  { %v8788_v58 = vadd.f32 %v8787_v34, %v8768_v36  ;;  %10046 = vmatmul.f32.vlgmr.msrb.gmra.mxu0 %v12864_v59  ;;  %10066 = vmatmul.f32.vlgmr.msrb.gmra.mxu1 %v12865_v61 }
 0x561   :  { %v8807_v7 = vpop.f32.mrf.mxu2  ;;  %v8827_v45 = vpop.f32.mrf.mxu3 }
 0x562   :  { %v8808_v46 = vadd.f32 %v8807_v7, %v8788_v58 }
 0x564   :  { %v8828_v8 = vadd.f32 %v8827_v45, %v8808_v46 }
 0x565   :  { %v8847_v43 = vpop.f32.mrf.mxu0  ;;  %v8867_v44 = vpop.f32.mrf.mxu1 }
 0x566   :  { %v8848_v4 = vadd.f32 %v8847_v43, %v8828_v8 }
 0x568   :  { %v8868_v3 = vadd.f32 %v8867_v44, %v8848_v4 }
 0x569   :  { %v8887_v11 = vpop.f32.mrf.mxu2  ;;  %v8907_v22 = vpop.f32.mrf.mxu3 }
 0x56a   :  { %v8888_v12 = vadd.f32 %v8887_v11, %v8868_v3 }
 0x56c   :  { %v8908_v62 = vadd.f32 %v8907_v22, %v8888_v12 }
 0x56d   :  { %v8927_v17 = vpop.f32.mrf.mxu0  ;;  %v8947_v27 = vpop.f32.mrf.mxu1 }
 0x56e   :  { %v8928_v1 = vadd.f32 %v8927_v17, %v8908_v62 }
 0x570   :  { %v8948_v55 = vadd.f32 %v8947_v27, %v8928_v1 }
 0x571   :  { %v8967_v56 = vpop.f32.mrf.mxu2  ;;  %v8987_v53 = vpop.f32.mrf.mxu3 }
 0x572   :  { %v8968_v54 = vadd.f32 %v8967_v56, %v8948_v55 }
 0x574   :  { %v8988_v2 = vadd.f32 %v8987_v53, %v8968_v54 }
 0x575   :  { %v9007_v5 = vpop.f32.mrf.mxu0  ;;  %v9027_v42 = vpop.f32.mrf.mxu1 }
 0x576   :  { %v9008_v30 = vadd.f32 %v9007_v5, %v8988_v2 }
 0x578   :  { %v9028_v37 = vadd.f32 %v9027_v42, %v9008_v30 }
 0x579   :  { %v9047_v31 = vpop.f32.mrf.mxu2  ;;  %v9067_v28 = vpop.f32.mrf.mxu3 }
 0x57a   :  { %v9048_v29 = vadd.f32 %v9047_v31, %v9028_v37 }
 0x57c   :  { %v9068_v15 = vadd.f32 %v9067_v28, %v9048_v29 }
 0x57d   :  { %v9087_v16 = vpop.f32.mrf.mxu0  ;;  %v9107_v57 = vpop.f32.mrf.mxu1 }
 0x57e   :  { %v9088_v0 = vadd.f32 %v9087_v16, %v9068_v15  ;;  %v10130_v16 = vld [vmem:[%s12204_s2] ss:$0 sm:$0xff]  ;;  %s10157_s2 = smov [#allocation2]  }
 0x57f   :  { %24 = vst.msk [vmem:[#allocation2] sm:$0x3] %vm23_vm0, %v10130_v16  ;;  %s10118_s8 = sshll.u32 %s10157_s2, 4  ;;  %s10119_s8 = int_to_ptr.vmem [resolvable:$true] %s10118_s8 }
 0x580   :  { %v9108_v47 = vadd.f32 %v9107_v57, %v9088_v0 }
 0x581   :  { %v9127_v13 = vpop.f32.mrf.mxu2  ;;  %v9147_v14 = vpop.f32.mrf.mxu3 }
 0x582   :  { %v9128_v20 = vadd.f32 %v9127_v13, %v9108_v47 }
 0x584   :  { %v9148_v6 = vadd.f32 %v9147_v14, %v9128_v20 }
 0x585   :  { %v9167_v21 = vpop.f32.mrf.mxu0  ;;  %v9187_v40 = vpop.f32.mrf.mxu1 }
 0x586   :  { %v9168_v38 = vadd.f32 %v9167_v21, %v9148_v6 }
 0x588   :  { %v9188_v39 = vadd.f32 %v9187_v40, %v9168_v38 }
 0x589   :  { %v9207_v41 = vpop.f32.mrf.mxu2  ;;  %v9227_v32 = vpop.f32.mrf.mxu3 }
 0x58a   :  { %v9208_v25 = vadd.f32 %v9207_v41, %v9188_v39 }
 0x58c   :  { %v9228_v23 = vadd.f32 %v9227_v32, %v9208_v25 }
 0x58d   :  { %v9247_v24 = vpop.f32.mrf.mxu0  ;;  %v9267_v26 = vpop.f32.mrf.mxu1 }
 0x58e   :  { %v9248_v18 = vadd.f32 %v9247_v24, %v9228_v23 }
 0x590   :  { %v9268_v50 = vadd.f32 %v9267_v26, %v9248_v18 }
 0x591   :  { %v9287_v51 = vpop.f32.mrf.mxu2  ;;  %v9307_v19 = vpop.f32.mrf.mxu3 }
 0x592   :  { %v9288_v48 = vadd.f32 %v9287_v51, %v9268_v50 }
 0x594   :  { %v9308_v49 = vadd.f32 %v9307_v19, %v9288_v48 }
 0x595   :  { %v9327_v52 = vpop.f32.mrf.mxu0  ;;  %v9347_v9 = vpop.f32.mrf.mxu1 }
 0x596   :  { %v9328_v63 = vadd.f32 %v9327_v52, %v9308_v49 }
 0x598   :  { %v9348_v35 = vadd.f32 %v9347_v9, %v9328_v63 }
 0x599   :  { %v9367_v33 = vpop.f32.mrf.mxu2  ;;  %v9387_v34 = vpop.f32.mrf.mxu3 }
 0x59a   :  { %v9368_v36 = vadd.f32 %v9367_v33, %v9348_v35 }
 0x59c   :  { %v9388_v10 = vadd.f32 %v9387_v34, %v9368_v36 }
 0x59d   :  { %v9407_v60 = vpop.f32.mrf.mxu0  ;;  %v9427_v58 = vpop.f32.mrf.mxu1 }
 0x59e   :  { %v9408_v59 = vadd.f32 %v9407_v60, %v9388_v10 }
 0x5a0   :  { %v9428_v61 = vadd.f32 %v9427_v58, %v9408_v59 }
 0x5a1   :  { %v9447_v7 = vpop.f32.mrf.mxu2  ;;  %v9467_v45 = vpop.f32.mrf.mxu3 }
 0x5a2   :  { %v9448_v46 = vadd.f32 %v9447_v7, %v9428_v61 }
 0x5a4   :  { %v9468_v8 = vadd.f32 %v9467_v45, %v9448_v46 }
 0x5a5   :  { %v9487_v43 = vpop.f32.mrf.mxu0  ;;  %v9507_v44 = vpop.f32.mrf.mxu1 }
 0x5a6   :  { %v9488_v4 = vadd.f32 %v9487_v43, %v9468_v8  ;;  %v25_v43 = vld [vmem:[#allocation2] sm:$0x3] }
 0x5a8   :  { %v9508_v3 = vadd.f32 %v9507_v44, %v9488_v4 }
 0x5a9   :  { %v9527_v11 = vpop.f32.mrf.mxu2  ;;  %v9547_v22 = vpop.f32.mrf.mxu3 }
 0x5aa   :  { %v9528_v12 = vadd.f32 %v9527_v11, %v9508_v3 }
 0x5ac   :  { %v9548_v62 = vadd.f32 %v9547_v22, %v9528_v12 }
 0x5ad   :  { %v9567_v17 = vpop.f32.mrf.mxu0  ;;  %v9587_v27 = vpop.f32.mrf.mxu1 }
 0x5ae   :  { %v9568_v1 = vadd.f32 %v9567_v17, %v9548_v62 }
 0x5b0   :  { %v9588_v55 = vadd.f32 %v9587_v27, %v9568_v1 }
 0x5b1   :  { %v9607_v56 = vpop.f32.mrf.mxu2  ;;  %v9627_v53 = vpop.f32.mrf.mxu3 }
 0x5b2   :  { %v9608_v54 = vadd.f32 %v9607_v56, %v9588_v55 }
 0x5b4   :  { %v9628_v2 = vadd.f32 %v9627_v53, %v9608_v54 }
 0x5b5   :  { %v9647_v5 = vpop.f32.mrf.mxu0  ;;  %v9667_v42 = vpop.f32.mrf.mxu1 }
 0x5b6   :  { %v9648_v30 = vadd.f32 %v9647_v5, %v9628_v2 }
 0x5b8   :  { %v9668_v37 = vadd.f32 %v9667_v42, %v9648_v30 }
 0x5b9   :  { %v9687_v31 = vpop.f32.mrf.mxu2  ;;  %v9707_v28 = vpop.f32.mrf.mxu3 }
 0x5ba   :  { %v9688_v29 = vadd.f32 %v9687_v31, %v9668_v37 }
 0x5bc   :  { %v9708_v15 = vadd.f32 %v9707_v28, %v9688_v29 }
 0x5bd   :  { %v9727_v57 = vpop.f32.mrf.mxu0  ;;  %v9747_v0 = vpop.f32.mrf.mxu1 }
 0x5be   :  { %v9728_v47 = vadd.f32 %v9727_v57, %v9708_v15 }
 0x5c0   :  { %v9748_v13 = vadd.f32 %v9747_v0, %v9728_v47 }
 0x5c1   :  { %v9767_v14 = vpop.f32.mrf.mxu2  ;;  %v9787_v20 = vpop.f32.mrf.mxu3 }
 0x5c2   :  { %v9768_v6 = vadd.f32 %v9767_v14, %v9748_v13 }
 0x5c4   :  { %v9788_v21 = vadd.f32 %v9787_v20, %v9768_v6 }
 0x5c5   :  { %v9807_v40 = vpop.f32.mrf.mxu0  ;;  %v9827_v38 = vpop.f32.mrf.mxu1 }
 0x5c6   :  { %v9808_v39 = vadd.f32 %v9807_v40, %v9788_v21 }
 0x5c8   :  { %v9828_v41 = vadd.f32 %v9827_v38, %v9808_v39 }
 0x5c9   :  { %v9847_v32 = vpop.f32.mrf.mxu2  ;;  %v9867_v25 = vpop.f32.mrf.mxu3 }
 0x5ca   :  { %v9848_v23 = vadd.f32 %v9847_v32, %v9828_v41 }
 0x5cc   :  { %v9868_v24 = vadd.f32 %v9867_v25, %v9848_v23 }
 0x5cd   :  { %v9887_v26 = vpop.f32.mrf.mxu0  ;;  %v9907_v18 = vpop.f32.mrf.mxu1 }
 0x5ce   :  { %v9888_v50 = vadd.f32 %v9887_v26, %v9868_v24 }
 0x5d0   :  { %v9908_v51 = vadd.f32 %v9907_v18, %v9888_v50 }
 0x5d1   :  { %v9927_v19 = vpop.f32.mrf.mxu2  ;;  %v9947_v48 = vpop.f32.mrf.mxu3 }
 0x5d2   :  { %v9928_v49 = vadd.f32 %v9927_v19, %v9908_v51 }
 0x5d4   :  { %v9948_v52 = vadd.f32 %v9947_v48, %v9928_v49 }
 0x5d5   :  { %v9967_v9 = vpop.f32.mrf.mxu0  ;;  %v9987_v63 = vpop.f32.mrf.mxu1 }
 0x5d6   :  { %v9968_v35 = vadd.f32 %v9967_v9, %v9948_v52 }
 0x5d8   :  { %v9988_v33 = vadd.f32 %v9987_v63, %v9968_v35 }
 0x5d9   :  { %v10007_v34 = vpop.f32.mrf.mxu2  ;;  %v10027_v36 = vpop.f32.mrf.mxu3 }
 0x5da   :  { %v10008_v10 = vadd.f32 %v10007_v34, %v9988_v33 }
 0x5dc   :  { %v10028_v60 = vadd.f32 %v10027_v36, %v10008_v10 }
 0x5dd   :  { %v10047_v58 = vpop.f32.mrf.mxu0  ;;  %v10067_v59 = vpop.f32.mrf.mxu1 }
 0x5de   :  { %v10048_v61 = vadd.f32 %v10047_v58, %v10028_v60 }
 0x5e0   :  { %v10068_v7 = vadd.f32 %v10067_v59, %v10048_v61 }
 0x5e1   :  { %v10087_v45 = vpop.f32.mrf.mxu2  ;;  %v10107_v46 = vpop.f32.mrf.mxu3 }
 0x5e2   :  { %v10088_v8 = vadd.f32 %v10087_v45, %v10068_v7 }
 0x5e4   :  { %v10108_v44 = vadd.f32 %v10107_v46, %v10088_v8 }
 0x5e6   :  { %v10110_v4 = vadd.f32 %v10108_v44, %v25_v43 }
 0x5e8   :  { %10112 = vst.msk [vmem:[#allocation2] sm:$0x3] %vm23_vm0, %v10110_v4 }
 0x5e9   :  { %10123 = dma.vmem_to_hbm [thread:$0]  %s10119_s8, 32, %s10121_s11, [#allocation3]  }
 0x5ea   :  { %10155 = dma.done.wait [#allocation3], 32  }
 0x5eb   :  { %10156 = vsyncadd [#allocation3], 4294967264 }
 0x5ec   :  { %10128 = vsyncpa [#allocation3], 1 }

</bundles_post_ra>
